<compile_context>
chip_gen: v6e
topology: v6e:2x2x1
jax: 0.10.0
libtpu: 0.0.40
codegen_flags: <defaults>
</compile_context>

<pallas_src>
import functools

import jax
import jax.numpy as jnp
from jax.experimental import pallas as pl
from jax.experimental.pallas import tpu as pltpu

_BN_EPS = 1e-5


# ----------------------------------------------------------------------------
# Fused kernel: one image per grid step (grid=(N,), "parallel" => on v7x the
# two images land on the two TensorCores; on v5e/v6e it is a short serial
# loop over a fully VMEM-resident computation).
#
# Activation buffers are zero-guarded padded frames flattened on lanes:
#     [ guard(=base lanes) | Hp*Wp frame (halo kept at 0) | guard ]
# so a KxK "same" conv is K*K static lane-offset slices concatenated into an
# im2col patch matrix and ONE MXU matmul per layer:
#     (Cout, K*K*Cin) @ (K*K*Cin, Hp*Wp)
# Epilogue per layer: + folded (bias/BN) shift, optional ReLU, then a masked
# store back into the other scratch buffer (re-zeroes the halo, so "same"
# padding never leaves VMEM).
# ----------------------------------------------------------------------------
def _conv_prompt_kernel(x_ref, m_ref, w1, s1, w2, s2, w3, s3, w4, s4, w5, s5,
                        *rest, H, W, pm, base, has_shortcut):
    if has_shortcut:
        w0, s0, o_ref, buf_a, buf_b = rest
    else:
        o_ref, buf_a, buf_b = rest

    Wp = W + 2 * pm
    Hp = H + 2 * pm
    frame = Hp * Wp
    mask = m_ref[...]                      # (1, frame): 1.0 interior, 0.0 halo

    # Zero scratch once per image: guarantees zero guard bands / halos.
    buf_a[...] = jnp.zeros_like(buf_a)
    buf_b[...] = jnp.zeros_like(buf_b)

    def conv(tap_fn, k, w_ref, s_ref, relu):
        cout_l, cols = w_ref.shape
        cin_l = cols // (k * k)
        pad = (k - 1) // 2
        taps = [tap_fn(cin_l, base + dh * Wp + dw)        # static K*K taps
                for dh in range(-pad, pad + 1)
                for dw in range(-pad, pad + 1)]
        patches = taps[0] if len(taps) == 1 else jnp.concatenate(taps, axis=0)
        y = jnp.dot(w_ref[...], patches, preferred_element_type=jnp.float32)
        y = y + s_ref[...]                 # conv bias + BN shift (pre-folded)
        return jnp.maximum(y, 0.0) if relu else y

    def store(buf, y):                     # keep interior, re-zero halo
        buf[0:y.shape[0], base:base + frame] = y * mask

    x_tap = lambda c, o: x_ref[0, 0:c, o:o + frame]
    a_tap = lambda c, o: buf_a[0:c, o:o + frame]
    b_tap = lambda c, o: buf_b[0:c, o:o + frame]

    store(buf_a, conv(x_tap, 3, w1, s1, True))    # conv1 3x3 ->  8ch, ReLU
    store(buf_b, conv(a_tap, 5, w2, s2, True))    # conv2 5x5 -> 16ch, BN, ReLU
    store(buf_a, conv(b_tap, 3, w3, s3, True))    # conv3 3x3 ->  8ch, ReLU
    store(buf_b, conv(a_tap, 3, w4, s4, True))    # conv4 3x3 ->  4ch, BN, ReLU
    y = conv(b_tap, 1, w5, s5, False)             # conv5 1x1 -> out
    if has_shortcut:
        y = y + conv(x_tap, 1, w0, s0, False)     # conv0 1x1 + BN shortcut
    o_ref[0] = y.astype(o_ref.dtype)


# ----------------------------------------------------------------------------
# Trace-time parameter folding: BN (eval) scale into the conv weight, conv
# bias + BN shift into a single per-channel shift.  Weight is reshaped to the
# kernel's im2col row order (tap-major, channel-minor); input channels can be
# zero-padded to a sublane-aligned count.
# ----------------------------------------------------------------------------
def _fold_conv_bn(w_hwio, b, scale=None, shift=None, cin_pad=None):
    k = w_hwio.shape[0]
    cin, cout = w_hwio.shape[2], w_hwio.shape[3]
    if cin_pad is not None and cin_pad > cin:
        w_hwio = jnp.pad(w_hwio, ((0, 0), (0, 0), (0, cin_pad - cin), (0, 0)))
        cin = cin_pad
    if scale is None:
        scale = jnp.ones((cout,), jnp.float32)
        shift = jnp.zeros((cout,), jnp.float32)
    wmat = w_hwio.reshape(k * k * cin, cout).T * scale[:, None]   # (Cout, K*K*Cin)
    sh = (b * scale + shift)[:, None]                             # (Cout, 1)
    return wmat.astype(jnp.float32), sh.astype(jnp.float32)


@jax.jit
def conv_prompt_layer_forward(params, x_nchw):
    N, cin, H, W = x_nchw.shape
    pm = 2                                     # max "same" padding (5x5 conv)
    Hp, Wp = H + 2 * pm, W + 2 * pm
    frame = Hp * Wp
    guard = pm * Wp + pm                       # worst-case tap reach
    base = ((guard + 127) // 128) * 128        # lane-aligned frame offset
    B = ((base + frame + guard + 127) // 128) * 128
    cin_pad = ((cin + 7) // 8) * 8             # sublane-align input channels

    # Single entry-time zero pad into the guarded padded-frame layout (tiny
    # XLA op); per-layer padding is handled as masked VMEM stores in-kernel.
    xf = jnp.pad(x_nchw, ((0, 0), (0, cin_pad - cin), (pm, pm), (pm, pm)))
    xf = xf.reshape(N, cin_pad, frame)
    xg = jnp.pad(xf, ((0, 0), (0, 0), (base, B - base - frame)))

    mask = (jnp.zeros((Hp, Wp), jnp.float32)
            .at[pm:pm + H, pm:pm + W].set(1.0).reshape(1, frame))

    w1, s1 = _fold_conv_bn(params["c1_w"], params["c1_b"], cin_pad=cin_pad)
    w2, s2 = _fold_conv_bn(params["c2_w"], params["c2_b"],
                           params["bn2_scale"], params["bn2_shift"])
    w3, s3 = _fold_conv_bn(params["c3_w"], params["c3_b"])
    w4, s4 = _fold_conv_bn(params["c4_w"], params["c4_b"],
                           params["bn4_scale"], params["bn4_shift"])
    w5, s5 = _fold_conv_bn(params["c5_w"], params["c5_b"])
    cout = params["c5_w"].shape[3]

    inputs = [xg, mask, w1, s1, w2, s2, w3, s3, w4, s4, w5, s5]
    has_shortcut = "c0_w" in params
    if has_shortcut:
        w0, s0 = _fold_conv_bn(params["c0_w"], params["c0_b"],
                               params["bn0_scale"], params["bn0_shift"],
                               cin_pad=cin_pad)
        inputs += [w0, s0]

    def const_spec(shape):                     # grid-invariant (loaded once)
        nd = len(shape)
        return pl.BlockSpec(shape, lambda n: (0,) * nd)

    in_specs = [pl.BlockSpec((1, cin_pad, B), lambda n: (n, 0, 0))]
    in_specs += [const_spec(a.shape) for a in inputs[1:]]

    kernel = functools.partial(_conv_prompt_kernel, H=H, W=W, pm=pm, base=base,
                               has_shortcut=has_shortcut)
    out = pl.pallas_call(
        kernel,
        out_shape=jax.ShapeDtypeStruct((N, cout, frame), x_nchw.dtype),
        grid=(N,),
        in_specs=in_specs,
        out_specs=pl.BlockSpec((1, cout, frame), lambda n: (n, 0, 0)),
        scratch_shapes=[pltpu.VMEM((8, B), jnp.float32),    # conv1 / conv3 out
                        pltpu.VMEM((16, B), jnp.float32)],  # conv2 / conv4 out
        compiler_params=pltpu.CompilerParams(
            dimension_semantics=("parallel",)),
    )(*inputs)

    # Frame layout is already channel-major (NCHW); just drop the halo.
    return out.reshape(N, cout, Hp, Wp)[:, :, pm:pm + H, pm:pm + W]


# ----------------------------------------------------------------------------
# Parameter construction (deterministic, mirrors the PyTorch __init__ shapes).
# ----------------------------------------------------------------------------
def _kaiming_hwio(key, k, cin, cout):
    # kaiming_normal_(mode='fan_out', nonlinearity='relu'): std = sqrt(2/fan_out)
    std = (2.0 / (cout * k * k)) ** 0.5
    return std * jax.random.normal(key, (k, k, cin, cout), jnp.float32)


def _conv_bias(key, k, cin, cout):
    bound = 1.0 / (cin * k * k) ** 0.5
    return jax.random.uniform(key, (cout,), jnp.float32, -bound, bound)


def _bn_affine(c):
    # TODO(synk): BatchNorm2d implemented in eval mode (folded running-stat
    # affine with default init gamma=1, beta=0, mean=0, var=1); training-mode
    # batch statistics are not computed.
    gamma = jnp.ones((c,), jnp.float32)
    beta = jnp.zeros((c,), jnp.float32)
    mean = jnp.zeros((c,), jnp.float32)
    var = jnp.ones((c,), jnp.float32)
    scale = gamma / jnp.sqrt(var + _BN_EPS)
    shift = beta - mean * scale
    return scale, shift


def init_conv_prompt_layer_params(key, in_channels, out_channels):
    keys = jax.random.split(key, 12)
    specs = [("c1", 3, in_channels, 8), ("c2", 5, 8, 16), ("c3", 3, 16, 8),
             ("c4", 3, 8, 4), ("c5", 1, 4, out_channels)]
    p = {}
    for i, (name, k, ci, co) in enumerate(specs):
        p[name + "_w"] = _kaiming_hwio(keys[2 * i], k, ci, co)
        p[name + "_b"] = _conv_bias(keys[2 * i + 1], k, ci, co)
    p["bn2_scale"], p["bn2_shift"] = _bn_affine(16)
    p["bn4_scale"], p["bn4_shift"] = _bn_affine(4)
    if in_channels != out_channels:                       # conv0 shortcut branch
        p["c0_w"] = _kaiming_hwio(keys[10], 1, in_channels, out_channels)
        p["c0_b"] = _conv_bias(keys[11], 1, in_channels, out_channels)
        p["bn0_scale"], p["bn0_shift"] = _bn_affine(out_channels)
    return p


# ----------------------------------------------------------------------------
# Pure-JAX reference (for correctness check only).
# ----------------------------------------------------------------------------
def _ref_conv(x, w_hwio, b):
    return jax.lax.conv_general_dilated(
        x, w_hwio, window_strides=(1, 1), padding="SAME",
        dimension_numbers=("NHWC", "HWIO", "NHWC")) + b


def conv_prompt_layer_reference(params, x_nchw):
    x = jnp.transpose(x_nchw, (0, 2, 3, 1))
    h = jax.nn.relu(_ref_conv(x, params["c1_w"], params["c1_b"]))
    h = _ref_conv(h, params["c2_w"], params["c2_b"])
    h = jax.nn.relu(h * params["bn2_scale"] + params["bn2_shift"])
    h = jax.nn.relu(_ref_conv(h, params["c3_w"], params["c3_b"]))
    h = _ref_conv(h, params["c4_w"], params["c4_b"])
    h = jax.nn.relu(h * params["bn4_scale"] + params["bn4_shift"])
    y = _ref_conv(h, params["c5_w"], params["c5_b"])
    if "c0_w" in params:
        r = _ref_conv(x, params["c0_w"], params["c0_b"])
        r = r * params["bn0_scale"] + params["bn0_shift"]
        y = y + r
    return jnp.transpose(y, (0, 3, 1, 2))


if __name__ == "__main__":
    key = jax.random.PRNGKey(0)
    k_param, k_x = jax.random.split(key)

    in_channels, out_channels = 4, 6        # in != out -> conv0 shortcut active
    N, H, W = 2, 16, 16

    params = init_conv_prompt_layer_params(k_param, in_channels, out_channels)
    x = jax.random.normal(k_x, (N, in_channels, H, W), jnp.float32)

    y = conv_prompt_layer_forward(params, x)
    y = jax.block_until_ready(y)

    y_ref = conv_prompt_layer_reference(params, x)
    assert y.shape == (N, out_channels, H, W), y.shape
    max_err = float(jnp.max(jnp.abs(y - y_ref)))
    assert jnp.allclose(y, y_ref, rtol=1e-3, atol=1e-3), max_err

    print("KERNEL_OK")
</pallas_src>

<mosaic_0001>
module attributes {stable_mosaic.version = 11 : i64} {
  func.func @_conv_prompt_kernel(%arg0: i32, %arg1: memref<1x8x640xf32, #tpu.memory_space<vmem>>, %arg2: memref<1x400xf32, #tpu.memory_space<vmem>>, %arg3: memref<8x72xf32, #tpu.memory_space<vmem>>, %arg4: memref<8x1xf32, #tpu.memory_space<vmem>>, %arg5: memref<16x200xf32, #tpu.memory_space<vmem>>, %arg6: memref<16x1xf32, #tpu.memory_space<vmem>>, %arg7: memref<8x144xf32, #tpu.memory_space<vmem>>, %arg8: memref<8x1xf32, #tpu.memory_space<vmem>>, %arg9: memref<4x72xf32, #tpu.memory_space<vmem>>, %arg10: memref<4x1xf32, #tpu.memory_space<vmem>>, %arg11: memref<6x4xf32, #tpu.memory_space<vmem>>, %arg12: memref<6x1xf32, #tpu.memory_space<vmem>>, %arg13: memref<6x8xf32, #tpu.memory_space<vmem>>, %arg14: memref<6x1xf32, #tpu.memory_space<vmem>>, %arg15: memref<1x6x400xf32, #tpu.memory_space<vmem>>, %arg16: memref<8x640xf32, #tpu.memory_space<vmem>>, %arg17: memref<16x640xf32, #tpu.memory_space<vmem>>) attributes {dimension_semantics = [#tpu.dimension_semantics<parallel>], iteration_bounds = array<i64: 2>, scalar_prefetch = 0 : i64, scratch_operands = 2 : i64, tpu.core_type = #tpu.core_type<tc>, window_params = [{transform_indices = @transform_0, window_bounds = array<i64: 1, 8, 640>}, {pipeline_mode = #tpu.pipeline_mode<synchronous>, transform_indices = @transform_1, window_bounds = array<i64: 1, 400>}, {pipeline_mode = #tpu.pipeline_mode<synchronous>, transform_indices = @transform_2, window_bounds = array<i64: 8, 72>}, {pipeline_mode = #tpu.pipeline_mode<synchronous>, transform_indices = @transform_3, window_bounds = array<i64: 8, 1>}, {pipeline_mode = #tpu.pipeline_mode<synchronous>, transform_indices = @transform_4, window_bounds = array<i64: 16, 200>}, {pipeline_mode = #tpu.pipeline_mode<synchronous>, transform_indices = @transform_5, window_bounds = array<i64: 16, 1>}, {pipeline_mode = #tpu.pipeline_mode<synchronous>, transform_indices = @transform_6, window_bounds = array<i64: 8, 144>}, {pipeline_mode = #tpu.pipeline_mode<synchronous>, transform_indices = @transform_7, window_bounds = array<i64: 8, 1>}, {pipeline_mode = #tpu.pipeline_mode<synchronous>, transform_indices = @transform_8, window_bounds = array<i64: 4, 72>}, {pipeline_mode = #tpu.pipeline_mode<synchronous>, transform_indices = @transform_9, window_bounds = array<i64: 4, 1>}, {pipeline_mode = #tpu.pipeline_mode<synchronous>, transform_indices = @transform_10, window_bounds = array<i64: 6, 4>}, {pipeline_mode = #tpu.pipeline_mode<synchronous>, transform_indices = @transform_11, window_bounds = array<i64: 6, 1>}, {pipeline_mode = #tpu.pipeline_mode<synchronous>, transform_indices = @transform_12, window_bounds = array<i64: 6, 8>}, {pipeline_mode = #tpu.pipeline_mode<synchronous>, transform_indices = @transform_13, window_bounds = array<i64: 6, 1>}, {transform_indices = @transform_14, window_bounds = array<i64: 1, 6, 400>}]} {
    %c0 = arith.constant 0 : index
    %c0_0 = arith.constant 0 : index
    %0 = vector.load %arg2[%c0, %c0_0] : memref<1x400xf32, #tpu.memory_space<vmem>>, vector<1x400xf32>
    %cst = arith.constant 0.000000e+00 : f32
    %1 = vector.broadcast %cst : f32 to vector<8x640xf32>
    %c0_1 = arith.constant 0 : index
    %c0_2 = arith.constant 0 : index
    %2 = vector.load %arg16[%c0_1, %c0_2] : memref<8x640xf32, #tpu.memory_space<vmem>>, vector<8x640xf32>
    tpu.vector_store %arg16[%c0_1, %c0_2], %1 {strides = array<i32>} : memref<8x640xf32, #tpu.memory_space<vmem>>, vector<8x640xf32>,
    %cst_3 = arith.constant 0.000000e+00 : f32
    %3 = vector.broadcast %cst_3 : f32 to vector<16x640xf32>
    %c0_4 = arith.constant 0 : index
    %c0_5 = arith.constant 0 : index
    %4 = vector.load %arg17[%c0_4, %c0_5] : memref<16x640xf32, #tpu.memory_space<vmem>>, vector<16x640xf32>
    tpu.vector_store %arg17[%c0_4, %c0_5], %3 {strides = array<i32>} : memref<16x640xf32, #tpu.memory_space<vmem>>, vector<16x640xf32>,
    %c0_6 = arith.constant 0 : index
    %c0_7 = arith.constant 0 : index
    %c107 = arith.constant 107 : index
    %5 = vector.load %arg1[%c0_6, %c0_7, %c107] : memref<1x8x640xf32, #tpu.memory_space<vmem>>, vector<1x8x400xf32>
    %6 = vector.shape_cast %5 : vector<1x8x400xf32> to vector<8x400xf32>
    %c0_8 = arith.constant 0 : index
    %c0_9 = arith.constant 0 : index
    %c108 = arith.constant 108 : index
    %7 = vector.load %arg1[%c0_8, %c0_9, %c108] : memref<1x8x640xf32, #tpu.memory_space<vmem>>, vector<1x8x400xf32>
    %8 = vector.shape_cast %7 : vector<1x8x400xf32> to vector<8x400xf32>
    %c0_10 = arith.constant 0 : index
    %c0_11 = arith.constant 0 : index
    %c109 = arith.constant 109 : index
    %9 = vector.load %arg1[%c0_10, %c0_11, %c109] : memref<1x8x640xf32, #tpu.memory_space<vmem>>, vector<1x8x400xf32>
    %10 = vector.shape_cast %9 : vector<1x8x400xf32> to vector<8x400xf32>
    %c0_12 = arith.constant 0 : index
    %c0_13 = arith.constant 0 : index
    %c127 = arith.constant 127 : index
    %11 = vector.load %arg1[%c0_12, %c0_13, %c127] : memref<1x8x640xf32, #tpu.memory_space<vmem>>, vector<1x8x400xf32>
    %12 = vector.shape_cast %11 : vector<1x8x400xf32> to vector<8x400xf32>
    %c0_14 = arith.constant 0 : index
    %c0_15 = arith.constant 0 : index
    %c128 = arith.constant 128 : index
    %13 = vector.load %arg1[%c0_14, %c0_15, %c128] : memref<1x8x640xf32, #tpu.memory_space<vmem>>, vector<1x8x400xf32>
    %14 = vector.shape_cast %13 : vector<1x8x400xf32> to vector<8x400xf32>
    %c0_16 = arith.constant 0 : index
    %c0_17 = arith.constant 0 : index
    %c129 = arith.constant 129 : index
    %15 = vector.load %arg1[%c0_16, %c0_17, %c129] : memref<1x8x640xf32, #tpu.memory_space<vmem>>, vector<1x8x400xf32>
    %16 = vector.shape_cast %15 : vector<1x8x400xf32> to vector<8x400xf32>
    %c0_18 = arith.constant 0 : index
    %c0_19 = arith.constant 0 : index
    %c147 = arith.constant 147 : index
    %17 = vector.load %arg1[%c0_18, %c0_19, %c147] : memref<1x8x640xf32, #tpu.memory_space<vmem>>, vector<1x8x400xf32>
    %18 = vector.shape_cast %17 : vector<1x8x400xf32> to vector<8x400xf32>
    %c0_20 = arith.constant 0 : index
    %c0_21 = arith.constant 0 : index
    %c148 = arith.constant 148 : index
    %19 = vector.load %arg1[%c0_20, %c0_21, %c148] : memref<1x8x640xf32, #tpu.memory_space<vmem>>, vector<1x8x400xf32>
    %20 = vector.shape_cast %19 : vector<1x8x400xf32> to vector<8x400xf32>
    %c0_22 = arith.constant 0 : index
    %c0_23 = arith.constant 0 : index
    %c149 = arith.constant 149 : index
    %21 = vector.load %arg1[%c0_22, %c0_23, %c149] : memref<1x8x640xf32, #tpu.memory_space<vmem>>, vector<1x8x400xf32>
    %22 = vector.shape_cast %21 : vector<1x8x400xf32> to vector<8x400xf32>
    %23 = tpu.concatenate %6, %8, %10, %12, %14, %16, %18, %20, %22 in 0 : vector<8x400xf32>, vector<8x400xf32>, vector<8x400xf32>, vector<8x400xf32>, vector<8x400xf32>, vector<8x400xf32>, vector<8x400xf32>, vector<8x400xf32>, vector<8x400xf32> -> vector<72x400xf32>
    %c0_24 = arith.constant 0 : index
    %c0_25 = arith.constant 0 : index
    %24 = vector.load %arg3[%c0_24, %c0_25] : memref<8x72xf32, #tpu.memory_space<vmem>>, vector<8x72xf32>
    %cst_26 = arith.constant dense<0.000000e+00> : vector<8x400xf32>
    %25 = tpu.matmul %24, %23, %cst_26 {dimension_numbers = #tpu.dot_dimension_numbers<[1], [0], [0], [1], [0, 0, 1, 1], [], []>} : vector<8x72xf32>, vector<72x400xf32>, vector<8x400xf32> -> vector<8x400xf32>
    %c0_27 = arith.constant 0 : index
    %c0_28 = arith.constant 0 : index
    %26 = vector.load %arg4[%c0_27, %c0_28] : memref<8x1xf32, #tpu.memory_space<vmem>>, vector<8x1xf32>
    %27 = vector.broadcast %26 : vector<8x1xf32> to vector<8x400xf32>
    %28 = arith.addf %25, %27 : vector<8x400xf32>
    %cst_29 = arith.constant 0.000000e+00 : f32
    %29 = vector.broadcast %cst_29 : f32 to vector<8x400xf32>
    %30 = arith.maximumf %28, %29 : vector<8x400xf32>
    %31 = vector.broadcast %0 : vector<1x400xf32> to vector<8x400xf32>
    %32 = arith.mulf %30, %31 : vector<8x400xf32>
    %c0_30 = arith.constant 0 : index
    %c128_31 = arith.constant 128 : index
    %33 = vector.load %arg16[%c0_30, %c128_31] : memref<8x640xf32, #tpu.memory_space<vmem>>, vector<8x400xf32>
    tpu.vector_store %arg16[%c0_30, %c128_31], %32 {strides = array<i32>} : memref<8x640xf32, #tpu.memory_space<vmem>>, vector<8x400xf32>,
    %c0_32 = arith.constant 0 : index
    %c86 = arith.constant 86 : index
    %34 = vector.load %arg16[%c0_32, %c86] : memref<8x640xf32, #tpu.memory_space<vmem>>, vector<8x400xf32>
    %c0_33 = arith.constant 0 : index
    %c87 = arith.constant 87 : index
    %35 = vector.load %arg16[%c0_33, %c87] : memref<8x640xf32, #tpu.memory_space<vmem>>, vector<8x400xf32>
    %c0_34 = arith.constant 0 : index
    %c88 = arith.constant 88 : index
    %36 = vector.load %arg16[%c0_34, %c88] : memref<8x640xf32, #tpu.memory_space<vmem>>, vector<8x400xf32>
    %c0_35 = arith.constant 0 : index
    %c89 = arith.constant 89 : index
    %37 = vector.load %arg16[%c0_35, %c89] : memref<8x640xf32, #tpu.memory_space<vmem>>, vector<8x400xf32>
    %c0_36 = arith.constant 0 : index
    %c90 = arith.constant 90 : index
    %38 = vector.load %arg16[%c0_36, %c90] : memref<8x640xf32, #tpu.memory_space<vmem>>, vector<8x400xf32>
    %c0_37 = arith.constant 0 : index
    %c106 = arith.constant 106 : index
    %39 = vector.load %arg16[%c0_37, %c106] : memref<8x640xf32, #tpu.memory_space<vmem>>, vector<8x400xf32>
    %c0_38 = arith.constant 0 : index
    %c107_39 = arith.constant 107 : index
    %40 = vector.load %arg16[%c0_38, %c107_39] : memref<8x640xf32, #tpu.memory_space<vmem>>, vector<8x400xf32>
    %c0_40 = arith.constant 0 : index
    %c108_41 = arith.constant 108 : index
    %41 = vector.load %arg16[%c0_40, %c108_41] : memref<8x640xf32, #tpu.memory_space<vmem>>, vector<8x400xf32>
    %c0_42 = arith.constant 0 : index
    %c109_43 = arith.constant 109 : index
    %42 = vector.load %arg16[%c0_42, %c109_43] : memref<8x640xf32, #tpu.memory_space<vmem>>, vector<8x400xf32>
    %c0_44 = arith.constant 0 : index
    %c110 = arith.constant 110 : index
    %43 = vector.load %arg16[%c0_44, %c110] : memref<8x640xf32, #tpu.memory_space<vmem>>, vector<8x400xf32>
    %c0_45 = arith.constant 0 : index
    %c126 = arith.constant 126 : index
    %44 = vector.load %arg16[%c0_45, %c126] : memref<8x640xf32, #tpu.memory_space<vmem>>, vector<8x400xf32>
    %c0_46 = arith.constant 0 : index
    %c127_47 = arith.constant 127 : index
    %45 = vector.load %arg16[%c0_46, %c127_47] : memref<8x640xf32, #tpu.memory_space<vmem>>, vector<8x400xf32>
    %c0_48 = arith.constant 0 : index
    %c128_49 = arith.constant 128 : index
    %46 = vector.load %arg16[%c0_48, %c128_49] : memref<8x640xf32, #tpu.memory_space<vmem>>, vector<8x400xf32>
    %c0_50 = arith.constant 0 : index
    %c129_51 = arith.constant 129 : index
    %47 = vector.load %arg16[%c0_50, %c129_51] : memref<8x640xf32, #tpu.memory_space<vmem>>, vector<8x400xf32>
    %c0_52 = arith.constant 0 : index
    %c130 = arith.constant 130 : index
    %48 = vector.load %arg16[%c0_52, %c130] : memref<8x640xf32, #tpu.memory_space<vmem>>, vector<8x400xf32>
    %c0_53 = arith.constant 0 : index
    %c146 = arith.constant 146 : index
    %49 = vector.load %arg16[%c0_53, %c146] : memref<8x640xf32, #tpu.memory_space<vmem>>, vector<8x400xf32>
    %c0_54 = arith.constant 0 : index
    %c147_55 = arith.constant 147 : index
    %50 = vector.load %arg16[%c0_54, %c147_55] : memref<8x640xf32, #tpu.memory_space<vmem>>, vector<8x400xf32>
    %c0_56 = arith.constant 0 : index
    %c148_57 = arith.constant 148 : index
    %51 = vector.load %arg16[%c0_56, %c148_57] : memref<8x640xf32, #tpu.memory_space<vmem>>, vector<8x400xf32>
    %c0_58 = arith.constant 0 : index
    %c149_59 = arith.constant 149 : index
    %52 = vector.load %arg16[%c0_58, %c149_59] : memref<8x640xf32, #tpu.memory_space<vmem>>, vector<8x400xf32>
    %c0_60 = arith.constant 0 : index
    %c150 = arith.constant 150 : index
    %53 = vector.load %arg16[%c0_60, %c150] : memref<8x640xf32, #tpu.memory_space<vmem>>, vector<8x400xf32>
    %c0_61 = arith.constant 0 : index
    %c166 = arith.constant 166 : index
    %54 = vector.load %arg16[%c0_61, %c166] : memref<8x640xf32, #tpu.memory_space<vmem>>, vector<8x400xf32>
    %c0_62 = arith.constant 0 : index
    %c167 = arith.constant 167 : index
    %55 = vector.load %arg16[%c0_62, %c167] : memref<8x640xf32, #tpu.memory_space<vmem>>, vector<8x400xf32>
    %c0_63 = arith.constant 0 : index
    %c168 = arith.constant 168 : index
    %56 = vector.load %arg16[%c0_63, %c168] : memref<8x640xf32, #tpu.memory_space<vmem>>, vector<8x400xf32>
    %c0_64 = arith.constant 0 : index
    %c169 = arith.constant 169 : index
    %57 = vector.load %arg16[%c0_64, %c169] : memref<8x640xf32, #tpu.memory_space<vmem>>, vector<8x400xf32>
    %c0_65 = arith.constant 0 : index
    %c170 = arith.constant 170 : index
    %58 = vector.load %arg16[%c0_65, %c170] : memref<8x640xf32, #tpu.memory_space<vmem>>, vector<8x400xf32>
    %59 = tpu.concatenate %34, %35, %36, %37, %38, %39, %40, %41, %42, %43, %44, %45, %46, %47, %48, %49 in 0 : vector<8x400xf32>, vector<8x400xf32>, vector<8x400xf32>, vector<8x400xf32>, vector<8x400xf32>, vector<8x400xf32>, vector<8x400xf32>, vector<8x400xf32>, vector<8x400xf32>, vector<8x400xf32>, vector<8x400xf32>, vector<8x400xf32>, vector<8x400xf32>, vector<8x400xf32>, vector<8x400xf32>, vector<8x400xf32> -> vector<128x400xf32>
    %60 = tpu.concatenate %50, %51, %52, %53, %54, %55, %56, %57, %58 in 0 : vector<8x400xf32>, vector<8x400xf32>, vector<8x400xf32>, vector<8x400xf32>, vector<8x400xf32>, vector<8x400xf32>, vector<8x400xf32>, vector<8x400xf32>, vector<8x400xf32> -> vector<72x400xf32>
    %61 = tpu.concatenate %59, %60 in 0 : vector<128x400xf32>, vector<72x400xf32> -> vector<200x400xf32>
    %c0_66 = arith.constant 0 : index
    %c0_67 = arith.constant 0 : index
    %62 = vector.load %arg5[%c0_66, %c0_67] : memref<16x200xf32, #tpu.memory_space<vmem>>, vector<16x200xf32>
    %cst_68 = arith.constant dense<0.000000e+00> : vector<16x400xf32>
    %63 = tpu.matmul %62, %61, %cst_68 {dimension_numbers = #tpu.dot_dimension_numbers<[1], [0], [0], [1], [0, 0, 1, 1], [], []>} : vector<16x200xf32>, vector<200x400xf32>, vector<16x400xf32> -> vector<16x400xf32>
    %c0_69 = arith.constant 0 : index
    %c0_70 = arith.constant 0 : index
    %64 = vector.load %arg6[%c0_69, %c0_70] : memref<16x1xf32, #tpu.memory_space<vmem>>, vector<16x1xf32>
    %65 = vector.broadcast %64 : vector<16x1xf32> to vector<16x400xf32>
    %66 = arith.addf %63, %65 : vector<16x400xf32>
    %cst_71 = arith.constant 0.000000e+00 : f32
    %67 = vector.broadcast %cst_71 : f32 to vector<16x400xf32>
    %68 = arith.maximumf %66, %67 : vector<16x400xf32>
    %69 = vector.broadcast %0 : vector<1x400xf32> to vector<16x400xf32>
    %70 = arith.mulf %68, %69 : vector<16x400xf32>
    %c0_72 = arith.constant 0 : index
    %c128_73 = arith.constant 128 : index
    %71 = vector.load %arg17[%c0_72, %c128_73] : memref<16x640xf32, #tpu.memory_space<vmem>>, vector<16x400xf32>
    tpu.vector_store %arg17[%c0_72, %c128_73], %70 {strides = array<i32>} : memref<16x640xf32, #tpu.memory_space<vmem>>, vector<16x400xf32>,
    %c0_74 = arith.constant 0 : index
    %c107_75 = arith.constant 107 : index
    %72 = vector.load %arg17[%c0_74, %c107_75] : memref<16x640xf32, #tpu.memory_space<vmem>>, vector<16x400xf32>
    %c0_76 = arith.constant 0 : index
    %c108_77 = arith.constant 108 : index
    %73 = vector.load %arg17[%c0_76, %c108_77] : memref<16x640xf32, #tpu.memory_space<vmem>>, vector<16x400xf32>
    %c0_78 = arith.constant 0 : index
    %c109_79 = arith.constant 109 : index
    %74 = vector.load %arg17[%c0_78, %c109_79] : memref<16x640xf32, #tpu.memory_space<vmem>>, vector<16x400xf32>
    %c0_80 = arith.constant 0 : index
    %c127_81 = arith.constant 127 : index
    %75 = vector.load %arg17[%c0_80, %c127_81] : memref<16x640xf32, #tpu.memory_space<vmem>>, vector<16x400xf32>
    %c0_82 = arith.constant 0 : index
    %c128_83 = arith.constant 128 : index
    %76 = vector.load %arg17[%c0_82, %c128_83] : memref<16x640xf32, #tpu.memory_space<vmem>>, vector<16x400xf32>
    %c0_84 = arith.constant 0 : index
    %c129_85 = arith.constant 129 : index
    %77 = vector.load %arg17[%c0_84, %c129_85] : memref<16x640xf32, #tpu.memory_space<vmem>>, vector<16x400xf32>
    %c0_86 = arith.constant 0 : index
    %c147_87 = arith.constant 147 : index
    %78 = vector.load %arg17[%c0_86, %c147_87] : memref<16x640xf32, #tpu.memory_space<vmem>>, vector<16x400xf32>
    %c0_88 = arith.constant 0 : index
    %c148_89 = arith.constant 148 : index
    %79 = vector.load %arg17[%c0_88, %c148_89] : memref<16x640xf32, #tpu.memory_space<vmem>>, vector<16x400xf32>
    %c0_90 = arith.constant 0 : index
    %c149_91 = arith.constant 149 : index
    %80 = vector.load %arg17[%c0_90, %c149_91] : memref<16x640xf32, #tpu.memory_space<vmem>>, vector<16x400xf32>
    %81 = tpu.concatenate %72, %73, %74, %75, %76, %77, %78, %79, %80 in 0 : vector<16x400xf32>, vector<16x400xf32>, vector<16x400xf32>, vector<16x400xf32>, vector<16x400xf32>, vector<16x400xf32>, vector<16x400xf32>, vector<16x400xf32>, vector<16x400xf32> -> vector<144x400xf32>
    %c0_92 = arith.constant 0 : index
    %c0_93 = arith.constant 0 : index
    %82 = vector.load %arg7[%c0_92, %c0_93] : memref<8x144xf32, #tpu.memory_space<vmem>>, vector<8x144xf32>
    %cst_94 = arith.constant dense<0.000000e+00> : vector<8x400xf32>
    %83 = tpu.matmul %82, %81, %cst_94 {dimension_numbers = #tpu.dot_dimension_numbers<[1], [0], [0], [1], [0, 0, 1, 1], [], []>} : vector<8x144xf32>, vector<144x400xf32>, vector<8x400xf32> -> vector<8x400xf32>
    %c0_95 = arith.constant 0 : index
    %c0_96 = arith.constant 0 : index
    %84 = vector.load %arg8[%c0_95, %c0_96] : memref<8x1xf32, #tpu.memory_space<vmem>>, vector<8x1xf32>
    %85 = vector.broadcast %84 : vector<8x1xf32> to vector<8x400xf32>
    %86 = arith.addf %83, %85 : vector<8x400xf32>
    %cst_97 = arith.constant 0.000000e+00 : f32
    %87 = vector.broadcast %cst_97 : f32 to vector<8x400xf32>
    %88 = arith.maximumf %86, %87 : vector<8x400xf32>
    %89 = vector.broadcast %0 : vector<1x400xf32> to vector<8x400xf32>
    %90 = arith.mulf %88, %89 : vector<8x400xf32>
    %c0_98 = arith.constant 0 : index
    %c128_99 = arith.constant 128 : index
    %91 = vector.load %arg16[%c0_98, %c128_99] : memref<8x640xf32, #tpu.memory_space<vmem>>, vector<8x400xf32>
    tpu.vector_store %arg16[%c0_98, %c128_99], %90 {strides = array<i32>} : memref<8x640xf32, #tpu.memory_space<vmem>>, vector<8x400xf32>,
    %c0_100 = arith.constant 0 : index
    %c107_101 = arith.constant 107 : index
    %92 = vector.load %arg16[%c0_100, %c107_101] : memref<8x640xf32, #tpu.memory_space<vmem>>, vector<8x400xf32>
    %c0_102 = arith.constant 0 : index
    %c108_103 = arith.constant 108 : index
    %93 = vector.load %arg16[%c0_102, %c108_103] : memref<8x640xf32, #tpu.memory_space<vmem>>, vector<8x400xf32>
    %c0_104 = arith.constant 0 : index
    %c109_105 = arith.constant 109 : index
    %94 = vector.load %arg16[%c0_104, %c109_105] : memref<8x640xf32, #tpu.memory_space<vmem>>, vector<8x400xf32>
    %c0_106 = arith.constant 0 : index
    %c127_107 = arith.constant 127 : index
    %95 = vector.load %arg16[%c0_106, %c127_107] : memref<8x640xf32, #tpu.memory_space<vmem>>, vector<8x400xf32>
    %c0_108 = arith.constant 0 : index
    %c128_109 = arith.constant 128 : index
    %96 = vector.load %arg16[%c0_108, %c128_109] : memref<8x640xf32, #tpu.memory_space<vmem>>, vector<8x400xf32>
    %c0_110 = arith.constant 0 : index
    %c129_111 = arith.constant 129 : index
    %97 = vector.load %arg16[%c0_110, %c129_111] : memref<8x640xf32, #tpu.memory_space<vmem>>, vector<8x400xf32>
    %c0_112 = arith.constant 0 : index
    %c147_113 = arith.constant 147 : index
    %98 = vector.load %arg16[%c0_112, %c147_113] : memref<8x640xf32, #tpu.memory_space<vmem>>, vector<8x400xf32>
    %c0_114 = arith.constant 0 : index
    %c148_115 = arith.constant 148 : index
    %99 = vector.load %arg16[%c0_114, %c148_115] : memref<8x640xf32, #tpu.memory_space<vmem>>, vector<8x400xf32>
    %c0_116 = arith.constant 0 : index
    %c149_117 = arith.constant 149 : index
    %100 = vector.load %arg16[%c0_116, %c149_117] : memref<8x640xf32, #tpu.memory_space<vmem>>, vector<8x400xf32>
    %101 = tpu.concatenate %92, %93, %94, %95, %96, %97, %98, %99, %100 in 0 : vector<8x400xf32>, vector<8x400xf32>, vector<8x400xf32>, vector<8x400xf32>, vector<8x400xf32>, vector<8x400xf32>, vector<8x400xf32>, vector<8x400xf32>, vector<8x400xf32> -> vector<72x400xf32>
    %c0_118 = arith.constant 0 : index
    %c0_119 = arith.constant 0 : index
    %102 = vector.load %arg9[%c0_118, %c0_119] : memref<4x72xf32, #tpu.memory_space<vmem>>, vector<4x72xf32>
    %cst_120 = arith.constant dense<0.000000e+00> : vector<4x400xf32>
    %103 = tpu.matmul %102, %101, %cst_120 {dimension_numbers = #tpu.dot_dimension_numbers<[1], [0], [0], [1], [0, 0, 1, 1], [], []>} : vector<4x72xf32>, vector<72x400xf32>, vector<4x400xf32> -> vector<4x400xf32>
    %c0_121 = arith.constant 0 : index
    %c0_122 = arith.constant 0 : index
    %104 = vector.load %arg10[%c0_121, %c0_122] : memref<4x1xf32, #tpu.memory_space<vmem>>, vector<4x1xf32>
    %105 = vector.broadcast %104 : vector<4x1xf32> to vector<4x400xf32>
    %106 = arith.addf %103, %105 : vector<4x400xf32>
    %cst_123 = arith.constant 0.000000e+00 : f32
    %107 = vector.broadcast %cst_123 : f32 to vector<4x400xf32>
    %108 = arith.maximumf %106, %107 : vector<4x400xf32>
    %109 = vector.broadcast %0 : vector<1x400xf32> to vector<4x400xf32>
    %110 = arith.mulf %108, %109 : vector<4x400xf32>
    %c0_124 = arith.constant 0 : index
    %c128_125 = arith.constant 128 : index
    %111 = vector.load %arg17[%c0_124, %c128_125] : memref<16x640xf32, #tpu.memory_space<vmem>>, vector<4x400xf32>
    tpu.vector_store %arg17[%c0_124, %c128_125], %110 {strides = array<i32>} : memref<16x640xf32, #tpu.memory_space<vmem>>, vector<4x400xf32>,
    %c0_126 = arith.constant 0 : index
    %c128_127 = arith.constant 128 : index
    %112 = vector.load %arg17[%c0_126, %c128_127] : memref<16x640xf32, #tpu.memory_space<vmem>>, vector<4x400xf32>
    %c0_128 = arith.constant 0 : index
    %c0_129 = arith.constant 0 : index
    %113 = vector.load %arg11[%c0_128, %c0_129] : memref<6x4xf32, #tpu.memory_space<vmem>>, vector<6x4xf32>
    %cst_130 = arith.constant dense<0.000000e+00> : vector<6x400xf32>
    %114 = tpu.matmul %113, %112, %cst_130 {dimension_numbers = #tpu.dot_dimension_numbers<[1], [0], [0], [1], [0, 0, 1, 1], [], []>} : vector<6x4xf32>, vector<4x400xf32>, vector<6x400xf32> -> vector<6x400xf32>
    %c0_131 = arith.constant 0 : index
    %c0_132 = arith.constant 0 : index
    %115 = vector.load %arg12[%c0_131, %c0_132] : memref<6x1xf32, #tpu.memory_space<vmem>>, vector<6x1xf32>
    %116 = vector.broadcast %115 : vector<6x1xf32> to vector<6x400xf32>
    %117 = arith.addf %114, %116 : vector<6x400xf32>
    %c0_133 = arith.constant 0 : index
    %c0_134 = arith.constant 0 : index
    %c128_135 = arith.constant 128 : index
    %118 = vector.load %arg1[%c0_133, %c0_134, %c128_135] : memref<1x8x640xf32, #tpu.memory_space<vmem>>, vector<1x8x400xf32>
    %119 = vector.shape_cast %118 : vector<1x8x400xf32> to vector<8x400xf32>
    %c0_136 = arith.constant 0 : index
    %c0_137 = arith.constant 0 : index
    %120 = vector.load %arg13[%c0_136, %c0_137] : memref<6x8xf32, #tpu.memory_space<vmem>>, vector<6x8xf32>
    %cst_138 = arith.constant dense<0.000000e+00> : vector<6x400xf32>
    %121 = tpu.matmul %120, %119, %cst_138 {dimension_numbers = #tpu.dot_dimension_numbers<[1], [0], [0], [1], [0, 0, 1, 1], [], []>} : vector<6x8xf32>, vector<8x400xf32>, vector<6x400xf32> -> vector<6x400xf32>
    %c0_139 = arith.constant 0 : index
    %c0_140 = arith.constant 0 : index
    %122 = vector.load %arg14[%c0_139, %c0_140] : memref<6x1xf32, #tpu.memory_space<vmem>>, vector<6x1xf32>
    %123 = vector.broadcast %122 : vector<6x1xf32> to vector<6x400xf32>
    %124 = arith.addf %121, %123 : vector<6x400xf32>
    %125 = arith.addf %117, %124 : vector<6x400xf32>
    %c0_141 = arith.constant 0 : index
    %c0_142 = arith.constant 0 : index
    %c0_143 = arith.constant 0 : index
    %126 = vector.load %arg15[%c0_141, %c0_142, %c0_143] : memref<1x6x400xf32, #tpu.memory_space<vmem>>, vector<1x6x400xf32>
    %127 = vector.shape_cast %126 : vector<1x6x400xf32> to vector<6x400xf32>
    %128 = vector.shape_cast %125 : vector<6x400xf32> to vector<1x6x400xf32>
    tpu.vector_store %arg15[%c0_141, %c0_142, %c0_143], %128 {strides = array<i32>} : memref<1x6x400xf32, #tpu.memory_space<vmem>>, vector<1x6x400xf32>,
    return
  }
  func.func @transform_0(%arg0: i32) -> (i32, i32, i32) {
    %c0_i32 = arith.constant 0 : i32
    %c0_i32_0 = arith.constant 0 : i32
    %c0_i32_1 = arith.constant 0 : i32
    return %arg0, %c0_i32, %c0_i32_0 : i32, i32, i32
  }
  func.func @transform_1(%arg0: i32) -> (i32, i32) {
    %c0_i32 = arith.constant 0 : i32
    %c0_i32_0 = arith.constant 0 : i32
    %c0_i32_1 = arith.constant 0 : i32
    return %c0_i32, %c0_i32_0 : i32, i32
  }
  func.func @transform_2(%arg0: i32) -> (i32, i32) {
    %c0_i32 = arith.constant 0 : i32
    %c0_i32_0 = arith.constant 0 : i32
    %c0_i32_1 = arith.constant 0 : i32
    return %c0_i32, %c0_i32_0 : i32, i32
  }
  func.func @transform_3(%arg0: i32) -> (i32, i32) {
    %c0_i32 = arith.constant 0 : i32
    %c0_i32_0 = arith.constant 0 : i32
    %c0_i32_1 = arith.constant 0 : i32
    return %c0_i32, %c0_i32_0 : i32, i32
  }
  func.func @transform_4(%arg0: i32) -> (i32, i32) {
    %c0_i32 = arith.constant 0 : i32
    %c0_i32_0 = arith.constant 0 : i32
    %c0_i32_1 = arith.constant 0 : i32
    return %c0_i32, %c0_i32_0 : i32, i32
  }
  func.func @transform_5(%arg0: i32) -> (i32, i32) {
    %c0_i32 = arith.constant 0 : i32
    %c0_i32_0 = arith.constant 0 : i32
    %c0_i32_1 = arith.constant 0 : i32
    return %c0_i32, %c0_i32_0 : i32, i32
  }
  func.func @transform_6(%arg0: i32) -> (i32, i32) {
    %c0_i32 = arith.constant 0 : i32
    %c0_i32_0 = arith.constant 0 : i32
    %c0_i32_1 = arith.constant 0 : i32
    return %c0_i32, %c0_i32_0 : i32, i32
  }
  func.func @transform_7(%arg0: i32) -> (i32, i32) {
    %c0_i32 = arith.constant 0 : i32
    %c0_i32_0 = arith.constant 0 : i32
    %c0_i32_1 = arith.constant 0 : i32
    return %c0_i32, %c0_i32_0 : i32, i32
  }
  func.func @transform_8(%arg0: i32) -> (i32, i32) {
    %c0_i32 = arith.constant 0 : i32
    %c0_i32_0 = arith.constant 0 : i32
    %c0_i32_1 = arith.constant 0 : i32
    return %c0_i32, %c0_i32_0 : i32, i32
  }
  func.func @transform_9(%arg0: i32) -> (i32, i32) {
    %c0_i32 = arith.constant 0 : i32
    %c0_i32_0 = arith.constant 0 : i32
    %c0_i32_1 = arith.constant 0 : i32
    return %c0_i32, %c0_i32_0 : i32, i32
  }
  func.func @transform_10(%arg0: i32) -> (i32, i32) {
    %c0_i32 = arith.constant 0 : i32
    %c0_i32_0 = arith.constant 0 : i32
    %c0_i32_1 = arith.constant 0 : i32
    return %c0_i32, %c0_i32_0 : i32, i32
  }
  func.func @transform_11(%arg0: i32) -> (i32, i32) {
    %c0_i32 = arith.constant 0 : i32
    %c0_i32_0 = arith.constant 0 : i32
    %c0_i32_1 = arith.constant 0 : i32
    return %c0_i32, %c0_i32_0 : i32, i32
  }
  func.func @transform_12(%arg0: i32) -> (i32, i32) {
    %c0_i32 = arith.constant 0 : i32
    %c0_i32_0 = arith.constant 0 : i32
    %c0_i32_1 = arith.constant 0 : i32
    return %c0_i32, %c0_i32_0 : i32, i32
  }
  func.func @transform_13(%arg0: i32) -> (i32, i32) {
    %c0_i32 = arith.constant 0 : i32
    %c0_i32_0 = arith.constant 0 : i32
    %c0_i32_1 = arith.constant 0 : i32
    return %c0_i32, %c0_i32_0 : i32, i32
  }
  func.func @transform_14(%arg0: i32) -> (i32, i32, i32) {
    %c0_i32 = arith.constant 0 : i32
    %c0_i32_0 = arith.constant 0 : i32
    %c0_i32_1 = arith.constant 0 : i32
    return %arg0, %c0_i32, %c0_i32_0 : i32, i32, i32
  }
}

</mosaic_0001>

<bundles_post_ra>
// kernel: conv_prompt_layer_forward.1
= control target key start
LH: loop header
LB: loop body
LE: loop exit
PB: predicated region body
PF: predicated region fallthrough
CT: control target
= control target key end

     0   :  { %s3525_s29 = smov 0   ;;  %s5655_s0 = inlined_call_operand.vmem [shape: f32[2,8,640], index: 0, kind: input, shape index: {}]   ;;  %s5656_s1 = inlined_call_operand.vmem [shape: f32[1,400], index: 1, kind: input, shape index: {}]   ;;  %s5657_s2 = inlined_call_operand.vmem [shape: f32[8,72], index: 2, kind: input, shape index: {}]   ;;  %s5658_s3 = inlined_call_operand.vmem [shape: f32[8,1], index: 3, kind: input, shape index: {}]   ;;  %s5659_s4 = inlined_call_operand.vmem [shape: f32[16,200], index: 4, kind: input, shape index: {}]   ;;  %s5660_s5 = inlined_call_operand.vmem [shape: f32[16,1], index: 5, kind: input, shape index: {}]   ;;  %s5661_s6 = inlined_call_operand.vmem [shape: f32[8,144], index: 6, kind: input, shape index: {}]   ;;  %s5662_s7 = inlined_call_operand.vmem [shape: f32[8,1], index: 7, kind: input, shape index: {}]   ;;  %s5663_s8 = inlined_call_operand.vmem [shape: f32[4,72], index: 8, kind: input, shape index: {}]   ;;  %s5664_s9 = inlined_call_operand.vmem [shape: f32[4,1], index: 9, kind: input, shape index: {}]   ;;  %s5665_s10 = inlined_call_operand.vmem [shape: f32[6,4], index: 10, kind: input, shape index: {}]   ;;  %s5666_s11 = inlined_call_operand.vmem [shape: f32[6,1], index: 11, kind: input, shape index: {}]   ;;  %s5667_s12 = inlined_call_operand.vmem [shape: f32[6,8], index: 12, kind: input, shape index: {}]   ;;  %s5668_s13 = inlined_call_operand.vmem [shape: f32[6,1], index: 13, kind: input, shape index: {}]   ;;  %s5669_s14 = inlined_call_operand.vmem [shape: f32[2,6,400], index: 14, kind: output, shape index: {}]  }
   0x1 LB: > { %s3338_s30 = sadd.s32 4294967295, %s3427_s29   ;;  %p3342_p0 = scmp.ge.s32.totalorder %s3427_s29, 1  ;;  %s3427_s29 = sphi %s3525_s29, %s24_s29  }
   0x2   : > { %p412_p1 = scmp.lt.s32.totalorder %s3427_s29, 3 }
   0x4   : > { %p413_p2 = pnand %p3342_p0, %p412_p1 }
   0x6   : > { %416 = sbr.rel (%p413_p2) target bundleno = 2687 (0xa7f), region = 76 }
   0xb   : > { %p458_p3 = scmp.lt.s32.totalorder %s3338_s30, 1  ;;  %s3429_s19 = smov 86   ;;  %vm597_vm0 = vcmask 703488   ;;  %vm585_vm1 = vcmask 711680   ;;  %vm573_vm2 = vcmask 719872   ;;  %vm561_vm3 = vcmask 867328  }
   0xc   : > { %s5690_s20 = smov 87   ;;  %s5674_s21 = smov 88   ;;  %vm549_vm4 = vcmask 875520   ;;  %vm536_vm5 = vcmask 883712   ;;  %vm517_vm6 = vcmask 1031168   ;;  %vm505_vm7 = vcmask 1039360  }
   0xd   : > { %s5871_s30 = smov (!%p458_p3, %s3338_s30), 1  ;;  %s5678_s22 = smov 106   ;;  %v3438_v63 = vmov 0.0   ;;  %vm5718_vm8 = vcmask 171008   ;;  %vm5720_vm9 = vcmask 588800   ;;  %vm5719_vm10 = vcmask 130048  }
   0xe   : > { %s3367_s15 = smul.u32 40, %s5871_s30  ;;  %s5721_s23 = smov 107   ;;  %812 = vmatprep.mubr.f32.mxu0 %v3438_v63  ;;  %469 = vst [vmem:[#allocation2] sm:$0xff] %v3438_v63  ;;  %473 = vst [vmem:[#allocation2 + $0x20] sm:$0xff] %v3438_v63  ;;  %883 = vmatprep.mubr.f32.mxu1 %v3438_v63  ;;  %vm1036_vm11 = vcmask 850944   ;;  %vm1024_vm12 = vcmask 859136  }
   0xf   : > { %s5682_s24 = smov 108   ;;  %s5686_s25 = smov 126   ;;  %478 = vst [vmem:[#allocation3 + $0x20] sm:$0xff] %v3438_v63  ;;  %483 = vst [vmem:[#allocation3 + $0x48] sm:$0xff] %v3438_v63  ;;  %vm979_vm13 = vcmask 1014784   ;;  %vm967_vm14 = vcmask 1022976  }
  0x10   : > { %s3539_s18 = scalar_lea.vmem %s5655_s0, %s3367_s15  ;;  %s5676_s26 = smov 127   ;;  %vm1116_vm15 = vcmask 556032  }
  0x11   : > { %v3542_v0 = vld [vmem:[%s3539_s18 + $0x18] sm:$0xff]  ;;  %v3545_v1 = vld [vmem:[%s3539_s18 + $0x8] sm:$0xff]  ;;  %v492_v2 = vld [vmem:[%s3539_s18 + $0x20] sm:$0xff]  ;;  %s5670_s27 = smov 21   ;;  %s3440_s16 = smov 105  }
  0x12   : > { %593 = vrot.lane.b32.xlu1 %v3542_v0, %s3429_s19  ;;  %589 = vrot.lane.b32.xlu0 %v3545_v1, %s3429_s19  ;;  %v3553_v3 = vld [vmem:[%s3539_s18 + $0x10] sm:$0xff]  ;;  %v3591_v4 = vld [vmem:[%s3539_s18] sm:$0xff]  ;;  %s5672_s17 = smov 124   ;;  %s5693_s28 = smov 84  }
  0x13   : > { %s5688_s15 = smov 85  }
  0x16   : > { %595 = vrot.lane.b32.xlu1 %v492_v2, %s3429_s19  ;;  %591 = vrot.lane.b32.xlu0 %v3553_v3, %s3429_s19 }
  0x1a   : > { %579 = vrot.lane.b32.xlu1 %v3553_v3, %s5690_s20  ;;  %577 = vrot.lane.b32.xlu0 %v3545_v1, %s5690_s20 }
  0x1e   : > { %583 = vrot.lane.b32.xlu1 %v492_v2, %s5690_s20  ;;  %581 = vrot.lane.b32.xlu0 %v3542_v0, %s5690_s20 }
  0x22   : > { %567 = vrot.lane.b32.xlu1 %v3553_v3, %s5674_s21  ;;  %565 = vrot.lane.b32.xlu0 %v3545_v1, %s5674_s21 }
  0x26   : > { %571 = vrot.lane.b32.xlu1 %v492_v2, %s5674_s21  ;;  %569 = vrot.lane.b32.xlu0 %v3542_v0, %s5674_s21 }
  0x2a   : > { %555 = vrot.lane.b32.xlu1 %v3553_v3, %s5678_s22  ;;  %553 = vrot.lane.b32.xlu0 %v3545_v1, %s5678_s22 }
  0x2e   : > { %559 = vrot.lane.b32.xlu1 %v492_v2, %s5678_s22  ;;  %557 = vrot.lane.b32.xlu0 %v3542_v0, %s5678_s22 }
  0x32   : > { %543 = vrot.lane.b32.xlu1 %v3553_v3, %s5721_s23  ;;  %541 = vrot.lane.b32.xlu0 %v3545_v1, %s5721_s23 }
  0x36   : > { %547 = vrot.lane.b32.xlu1 %v492_v2, %s5721_s23  ;;  %545 = vrot.lane.b32.xlu0 %v3542_v0, %s5721_s23 }
  0x3a   : > { %530 = vrot.lane.b32.xlu1 %v3553_v3, %s5682_s24  ;;  %528 = vrot.lane.b32.xlu0 %v3545_v1, %s5682_s24 }
  0x3e   : > { %532 = vrot.lane.b32.xlu0 %v3542_v0, %s5682_s24  ;;  %526 = vrot.lane.b32.xlu1 %v3591_v4, %s5682_s24 }
  0x42   : > { %534 = vrot.lane.b32.xlu0 %v492_v2, %s5682_s24  ;;  %511 = vrot.lane.b32.xlu1 %v3545_v1, %s5686_s25  ;;  %v3439_v2 = vmov 0  }
  0x43   : > { %3397 = vset.pattern.permute.xlu1 %v3439_v2  ;;  %3398 = vset.pattern.permute.xlu0 %v3439_v2 }
  0x46   : > { %513 = vrot.lane.b32.xlu0 %v3553_v3, %s5686_s25  ;;  %515 = vrot.lane.b32.xlu1 %v3542_v0, %s5686_s25 }
  0x4a   : > { %509 = vrot.lane.b32.xlu0 %v3591_v4, %s5686_s25  ;;  %499 = vrot.lane.b32.xlu1 %v3545_v1, %s5676_s26 }
  0x4e   : > { %501 = vrot.lane.b32.xlu0 %v3553_v3, %s5676_s26  ;;  %503 = vrot.lane.b32.xlu1 %v3542_v0, %s5676_s26 }
  0x52   : > { %497 = vrot.lane.b32.xlu0 %v3591_v4, %s5676_s26 }
  0x84   : > { %v594_v5 = vpop.permute.xlu1 %593  ;;  %v590_v6 = vpop.permute.xlu0 %589 }
  0x85   : > { %672 = vrot.lane.b32.xlu1 %v590_v6, %s5670_s27 }
  0x88   : > { %v596_v7 = vpop.permute.xlu1 %595  ;;  %v592_v8 = vpop.permute.xlu0 %591 }
  0x89   : > { %v598_v23 = vsel %vm597_vm0, %v590_v6, %v592_v8  ;;  %v599_v39 = vsel %vm597_vm0, %v592_v8, %v594_v5  ;;  %v600_v41 = vsel %vm597_vm0, %v594_v5, %v596_v7 }
  0x8c   : > { %v580_v9 = vpop.permute.xlu1 %579  ;;  %v578_v10 = vpop.permute.xlu0 %577 }
  0x8d   : > { %664 = vrot.lane.b32.xlu1 %v578_v10, %s5670_s27  ;;  %v586_v28 = vsel %vm585_vm1, %v578_v10, %v580_v9 }
  0x90   : > { %v584_v11 = vpop.permute.xlu1 %583  ;;  %v582_v12 = vpop.permute.xlu0 %581 }
  0x91   : > { %v587_v44 = vsel %vm585_vm1, %v580_v9, %v582_v12  ;;  %v588_v47 = vsel %vm585_vm1, %v582_v12, %v584_v11 }
  0x94   : > { %v3616_v13 = vpop.permute.xlu1 %567  ;;  %v566_v14 = vpop.permute.xlu0 %565 }
  0x95   : > { %656 = vrot.lane.b32.xlu1 %v566_v14, %s5670_s27  ;;  %v574_v31 = vsel %vm573_vm2, %v566_v14, %v3616_v13 }
  0x98   : > { %v3619_v15 = vpop.permute.xlu1 %571  ;;  %v3621_v16 = vpop.permute.xlu0 %569 }
  0x99   : > { %v575_v51 = vsel %vm573_vm2, %v3616_v13, %v3621_v16  ;;  %v576_v53 = vsel %vm573_vm2, %v3621_v16, %v3619_v15 }
  0x9c   : > { %v3623_v17 = vpop.permute.xlu1 %555  ;;  %v554_v18 = vpop.permute.xlu0 %553 }
  0x9d   : > { %648 = vrot.lane.b32.xlu1 %v554_v18, %s5670_s27  ;;  %v562_v33 = vsel %vm561_vm3, %v554_v18, %v3623_v17 }
  0xa0   : > { %v3626_v19 = vpop.permute.xlu1 %559  ;;  %v3628_v20 = vpop.permute.xlu0 %557 }
  0xa1   : > { %v563_v54 = vsel %vm561_vm3, %v3623_v17, %v3628_v20  ;;  %v564_v55 = vsel %vm561_vm3, %v3628_v20, %v3626_v19 }
  0xa4   : > { %v3630_v21 = vpop.permute.xlu1 %543  ;;  %v542_v22 = vpop.permute.xlu0 %541 }
  0xa5   : > { %640 = vrot.lane.b32.xlu1 %v542_v22, %s5670_s27  ;;  %v550_v36 = vsel %vm549_vm4, %v542_v22, %v3630_v21 }
  0xa8   : > { %v3634_v24 = vpop.permute.xlu1 %547  ;;  %v3636_v25 = vpop.permute.xlu0 %545 }
  0xa9   : > { %674 = vrot.lane.b32.xlu1 %v598_v23, %s5670_s27  ;;  %v551_v56 = vsel %vm549_vm4, %v3630_v21, %v3636_v25  ;;  %v552_v57 = vsel %vm549_vm4, %v3636_v25, %v3634_v24 }
  0xac   : > { %v531_v26 = vpop.permute.xlu1 %530  ;;  %v529_v27 = vpop.permute.xlu0 %528 }
  0xad   : > { %666 = vrot.lane.b32.xlu1 %v586_v28, %s5670_s27  ;;  %v538_v38 = vsel %vm536_vm5, %v529_v27, %v531_v26 }
  0xb0   : > { %v533_v29 = vpop.permute.xlu0 %532  ;;  %v527_v30 = vpop.permute.xlu1 %526 }
  0xb1   : > { %658 = vrot.lane.b32.xlu1 %v574_v31, %s5670_s27  ;;  %v537_v40 = vsel %vm536_vm5, %v527_v30, %v529_v27  ;;  %v539_v58 = vsel %vm536_vm5, %v531_v26, %v533_v29 }
  0xb4   : > { %v512_v32 = vpop.permute.xlu1 %511  ;;  %v535_v34 = vpop.permute.xlu0 %534 }
  0xb5   : > { %650 = vrot.lane.b32.xlu1 %v562_v33, %s5670_s27  ;;  %v540_v59 = vsel %vm536_vm5, %v533_v29, %v535_v34 }
  0xb8   : > { %v516_v35 = vpop.permute.xlu1 %515  ;;  %v514_v37 = vpop.permute.xlu0 %513 }
  0xb9   : > { %642 = vrot.lane.b32.xlu1 %v550_v36, %s5670_s27  ;;  %630 = vrot.lane.b32.xlu0 %v516_v35, %s5670_s27  ;;  %v519_v43 = vsel %vm517_vm6, %v512_v32, %v514_v37  ;;  %v520_v61 = vsel %vm517_vm6, %v514_v37, %v516_v35 }
  0xbc   : > { %v510_v42 = vpop.permute.xlu0 %509  ;;  %v500_v46 = vpop.permute.xlu1 %499 }
  0xbd   : > { %634 = vrot.lane.b32.xlu1 %v538_v38, %s5670_s27  ;;  %676 = vrot.lane.b32.xlu0 %v599_v39, %s5670_s27  ;;  %v518_v48 = vsel %vm517_vm6, %v510_v42, %v512_v32 }
  0xc0   : > { %v502_v45 = vpop.permute.xlu0 %501  ;;  %v504_v60 = vpop.permute.xlu1 %503 }
  0xc1   : > { %632 = vrot.lane.b32.xlu1 %v537_v40, %s5670_s27  ;;  %678 = vrot.lane.b32.xlu0 %v600_v41, %s5670_s27  ;;  %v507_v49 = vsel %vm505_vm7, %v500_v46, %v502_v45  ;;  %v508_v62 = vsel %vm505_vm7, %v502_v45, %v504_v60 }
  0xc4   : > { %v498_v50 = vpop.permute.xlu0 %497 }
  0xc5   : > { %626 = vrot.lane.b32.xlu1 %v519_v43, %s5670_s27  ;;  %668 = vrot.lane.b32.xlu0 %v587_v44, %s5670_s27  ;;  %v506_v52 = vsel %vm505_vm7, %v498_v50, %v500_v46 }
  0xc9   : > { %670 = vrot.lane.b32.xlu0 %v588_v47, %s5670_s27  ;;  %624 = vrot.lane.b32.xlu1 %v518_v48, %s5670_s27 }
  0xcd   : > { %660 = vrot.lane.b32.xlu0 %v575_v51, %s5670_s27  ;;  %618 = vrot.lane.b32.xlu1 %v507_v49, %s5670_s27 }
  0xd1   : > { %662 = vrot.lane.b32.xlu0 %v576_v53, %s5670_s27  ;;  %616 = vrot.lane.b32.xlu1 %v506_v52, %s5670_s27 }
  0xd5   : > { %652 = vrot.lane.b32.xlu0 %v563_v54, %s5670_s27  ;;  %610 = vrot.lane.b32.xlu1 %v3545_v1, %s5670_s27  ;;  %v602_v1 = vld [vmem:[%s5658_s3] sm:$0xff] }
  0xd9   : > { %654 = vrot.lane.b32.xlu0 %v564_v55, %s5670_s27  ;;  %608 = vrot.lane.b32.xlu1 %v3591_v4, %s5670_s27 }
  0xdd   : > { %644 = vrot.lane.b32.xlu0 %v551_v56, %s5670_s27  ;;  %605 = vperm.xlu1 %3397, %v602_v1   ;;  %v601_v1 = vld [vmem:[%s5657_s2] sm:$0xff] }
  0xe1   : > { %646 = vrot.lane.b32.xlu0 %v552_v57, %s5670_s27  ;;  %1045 = vrot.lane.b32.xlu1 %v3438_v63, %s5674_s21  ;;  %s5695_s21 = smov 42  }
  0xe5   : > { %636 = vrot.lane.b32.xlu0 %v539_v58, %s5670_s27  ;;  %1016 = vrot.lane.b32.xlu1 %v3438_v63, %s3440_s16 }
  0xe9   : > { %638 = vrot.lane.b32.xlu0 %v540_v59, %s5670_s27  ;;  %1005 = vrot.lane.b32.xlu1 %v3438_v63, %s5678_s22 }
  0xed   : > { %628 = vrot.lane.b32.xlu0 %v520_v61, %s5670_s27  ;;  %994 = vrot.lane.b32.xlu1 %v3438_v63, %s5721_s23 }
  0xf1   : > { %620 = vrot.lane.b32.xlu0 %v508_v62, %s5670_s27  ;;  %983 = vrot.lane.b32.xlu1 %v3438_v63, %s5682_s24 }
  0xf5   : > { %622 = vrot.lane.b32.xlu0 %v504_v60, %s5670_s27  ;;  %971 = vrot.lane.b32.xlu1 %v3438_v63, %s5672_s17  ;;  %s5692_s17 = smov 104  }
  0xf7   : > { %v673_v4 = vpop.permute.xlu1 %672 }
  0xf9   : > { %612 = vrot.lane.b32.xlu0 %v3553_v3, %s5670_s27 }
  0xfd   : > { %614 = vrot.lane.b32.xlu0 %v3542_v0, %s5670_s27  ;;  %s5684_s27 = smov 125  }
  0xfe   : > { %959 = vrot.lane.b32.xlu1 %v3438_v63, %s5684_s27 }
  0xff   : > { %v665_v3 = vpop.permute.xlu1 %664 }
 0x101   : > { %1059 = vrot.lane.b32.xlu0 %v3438_v63, %s5690_s20 }
 0x102   : > { %948 = vrot.lane.b32.xlu1 %v3438_v63, %s5686_s25 }
 0x105   : > { %1028 = vrot.lane.b32.xlu0 %v3438_v63, %s5692_s17 }
 0x106   : > { %937 = vrot.lane.b32.xlu1 %v3438_v63, %s5676_s26  ;;  %s5680_s26 = smov 109  }
 0x107   : > { %v657_v5 = vpop.permute.xlu1 %656 }
 0x10a   : > { %1325 = vrot.lane.b32.xlu1 %v3438_v63, %s5695_s21 }
 0x10f   : > { %v649_v0 = vpop.permute.xlu1 %648 }
 0x117   : > { %v641_v6 = vpop.permute.xlu1 %640 }
 0x11b   : > { %v675_v7 = vpop.permute.xlu1 %674 }
 0x11c   : > { %v705_v13 = vsel %vm5718_vm8, %v673_v4, %v675_v7 }
 0x11f   : > { %v667_v8 = vpop.permute.xlu1 %666 }
 0x120   : > { %v702_v19 = vsel %vm5718_vm8, %v665_v3, %v667_v8  ;;  %v895_v3 = vlaneseq }
 0x123   : > { %v659_v11 = vpop.permute.xlu1 %658 }
 0x124   : > { %v699_v25 = vsel %vm5718_vm8, %v657_v5, %v659_v11  ;;  %v896_v5 = vshrl.u32 %v895_v3, 7 }
 0x127   : > { %v651_v16 = vpop.permute.xlu1 %650 }
 0x128   : > { %v696_v32 = vsel %vm5718_vm8, %v649_v0, %v651_v16  ;;  %v468_v0 = vld [vmem:[%s5656_s1] sm:$0xf] }
 0x12b   : > { %v3735_v9 = vpop.permute.xlu0 %630  ;;  %v643_v21 = vpop.permute.xlu1 %642 }
 0x12c   : > { %v693_v38 = vsel %vm5718_vm8, %v641_v6, %v643_v21  ;;  %v901_v6 = vsub.s32 1, %v896_v5 }
 0x12f   : > { %v677_v10 = vpop.permute.xlu0 %676  ;;  %v635_v26 = vpop.permute.xlu1 %634 }
 0x130   : > { %v706_v12 = vsel %vm5718_vm8, %v675_v7, %v677_v10  ;;  %v3780_v7 = vrot.slane %v468_v0, %v901_v6 }
 0x131   : > { %762 = vmatprep.subr.mxu0 %v706_v12 }
 0x132   : > { %763 = vmatpush1.msra.mxu0 %v705_v13  ;;  %5726 = vst [vmem:[#allocation4_spill] sm:$0xff] %v3780_v7 }
 0x133   : > { %v679_v14 = vpop.permute.xlu0 %678  ;;  %v633_v30 = vpop.permute.xlu1 %632 }
 0x134   : > { %833 = vmatprep.subr.mxu1 %v679_v14  ;;  %v707_v15 = vsel %vm5718_vm8, %v677_v10, %v679_v14  ;;  %v690_v45 = vsel %vm5718_vm8, %v633_v30, %v635_v26  ;;  %v909_v10 = vsub.s32 3, %v896_v5 }
 0x135   : > { %834 = vmatpush1.msra.mxu1 %v707_v15 }
 0x137   : > { %v669_v17 = vpop.permute.xlu0 %668  ;;  %v627_v35 = vpop.permute.xlu1 %626 }
 0x138   : > { %v703_v18 = vsel %vm5718_vm8, %v667_v8, %v669_v17  ;;  %v905_v8 = vsub.s32 2, %v896_v5 }
 0x139   : > { %764 = vmatprep.subr.mxu0 %v703_v18 }
 0x13a   : > { %765 = vmatpush1.msra.mxu0 %v702_v19  ;;  %v3789_v13 = vrot.slane %v468_v0, %v905_v8 }
 0x13b   : > { %v671_v20 = vpop.permute.xlu0 %670  ;;  %v625_v40 = vpop.permute.xlu1 %624 }
 0x13c   : > { %835 = vmatprep.subr.mxu1 %v671_v20  ;;  %v704_v22 = vsel %vm5718_vm8, %v669_v17, %v671_v20  ;;  %v687_v52 = vsel %vm5718_vm8, %v625_v40, %v627_v35  ;;  %5727 = vst [vmem:[#allocation5_spill] sm:$0xff] %v3789_v13  ;;  %v3792_v17 = vrot.slane %v468_v0, %v909_v10 }
 0x13d   : > { %836 = vmatpush1.msra.mxu1 %v704_v22 }
 0x13e   : > { %5728 = vst [vmem:[#allocation6_spill] sm:$0xff] %v3792_v17 }
 0x13f   : > { %v661_v23 = vpop.permute.xlu0 %660  ;;  %v619_v44 = vpop.permute.xlu1 %618 }
 0x140   : > { %v700_v24 = vsel %vm5718_vm8, %v659_v11, %v661_v23 }
 0x141   : > { %766 = vmatprep.subr.mxu0 %v700_v24 }
 0x142   : > { %767 = vmatpush1.msra.mxu0 %v699_v25 }
 0x143   : > { %v663_v27 = vpop.permute.xlu0 %662  ;;  %v617_v48 = vpop.permute.xlu1 %616 }
 0x144   : > { %837 = vmatprep.subr.mxu1 %v663_v27  ;;  %v701_v28 = vsel %vm5718_vm8, %v661_v23, %v663_v27  ;;  %v684_v56 = vsel %vm5718_vm8, %v617_v48, %v619_v44 }
 0x145   : > { %838 = vmatpush1.msra.mxu1 %v701_v28 }
 0x147   : > { %v653_v29 = vpop.permute.xlu0 %652  ;;  %v611_v53 = vpop.permute.xlu1 %610 }
 0x148   : > { %v697_v31 = vsel %vm5718_vm8, %v651_v16, %v653_v29 }
 0x149   : > { %768 = vmatprep.subr.mxu0 %v697_v31 }
 0x14a   : > { %769 = vmatpush1.msra.mxu0 %v696_v32 }
 0x14b   : > { %v655_v33 = vpop.permute.xlu0 %654  ;;  %v609_v59 = vpop.permute.xlu1 %608 }
 0x14c   : > { %839 = vmatprep.subr.mxu1 %v655_v33  ;;  %v698_v34 = vsel %vm5718_vm8, %v653_v29, %v655_v33  ;;  %v681_v61 = vsel %vm5718_vm8, %v609_v59, %v611_v53 }
 0x14d   : > { %840 = vmatpush1.msra.mxu1 %v698_v34 }
 0x14f   : > { %v645_v36 = vpop.permute.xlu0 %644 }
 0x150   : > { %v694_v37 = vsel %vm5718_vm8, %v643_v21, %v645_v36  ;;  %v897_v21 = vsub.s32 0, %v896_v5 }
 0x151   : > { %770 = vmatprep.subr.mxu0 %v694_v37 }
 0x152   : > { %771 = vmatpush1.msra.mxu0 %v693_v38  ;;  %v3810_v23 = vrot.slane %v468_v0, %v897_v21 }
 0x153   : > { %v647_v39 = vpop.permute.xlu0 %646 }
 0x154   : > { %841 = vmatprep.subr.mxu1 %v647_v39  ;;  %v695_v41 = vsel %vm5718_vm8, %v645_v36, %v647_v39  ;;  %5729 = vst [vmem:[#allocation7_spill] sm:$0xff] %v3810_v23 }
 0x155   : > { %842 = vmatpush1.msra.mxu1 %v695_v41 }
 0x157   : > { %v637_v42 = vpop.permute.xlu0 %636 }
 0x158   : > { %v691_v43 = vsel %vm5718_vm8, %v635_v26, %v637_v42 }
 0x159   : > { %772 = vmatprep.subr.mxu0 %v691_v43 }
 0x15a   : > { %773 = vmatpush1.msra.mxu0 %v690_v45 }
 0x15b   : > { %v639_v46 = vpop.permute.xlu0 %638 }
 0x15c   : > { %843 = vmatprep.subr.mxu1 %v639_v46  ;;  %v692_v47 = vsel %vm5718_vm8, %v637_v42, %v639_v46 }
 0x15d   : > { %844 = vmatpush1.msra.mxu1 %v692_v47 }
 0x15e   : > { %845 = vmatprep.subr.mxu1 %v3735_v9 }
 0x15f   : > { %v629_v49 = vpop.permute.xlu0 %628 }
 0x160   : > { %v688_v50 = vsel %vm5718_vm8, %v627_v35, %v629_v49  ;;  %v689_v51 = vsel %vm5718_vm8, %v629_v49, %v3735_v9  ;;  %v3786_v9 = vpop.permute.xlu1 %605 }
 0x161   : > { %774 = vmatprep.subr.mxu0 %v688_v50  ;;  %846 = vmatpush1.msra.mxu1 %v689_v51 }
 0x162   : > { %775 = vmatpush1.msra.mxu0 %v687_v52 }
 0x163   : > { %v621_v54 = vpop.permute.xlu0 %620 }
 0x164   : > { %v685_v55 = vsel %vm5718_vm8, %v619_v44, %v621_v54  ;;  %v3838_v26 = vpop.permute.xlu1 %1045 }
 0x165   : > { %776 = vmatprep.subr.mxu0 %v685_v55 }
 0x166   : > { %777 = vmatpush1.msra.mxu0 %v684_v56 }
 0x167   : > { %v623_v57 = vpop.permute.xlu0 %622 }
 0x168   : > { %847 = vmatprep.subr.mxu1 %v623_v57  ;;  %v686_v58 = vsel %vm5718_vm8, %v621_v54, %v623_v57  ;;  %v3848_v28 = vpop.permute.xlu1 %1016 }
 0x169   : > { %848 = vmatpush1.msra.mxu1 %v686_v58 }
 0x16b   : > { %v613_v60 = vpop.permute.xlu0 %612 }
 0x16c   : > { %v682_v62 = vsel %vm5718_vm8, %v611_v53, %v613_v60  ;;  %v3853_v29 = vpop.permute.xlu1 %1005 }
 0x16d   : > { %778 = vmatprep.subr.mxu0 %v682_v62 }
 0x16e   : > { %779 = vmatpush1.msra.mxu0 %v681_v61 }
 0x16f   : > { %v615_v2 = vpop.permute.xlu0 %614  ;;  %3346 = vmatmul.mubr.msk.f32.vlgmr.msra.gmra.mxu0 %vm5720_vm9, %v601_v1 }
 0x170   : > { %849 = vmatprep.subr.mxu1 %v615_v2  ;;  %v683_v4 = vsel %vm5718_vm8, %v613_v60, %v615_v2  ;;  %v3862_v30 = vpop.permute.xlu1 %994  ;;  %vm1104_vm8 = vcmask 687104  }
 0x171   : > { %850 = vmatpush1.msra.mxu1 %v683_v4 }
 0x172   : > { %3347 = vmatmul.mubr.msk.f32.vlgmr.msra.gmra.mxu1 %vm5720_vm9, %v601_v1  ;;  %vm1161_vm9 = vcmask 891904  }
 0x173   : > { %v3906_v40 = vpop.permute.xlu0 %1059 }
 0x174   : > { %v3868_v31 = vpop.permute.xlu1 %983 }
 0x177   : > { %v3918_v42 = vpop.permute.xlu0 %1028 }
 0x178   : > { %v3878_v32 = vpop.permute.xlu1 %971 }
 0x17c   : > { %v3885_v35 = vpop.permute.xlu1 %959 }
 0x180   : > { %v3895_v37 = vpop.permute.xlu1 %948 }
 0x184   : > { %v3904_v39 = vpop.permute.xlu1 %937 }
 0x188   : > { %v3916_v41 = vpop.permute.xlu1 %1325 }
 0x189   : > { %5738 = vst [vmem:[#allocation8_spill] sm:$0xff] %v3916_v41 }
 0x22f   : > { %v814_v20 = vpop.f32.mrf.mxu0 }
 0x230   : > { %v815_v22 = vadd.f32 %v814_v20, %v3786_v9 }
 0x231   : > { %v816_v33 = vpop.f32.mrf.mxu0 }
 0x232   : > { %v885_v11 = vpop.f32.mrf.mxu1  ;;  %v890_v24 = vmax.f32 %v815_v22, 0.0  ;;  %v817_v34 = vadd.f32 %v816_v33, %v3786_v9 }
 0x233   : > { %v886_v12 = vadd.f32 %v885_v11, %v3786_v9 }
 0x234   : > { %v887_v14 = vpop.f32.mrf.mxu1  ;;  %v3815_v25 = vmul.f32 %v3810_v23, %v890_v24  ;;  %v891_v36 = vmax.f32 %v817_v34, 0.0 }
 0x235   : > { %v892_v15 = vmax.f32 %v886_v12, 0.0  ;;  %v888_v16 = vadd.f32 %v887_v14, %v3786_v9 }
 0x236   : > { %v3898_v38 = vmul.f32 %v3780_v7, %v891_v36 }
 0x237   : > { %v917_v18 = vmul.f32 %v3789_v13, %v892_v15  ;;  %v893_v19 = vmax.f32 %v888_v16, 0.0 }
 0x239   : > { %v918_v63 = vmul.f32 %v3792_v17, %v893_v19  ;;  %1100 = vrot.lane.b32.xlu1 %v917_v18, %s5693_s28  ;;  %1202 = vrot.lane.b32.xlu0 %v917_v18, %s3440_s16 }
 0x23b   : > { %923 = vst.msk [vmem:[#allocation2 + $0x20] sm:$0xff] %vm5719_vm10, %v918_v63  ;;  %vm1092_vm10 = vcmask 695296  }
 0x23d   : > { %1088 = vrot.lane.b32.xlu1 %v917_v18, %s5688_s15  ;;  %1191 = vrot.lane.b32.xlu0 %v917_v18, %s5678_s22  ;;  %s3448_s22 = smov 67  }
 0x241   : > { %1077 = vrot.lane.b32.xlu1 %v917_v18, %s3429_s19  ;;  %1180 = vrot.lane.b32.xlu0 %v917_v18, %s5721_s23 }
 0x242   : > { %v3840_v27 = vld [vmem:[#allocation2 + $0x20] sm:$0xff] }
 0x245   : > { %1065 = vrot.lane.b32.xlu1 %v917_v18, %s5690_s20  ;;  %1169 = vrot.lane.b32.xlu0 %v917_v18, %s5682_s24  ;;  %s3449_s24 = smov 68  }
 0x249   : > { %1157 = vrot.lane.b32.xlu0 %v917_v18, %s5680_s26  ;;  %1034 = vrot.lane.b32.xlu1 %v917_v18, %s5692_s17  ;;  %s5730_s26 = smov 127  }
 0x24d   : > { %1146 = vrot.lane.b32.xlu0 %v917_v18, %s5684_s27  ;;  %1213 = vrot.lane.b32.xlu1 %v917_v18, %s3448_s22  ;;  %s5731_s27 = smov 88  }
 0x251   : > { %1135 = vrot.lane.b32.xlu0 %v917_v18, %s5686_s25  ;;  %1331 = vrot.lane.b32.xlu1 %v917_v18, %s5695_s21  ;;  %s5732_s25 = smov 106  }
 0x255   : > { %1124 = vrot.lane.b32.xlu0 %v917_v18, %s5730_s26  ;;  %1096 = vrot.lane.b32.xlu1 %v3815_v25, %s5693_s28  ;;  %s5736_s28 = smov 126  }
 0x259   : > { %1112 = vrot.lane.b32.xlu0 %v917_v18, %s3449_s24  ;;  %1084 = vrot.lane.b32.xlu1 %v3815_v25, %s5688_s15  ;;  %s5733_s15 = smov 108  }
 0x25d   : > { %1051 = vrot.lane.b32.xlu0 %v917_v18, %s5731_s27  ;;  %1073 = vrot.lane.b32.xlu1 %v3815_v25, %s3429_s19 }
 0x261   : > { %1022 = vrot.lane.b32.xlu0 %v917_v18, %s3440_s16  ;;  %1061 = vrot.lane.b32.xlu1 %v3815_v25, %s5690_s20  ;;  %s5734_s20 = smov 124  }
 0x265   : > { %1011 = vrot.lane.b32.xlu0 %v917_v18, %s5732_s25  ;;  %1030 = vrot.lane.b32.xlu1 %v3815_v25, %s5692_s17  ;;  %s5735_s17 = smov 125  }
 0x269   : > { %1000 = vrot.lane.b32.xlu0 %v917_v18, %s5721_s23  ;;  %1209 = vrot.lane.b32.xlu1 %v3815_v25, %s3448_s22 }
 0x26d   : > { %989 = vrot.lane.b32.xlu0 %v917_v18, %s5733_s15  ;;  %1327 = vrot.lane.b32.xlu1 %v3815_v25, %s5695_s21  ;;  %s5737_s21 = smov 109  }
 0x271   : > { %977 = vrot.lane.b32.xlu0 %v917_v18, %s5734_s20  ;;  %1204 = vrot.lane.b32.xlu1 %v3840_v27, %s3440_s16 }
 0x275   : > { %965 = vrot.lane.b32.xlu0 %v917_v18, %s5735_s17  ;;  %1193 = vrot.lane.b32.xlu1 %v3840_v27, %s5732_s25 }
 0x279   : > { %954 = vrot.lane.b32.xlu0 %v917_v18, %s5736_s28  ;;  %1182 = vrot.lane.b32.xlu1 %v3840_v27, %s5721_s23 }
 0x27d   : > { %943 = vrot.lane.b32.xlu0 %v917_v18, %s5730_s26  ;;  %1171 = vrot.lane.b32.xlu1 %v3840_v27, %s5733_s15 }
 0x281   : > { %1198 = vrot.lane.b32.xlu0 %v3815_v25, %s3440_s16  ;;  %1159 = vrot.lane.b32.xlu1 %v3840_v27, %s5737_s21 }
 0x285   : > { %1187 = vrot.lane.b32.xlu0 %v3815_v25, %s5732_s25  ;;  %1148 = vrot.lane.b32.xlu1 %v3840_v27, %s5735_s17 }
 0x289   : > { %1176 = vrot.lane.b32.xlu0 %v3815_v25, %s5721_s23  ;;  %1137 = vrot.lane.b32.xlu1 %v3840_v27, %s5736_s28 }
 0x28d   : > { %1165 = vrot.lane.b32.xlu0 %v3815_v25, %s5733_s15  ;;  %1126 = vrot.lane.b32.xlu1 %v3840_v27, %s5730_s26 }
 0x291   : > { %1153 = vrot.lane.b32.xlu0 %v3815_v25, %s5737_s21  ;;  %1079 = vrot.lane.b32.xlu1 %v3840_v27, %s3429_s19 }
 0x295   : > { %1142 = vrot.lane.b32.xlu0 %v3815_v25, %s5735_s17  ;;  %1053 = vrot.lane.b32.xlu1 %v3840_v27, %s5731_s27 }
 0x299   : > { %1131 = vrot.lane.b32.xlu0 %v3815_v25, %s5736_s28  ;;  %1215 = vrot.lane.b32.xlu1 %v3840_v27, %s3448_s22 }
 0x29d   : > { %1120 = vrot.lane.b32.xlu0 %v3815_v25, %s5730_s26  ;;  %1200 = vrot.lane.b32.xlu1 %v3898_v38, %s3440_s16 }
 0x2a1   : > { %1108 = vrot.lane.b32.xlu0 %v3815_v25, %s3449_s24  ;;  %1189 = vrot.lane.b32.xlu1 %v3898_v38, %s5732_s25 }
 0x2a5   : > { %1047 = vrot.lane.b32.xlu0 %v3815_v25, %s5731_s27  ;;  %1178 = vrot.lane.b32.xlu1 %v3898_v38, %s5721_s23 }
 0x2a9   : > { %1018 = vrot.lane.b32.xlu0 %v3815_v25, %s3440_s16  ;;  %1167 = vrot.lane.b32.xlu1 %v3898_v38, %s5733_s15 }
 0x2ab   : > { %v3924_v43 = vpop.permute.xlu1 %1100  ;;  %v3926_v44 = vpop.permute.xlu0 %1202 }
 0x2ad   : > { %1007 = vrot.lane.b32.xlu0 %v3815_v25, %s5732_s25  ;;  %1155 = vrot.lane.b32.xlu1 %v3898_v38, %s5737_s21  ;;  %s5741_s21 = smov 84  }
 0x2af   : > { %v3932_v45 = vpop.permute.xlu1 %1088  ;;  %v3934_v46 = vpop.permute.xlu0 %1191 }
 0x2b1   : > { %996 = vrot.lane.b32.xlu0 %v3815_v25, %s5721_s23  ;;  %1144 = vrot.lane.b32.xlu1 %v3898_v38, %s5735_s17 }
 0x2b3   : > { %v3940_v47 = vpop.permute.xlu1 %1077  ;;  %v3942_v48 = vpop.permute.xlu0 %1180 }
 0x2b5   : > { %985 = vrot.lane.b32.xlu0 %v3815_v25, %s5733_s15  ;;  %1133 = vrot.lane.b32.xlu1 %v3898_v38, %s5736_s28 }
 0x2b7   : > { %v3948_v49 = vpop.permute.xlu1 %1065  ;;  %v3950_v50 = vpop.permute.xlu0 %1169 }
 0x2b9   : > { %973 = vrot.lane.b32.xlu0 %v3815_v25, %s5734_s20  ;;  %1122 = vrot.lane.b32.xlu1 %v3898_v38, %s5730_s26 }
 0x2bb   : > { %v3956_v51 = vpop.permute.xlu1 %1034  ;;  %v3958_v52 = vpop.permute.xlu0 %1157 }
 0x2bd   : > { %961 = vrot.lane.b32.xlu0 %v3815_v25, %s5735_s17  ;;  %1110 = vrot.lane.b32.xlu1 %v3898_v38, %s3449_s24 }
 0x2bf   : > { %v3964_v53 = vpop.permute.xlu1 %1213  ;;  %v3966_v54 = vpop.permute.xlu0 %1146 }
 0x2c0   : > { %5739 = vst [vmem:[#allocation9_spill] sm:$0xff] %v3964_v53 }
 0x2c1   : > { %950 = vrot.lane.b32.xlu0 %v3815_v25, %s5736_s28  ;;  %1049 = vrot.lane.b32.xlu1 %v3898_v38, %s5731_s27 }
 0x2c3   : > { %v3972_v55 = vpop.permute.xlu1 %1331  ;;  %v3974_v56 = vpop.permute.xlu0 %1135 }
 0x2c4   : > { %5740 = vst [vmem:[#allocation10_spill] sm:$0xff] %v3972_v55 }
 0x2c5   : > { %939 = vrot.lane.b32.xlu0 %v3815_v25, %s5730_s26  ;;  %1020 = vrot.lane.b32.xlu1 %v3898_v38, %s3440_s16  ;;  %s5742_s16 = smov 85  }
 0x2c7   : > { %v3980_v57 = vpop.permute.xlu1 %1096  ;;  %v3982_v58 = vpop.permute.xlu0 %1124 }
 0x2c9   : > { %1114 = vrot.lane.b32.xlu0 %v3840_v27, %s3449_s24  ;;  %1009 = vrot.lane.b32.xlu1 %v3898_v38, %s5732_s25  ;;  %s5743_s24 = smov 87  }
 0x2cb   : > { %v3988_v59 = vpop.permute.xlu1 %1084  ;;  %v3990_v60 = vpop.permute.xlu0 %1112 }
 0x2cd   : > { %1102 = vrot.lane.b32.xlu0 %v3840_v27, %s5741_s21  ;;  %998 = vrot.lane.b32.xlu1 %v3898_v38, %s5721_s23  ;;  %s5779_s23 = smov 21  }
 0x2cf   : > { %v3996_v61 = vpop.permute.xlu1 %1073  ;;  %v3998_v62 = vpop.permute.xlu0 %1051 }
 0x2d1   : > { %1090 = vrot.lane.b32.xlu0 %v3840_v27, %s5742_s16  ;;  %987 = vrot.lane.b32.xlu1 %v3898_v38, %s5733_s15 }
 0x2d3   : > { %v4004_v1 = vpop.permute.xlu1 %1061  ;;  %v4006_v2 = vpop.permute.xlu0 %1022 }
 0x2d4   : > { %v1069_v19 = vsel %vm585_vm1, %v3906_v40, %v4004_v1 }
 0x2d5   : > { %1067 = vrot.lane.b32.xlu0 %v3840_v27, %s5743_s24  ;;  %975 = vrot.lane.b32.xlu1 %v3898_v38, %s5734_s20  ;;  %s5747_s20 = smov 42  }
 0x2d7   : > { %v4012_v4 = vpop.permute.xlu1 %1030  ;;  %v4014_v3 = vpop.permute.xlu0 %1011 }
 0x2d9   : > { %1098 = vrot.lane.b32.xlu0 %v3898_v38, %s5741_s21  ;;  %963 = vrot.lane.b32.xlu1 %v3898_v38, %s5735_s17  ;;  %s5749_s17 = smov 104  }
 0x2db   : > { %v4020_v5 = vpop.permute.xlu1 %1209  ;;  %v4022_v0 = vpop.permute.xlu0 %1000 }
 0x2dc   : > { %5744 = vst [vmem:[#allocation11_spill] sm:$0xff] %v4020_v5 }
 0x2dd   : > { %1086 = vrot.lane.b32.xlu0 %v3898_v38, %s5742_s16  ;;  %952 = vrot.lane.b32.xlu1 %v3898_v38, %s5736_s28 }
 0x2df   : > { %v4028_v6 = vpop.permute.xlu1 %1327  ;;  %v4030_v8 = vpop.permute.xlu0 %989 }
 0x2e0   : > { %5745 = vst [vmem:[#allocation12_spill] sm:$0xff] %v4028_v6 }
 0x2e1   : > { %1075 = vrot.lane.b32.xlu0 %v3898_v38, %s3429_s19  ;;  %941 = vrot.lane.b32.xlu1 %v3898_v38, %s5730_s26 }
 0x2e3   : > { %v4036_v9 = vpop.permute.xlu1 %1204  ;;  %v4038_v10 = vpop.permute.xlu0 %977 }
 0x2e4   : > { %5746 = vst [vmem:[#allocation13_spill] sm:$0xff] %v4038_v10 }
 0x2e5   : > { %1063 = vrot.lane.b32.xlu0 %v3898_v38, %s5743_s24  ;;  %1437 = vrot.lane.b32.xlu1 %v3980_v57, %s5747_s20 }
 0x2e7   : > { %v4044_v11 = vpop.permute.xlu1 %1193  ;;  %v4046_v12 = vpop.permute.xlu0 %965 }
 0x2e8   : > { %5748 = vst [vmem:[#allocation14_spill] sm:$0xff] %v4046_v12 }
 0x2e9   : > { %1032 = vrot.lane.b32.xlu0 %v3898_v38, %s5749_s17  ;;  %1429 = vrot.lane.b32.xlu1 %v3988_v59, %s5747_s20  ;;  %s3366_s17 = sshll.u32 %s5871_s30, 5 }
 0x2eb   : > { %v4052_v14 = vpop.permute.xlu1 %1182  ;;  %v4054_v15 = vpop.permute.xlu0 %954 }
 0x2ec   : > { %5750 = vst [vmem:[#allocation15_spill] sm:$0xff] %v4054_v15 }
 0x2ed   : > { %1211 = vrot.lane.b32.xlu0 %v3898_v38, %s3448_s22  ;;  %1421 = vrot.lane.b32.xlu1 %v3996_v61, %s5747_s20 }
 0x2ef   : > { %v4060_v16 = vpop.permute.xlu1 %1171  ;;  %v4062_v18 = vpop.permute.xlu0 %943 }
 0x2f0   : > { %5751 = vst [vmem:[#allocation16_spill] sm:$0xff] %v4062_v18 }
 0x2f1   : > { %1329 = vrot.lane.b32.xlu0 %v3898_v38, %s5747_s20  ;;  %1413 = vrot.lane.b32.xlu1 %v1069_v19, %s5747_s20 }
 0x2f3   : > { %v4070_v63 = vpop.permute.xlu1 %1159  ;;  %v4072_v20 = vpop.permute.xlu0 %1198 }
 0x2f5   : > { %1403 = vrot.lane.b32.xlu0 %v3956_v51, %s5747_s20 }
 0x2f7   : > { %v4076_v21 = vpop.permute.xlu1 %1148  ;;  %v4078_v22 = vpop.permute.xlu0 %1187 }
 0x2f9   : > { %1395 = vrot.lane.b32.xlu0 %v4006_v2, %s5747_s20 }
 0x2fb   : > { %v4082_v24 = vpop.permute.xlu1 %1137  ;;  %v4084_v25 = vpop.permute.xlu0 %1176 }
 0x2fd   : > { %1387 = vrot.lane.b32.xlu0 %v4014_v3, %s5747_s20 }
 0x2ff   : > { %v4088_v27 = vpop.permute.xlu1 %1126  ;;  %v4090_v33 = vpop.permute.xlu0 %1165 }
 0x301   : > { %1379 = vrot.lane.b32.xlu0 %v4022_v0, %s5747_s20 }
 0x303   : > { %v4094_v34 = vpop.permute.xlu1 %1079  ;;  %v4096_v36 = vpop.permute.xlu0 %1153 }
 0x305   : > { %1371 = vrot.lane.b32.xlu0 %v4030_v8, %s5747_s20 }
 0x307   : > { %v4100_v38 = vpop.permute.xlu1 %1053  ;;  %v4102_v40 = vpop.permute.xlu0 %1142 }
 0x309   : > { %1363 = vrot.lane.b32.xlu0 %v4038_v10, %s5747_s20 }
 0x30b   : > { %v4106_v19 = vpop.permute.xlu1 %1215  ;;  %v4108_v17 = vpop.permute.xlu0 %1131 }
 0x30c   : > { %5752 = vst [vmem:[#allocation17_spill] sm:$0xff] %v4106_v19 }
 0x30d   : > { %1355 = vrot.lane.b32.xlu0 %v4046_v12, %s5747_s20 }
 0x30f   : > { %v4112_v13 = vpop.permute.xlu1 %1200  ;;  %v4114_v7 = vpop.permute.xlu0 %1120 }
 0x311   : > { %1347 = vrot.lane.b32.xlu0 %v4054_v15, %s5747_s20 }
 0x313   : > { %v4118_v23 = vpop.permute.xlu1 %1189  ;;  %v4120_v41 = vpop.permute.xlu0 %1108 }
 0x315   : > { %1339 = vrot.lane.b32.xlu0 %v4062_v18, %s5747_s20  ;;  %v1037_v18 = vsel %vm1036_vm11, %v3918_v42, %v4012_v4 }
 0x317   : > { %v4124_v6 = vpop.permute.xlu1 %1178  ;;  %v4126_v55 = vpop.permute.xlu0 %1047 }
 0x318   : > { %v1055_v19 = vsel %vm573_vm2, %v3838_v26, %v4126_v55 }
 0x319   : > { %1445 = vrot.lane.b32.xlu0 %v4120_v41, %s5747_s20  ;;  %1405 = vrot.lane.b32.xlu1 %v1055_v19, %s5747_s20 }
 0x31b   : > { %v4134_v5 = vpop.permute.xlu1 %1167  ;;  %v4136_v53 = vpop.permute.xlu0 %1018 }
 0x31c   : > { %v1025_v19 = vsel %vm1024_vm12, %v3848_v28, %v4136_v53 }
 0x31d   : > { %1279 = vrot.lane.b32.xlu0 %v4036_v9, %s3448_s22  ;;  %1397 = vrot.lane.b32.xlu1 %v1037_v18, %s5747_s20 }
 0x31f   : > { %v4144_v26 = vpop.permute.xlu0 %1007  ;;  %v4149_v15 = vpop.permute.xlu1 %1155 }
 0x320   : > { %v1013_v18 = vsel %vm561_vm3, %v3853_v29, %v4144_v26 }
 0x321   : > { %1271 = vrot.lane.b32.xlu0 %v4044_v11, %s3448_s22  ;;  %1389 = vrot.lane.b32.xlu1 %v1025_v19, %s5747_s20 }
 0x323   : > { %v4154_v42 = vpop.permute.xlu0 %996  ;;  %v4162_v12 = vpop.permute.xlu1 %1144 }
 0x324   : > { %5753 = vst [vmem:[#allocation18_spill] sm:$0xff] %v4154_v42  ;;  %v1002_v10 = vsel %vm549_vm4, %v3862_v30, %v4154_v42 }
 0x325   : > { %1263 = vrot.lane.b32.xlu0 %v4052_v14, %s3448_s22  ;;  %1381 = vrot.lane.b32.xlu1 %v1013_v18, %s5747_s20 }
 0x327   : > { %v4164_v28 = vpop.permute.xlu0 %985  ;;  %v4177_v18 = vpop.permute.xlu1 %1133 }
 0x328   : > { %5754 = vst [vmem:[#allocation19_spill] sm:$0xff] %v4164_v28  ;;  %v991_v29 = vsel %vm536_vm5, %v3868_v31, %v4164_v28 }
 0x329   : > { %1255 = vrot.lane.b32.xlu0 %v4060_v16, %s3448_s22  ;;  %1373 = vrot.lane.b32.xlu1 %v1002_v10, %s5747_s20 }
 0x32b   : > { %v4172_v19 = vpop.permute.xlu0 %973  ;;  %v4190_v31 = vpop.permute.xlu1 %1122 }
 0x32c   : > { %5755 = vst [vmem:[#allocation20_spill] sm:$0xff] %v4172_v19  ;;  %v980_v10 = vsel %vm979_vm13, %v3878_v32, %v4172_v19 }
 0x32d   : > { %1247 = vrot.lane.b32.xlu0 %v4070_v63, %s3448_s22  ;;  %1365 = vrot.lane.b32.xlu1 %v991_v29, %s5747_s20 }
 0x32f   : > { %v4182_v30 = vpop.permute.xlu0 %961  ;;  %v4205_v19 = vpop.permute.xlu1 %1110 }
 0x330   : > { %5756 = vst [vmem:[#allocation21_spill] sm:$0xff] %v4182_v30  ;;  %v968_v29 = vsel %vm967_vm14, %v3885_v35, %v4182_v30  ;;  %v1208_v35 = vsel %vm1024_vm12, %v3926_v44, %v4036_v9  ;;  %v1197_v30 = vsel %vm561_vm3, %v3934_v46, %v4044_v11 }
 0x331   : > { %1239 = vrot.lane.b32.xlu0 %v4076_v21, %s3448_s22  ;;  %1357 = vrot.lane.b32.xlu1 %v980_v10, %s5747_s20 }
 0x333   : > { %v4192_v28 = vpop.permute.xlu0 %950 }
 0x334   : > { %5757 = vst [vmem:[#allocation22_spill] sm:$0xff] %v4192_v28  ;;  %v956_v10 = vsel %vm517_vm6, %v3895_v37, %v4192_v28  ;;  %v4218_v37 = vpop.permute.xlu1 %1049 }
 0x335   : > { %1231 = vrot.lane.b32.xlu0 %v4082_v24, %s3448_s22  ;;  %1349 = vrot.lane.b32.xlu1 %v968_v29, %s5747_s20 }
 0x337   : > { %v4200_v32 = vpop.permute.xlu0 %939 }
 0x338   : > { %v945_v29 = vsel %vm505_vm7, %v3904_v39, %v4200_v32 }
 0x339   : > { %1223 = vrot.lane.b32.xlu0 %v4088_v27, %s3448_s22  ;;  %1341 = vrot.lane.b32.xlu1 %v956_v10, %s5747_s20 }
 0x33b   : > { %v1115_v42 = vpop.permute.xlu0 %1114 }
 0x33c   : > { %v1119_v10 = vsel %vm1116_vm15, %v3990_v60, %v1115_v42 }
 0x33d   : > { %1277 = vrot.lane.b32.xlu0 %v1208_v35, %s3448_s22  ;;  %1333 = vrot.lane.b32.xlu1 %v945_v29, %s5747_s20  ;;  %v1186_v35 = vsel %vm549_vm4, %v3942_v48, %v4052_v14  ;;  %v4232_v29 = vpop.permute.xlu1 %1020 }
 0x33f   : > { %v1103_v28 = vpop.permute.xlu0 %1102 }
 0x340   : > { %v1107_v9 = vsel %vm1104_vm8, %v3924_v43, %v1103_v28 }
 0x341   : > { %1269 = vrot.lane.b32.xlu1 %v1197_v30, %s3448_s22  ;;  %1451 = vrot.lane.b32.xlu0 %v1119_v10, %s5747_s20  ;;  %v1175_v30 = vsel %vm536_vm5, %v3950_v50, %v4060_v16  ;;  %v4243_v14 = vpop.permute.xlu1 %1009  ;;  %v1083_v10 = vsel %vm597_vm0, %v3940_v47, %v4094_v34  ;;  %v1058_v34 = vsel %vm573_vm2, %v3998_v62, %v4100_v38 }
 0x342   : > { %v1206_v38 = vsel %vm1024_vm12, %v4072_v20, %v4112_v13 }
 0x343   : > { %v1091_v39 = vpop.permute.xlu0 %1090 }
 0x344   : > { %v1095_v42 = vsel %vm1092_vm10, %v3932_v45, %v1091_v39  ;;  %v1164_v39 = vsel %vm1161_vm9, %v3958_v52, %v4070_v63 }
 0x345   : > { %1261 = vrot.lane.b32.xlu1 %v1186_v35, %s3448_s22  ;;  %1443 = vrot.lane.b32.xlu0 %v1107_v9, %s5747_s20  ;;  %v1152_v35 = vsel %vm967_vm14, %v3966_v54, %v4076_v21 }
 0x347   : > { %v1068_v11 = vpop.permute.xlu0 %1067 }
 0x348   : > { %v1072_v9 = vsel %vm585_vm1, %v3948_v49, %v1068_v11  ;;  %v1141_v11 = vsel %vm517_vm6, %v3974_v56, %v4082_v24 }
 0x349   : > { %1253 = vrot.lane.b32.xlu1 %v1175_v30, %s3448_s22  ;;  %1435 = vrot.lane.b32.xlu0 %v1095_v42, %s5747_s20  ;;  %v4262_v42 = vpop.permute.xlu1 %998 }
 0x34b   : > { %v4245_v28 = vpop.permute.xlu0 %1098 }
 0x34d   : > { %1245 = vrot.lane.b32.xlu1 %v1164_v39, %s3448_s22  ;;  %1427 = vrot.lane.b32.xlu0 %v1083_v10, %s5747_s20  ;;  %v4276_v21 = vpop.permute.xlu1 %987  ;;  %v1130_v10 = vsel %vm505_vm7, %v3982_v58, %v4088_v27  ;;  %v1207_v39 = vsel %vm1024_vm12, %v4112_v13, %v3926_v44  ;;  %v1195_v27 = vsel %vm561_vm3, %v4078_v22, %v4118_v23 }
 0x34e   : > { %v1185_v13 = vsel %vm549_vm4, %v4124_v6, %v3942_v48  ;;  %v1173_v22 = vsel %vm536_vm5, %v4090_v33, %v4134_v5  ;;  %v1150_v33 = vsel %vm967_vm14, %v4102_v40, %v4162_v12 }
 0x34f   : > { %v4255_v16 = vpop.permute.xlu0 %1086 }
 0x351   : > { %1237 = vrot.lane.b32.xlu1 %v1152_v35, %s3448_s22  ;;  %1419 = vrot.lane.b32.xlu0 %v1072_v9, %s5747_s20  ;;  %v1196_v9 = vsel %vm561_vm3, %v4118_v23, %v3934_v46  ;;  %v4296_v35 = vpop.permute.xlu1 %975  ;;  %v1174_v23 = vsel %vm536_vm5, %v4134_v5, %v3950_v50  ;;  %v1151_v5 = vsel %vm967_vm14, %v4162_v12, %v3966_v54 }
 0x352   : > { %v1128_v12 = vsel %vm505_vm7, %v4114_v7, %v4190_v31  ;;  %v1106_v7 = vsel %vm1104_vm8, %v4245_v28, %v3924_v43 }
 0x353   : > { %v4266_v63 = vpop.permute.xlu0 %1075 }
 0x355   : > { %1229 = vrot.lane.b32.xlu1 %v1141_v11, %s3448_s22  ;;  %1411 = vrot.lane.b32.xlu0 %v1058_v34, %s5747_s20  ;;  %v4310_v44 = vpop.permute.xlu1 %963  ;;  %v1184_v34 = vsel %vm549_vm4, %v4084_v25, %v4124_v6  ;;  %v1163_v11 = vsel %vm1161_vm9, %v4149_v15, %v3958_v52  ;;  %v1162_v6 = vsel %vm1161_vm9, %v4096_v36, %v4149_v15  ;;  %vm1525_vm9 = vcmask 343040  }
 0x356   : > { %v1140_v15 = vsel %vm517_vm6, %v4177_v18, %v3974_v56  ;;  %v1139_v36 = vsel %vm517_vm6, %v4108_v17, %v4177_v18  ;;  %v1117_v17 = vsel %vm1116_vm15, %v4120_v41, %v4205_v19  ;;  %v1118_v18 = vsel %vm1116_vm15, %v4205_v19, %v3990_v60 }
 0x357   : > { %v4278_v30 = vpop.permute.xlu0 %1063  ;;  %v1093_v60 = vsel %vm1092_vm10, %v3988_v59, %v4255_v16 }
 0x358   : > { %v1071_v59 = vsel %vm585_vm1, %v4278_v30, %v3948_v49 }
 0x359   : > { %1221 = vrot.lane.b32.xlu1 %v1130_v10, %s3448_s22  ;;  %1273 = vrot.lane.b32.xlu0 %v1206_v38, %s3448_s22  ;;  %v4330_v10 = vpop.permute.xlu1 %952  ;;  %v1129_v38 = vsel %vm505_vm7, %v4190_v31, %v3982_v58  ;;  %v1105_v31 = vsel %vm1104_vm8, %v3980_v57, %v4245_v28  ;;  %v1082_v57 = vsel %vm597_vm0, %v4266_v63, %v3940_v47  ;;  %vm1281_vm8 = vcmask 547840  }
 0x35a   : > { %v1081_v28 = vsel %vm597_vm0, %v3996_v61, %v4266_v63  ;;  %v1070_v61 = vsel %vm585_vm1, %v4004_v1, %v4278_v30 }
 0x35b   : > { %v4288_v24 = vpop.permute.xlu0 %1032 }
 0x35d   : > { %1275 = vrot.lane.b32.xlu1 %v1207_v39, %s3448_s22  ;;  %1267 = vrot.lane.b32.xlu0 %v1196_v9, %s3448_s22  ;;  %v4344_v52 = vpop.permute.xlu1 %941  ;;  %v1094_v9 = vsel %vm1092_vm10, %v4255_v16, %v3932_v45  ;;  %vm5770_vm10 = vcmask 588800  }
 0x35f   : > { %v4300_v20 = vpop.permute.xlu0 %1211 }
 0x361   : > { %1265 = vrot.lane.b32.xlu1 %v1195_v27, %s3448_s22  ;;  %1259 = vrot.lane.b32.xlu0 %v1185_v13, %s3448_s22  ;;  %v4364_v39 = vpop.permute.xlu1 %1437  ;;  %v1057_v13 = vsel %vm573_vm2, %v4218_v37, %v3998_v62  ;;  %v1039_v62 = vsel %vm1036_vm11, %v4288_v24, %v3956_v51 }
 0x363   : > { %v4312_v46 = vpop.permute.xlu0 %1329 }
 0x365   : > { %1257 = vrot.lane.b32.xlu1 %v1184_v34, %s3448_s22  ;;  %1251 = vrot.lane.b32.xlu0 %v1174_v23, %s3448_s22  ;;  %v4378_v58 = vpop.permute.xlu1 %1429  ;;  %v1056_v34 = vsel %vm573_vm2, %v4126_v55, %v4218_v37  ;;  %v1027_v23 = vsel %vm1024_vm12, %v4232_v29, %v4006_v2  ;;  %v1038_v55 = vsel %vm1036_vm11, %v4012_v4, %v4288_v24  ;;  %vm5771_vm11 = vmmov %vm5770_vm10 }
 0x366   : > { %v1026_v2 = vsel %vm1024_vm12, %v4136_v53, %v4232_v29  ;;  %vm5777_vm12 = vmmov %vm5770_vm10 }
 0x367   : > { %v4322_v48 = vpop.permute.xlu0 %1403 }
 0x369   : > { %1249 = vrot.lane.b32.xlu1 %v1173_v22, %s3448_s22  ;;  %1243 = vrot.lane.b32.xlu0 %v1163_v11, %s3448_s22  ;;  %v4398_v27 = vpop.permute.xlu1 %1421  ;;  %v1015_v22 = vsel %vm561_vm3, %v4243_v14, %v4014_v3  ;;  %v1004_v11 = vsel %vm549_vm4, %v4262_v42, %v4022_v0  ;;  %v1014_v3 = vsel %vm561_vm3, %v4144_v26, %v4243_v14 }
 0x36b   : > { %v4334_v50 = vpop.permute.xlu0 %1395 }
 0x36d   : > { %1241 = vrot.lane.b32.xlu1 %v1162_v6, %s3448_s22  ;;  %1235 = vrot.lane.b32.xlu0 %v1151_v5, %s3448_s22  ;;  %v4412_v45 = vpop.permute.xlu1 %1413  ;;  %v993_v6 = vsel %vm536_vm5, %v4276_v21, %v4030_v8  ;;  %v5758_v5 = vld [vmem:[#allocation18_spill] sm:$0xff] }
 0x36e   : > { %v1003_v0 = vsel %vm549_vm4, %v5758_v5, %v4262_v42 }
 0x36f   : > { %v4346_v25 = vpop.permute.xlu0 %1387 }
 0x371   : > { %1233 = vrot.lane.b32.xlu1 %v1150_v33, %s3448_s22  ;;  %1227 = vrot.lane.b32.xlu0 %v1140_v15, %s3448_s22  ;;  %v5759_v33 = vld [vmem:[#allocation13_spill] sm:$0xff] }
 0x372   : > { %v982_v15 = vsel %vm979_vm13, %v4296_v35, %v5759_v33 }
 0x373   : > { %v4356_v54 = vpop.permute.xlu0 %1379 }
 0x375   : > { %1225 = vrot.lane.b32.xlu1 %v1139_v36, %s3448_s22  ;;  %1219 = vrot.lane.b32.xlu0 %v1129_v38, %s3448_s22  ;;  %v5760_v36 = vld [vmem:[#allocation19_spill] sm:$0xff] }
 0x376   : > { %v992_v8 = vsel %vm536_vm5, %v5760_v36, %v4276_v21 }
 0x377   : > { %v4368_v56 = vpop.permute.xlu0 %1371 }
 0x379   : > { %1217 = vrot.lane.b32.xlu1 %v1128_v12, %s3448_s22  ;;  %1447 = vrot.lane.b32.xlu0 %v1117_v17, %s5747_s20  ;;  %v5761_v12 = vld [vmem:[#allocation14_spill] sm:$0xff] }
 0x37a   : > { %v970_v17 = vsel %vm967_vm14, %v4310_v44, %v5761_v12 }
 0x37b   : > { %v4380_v40 = vpop.permute.xlu0 %1363 }
 0x37d   : > { %1449 = vrot.lane.b32.xlu1 %v1118_v18, %s5747_s20  ;;  %1441 = vrot.lane.b32.xlu0 %v1106_v7, %s5747_s20  ;;  %v5762_v18 = vld [vmem:[#allocation20_spill] sm:$0xff] }
 0x37e   : > { %v981_v7 = vsel %vm979_vm13, %v5762_v18, %v4296_v35  ;;  %vm5778_vm13 = vmmov %vm5770_vm10 }
 0x37f   : > { %v4390_v41 = vpop.permute.xlu0 %1355 }
 0x381   : > { %1439 = vrot.lane.b32.xlu1 %v1105_v31, %s5747_s20  ;;  %1433 = vrot.lane.b32.xlu0 %v1094_v9, %s5747_s20  ;;  %v5763_v9 = vld [vmem:[#allocation15_spill] sm:$0xff] }
 0x383   : > { %v4402_v43 = vpop.permute.xlu0 %1347 }
 0x385   : > { %1431 = vrot.lane.b32.xlu1 %v1093_v60, %s5747_s20  ;;  %1425 = vrot.lane.b32.xlu0 %v1082_v57, %s5747_s20  ;;  %v958_v60 = vsel %vm517_vm6, %v4330_v10, %v5763_v9  ;;  %v5764_v57 = vld [vmem:[#allocation21_spill] sm:$0xff] }
 0x387   : > { %v4414_v19 = vpop.permute.xlu0 %1339 }
 0x389   : > { %1423 = vrot.lane.b32.xlu1 %v1081_v28, %s5747_s20  ;;  %1417 = vrot.lane.b32.xlu0 %v1071_v59, %s5747_s20  ;;  %v969_v28 = vsel %vm967_vm14, %v5764_v57, %v4310_v44  ;;  %vm5784_vm14 = vcmask 130048  }
 0x38a   : > { %vm5785_vm15 = vmmov %vm5784_vm14 }
 0x38b   : > { %v4424_v47 = vpop.permute.xlu1 %1405  ;;  %v4426_v16 = vpop.permute.xlu0 %1445 }
 0x38d   : > { %1409 = vrot.lane.b32.xlu0 %v1057_v13, %s5747_s20  ;;  %1415 = vrot.lane.b32.xlu1 %v1070_v61, %s5747_s20  ;;  %v5766_v13 = vld [vmem:[#allocation22_spill] sm:$0xff] }
 0x38e   : > { %v957_v61 = vsel %vm517_vm6, %v5766_v13, %v4330_v10  ;;  %v5768_v10 = vld [vmem:[#allocation9_spill] sm:$0xff] }
 0x38f   : > { %v4436_v49 = vpop.permute.xlu1 %1397  ;;  %v4438_v63 = vpop.permute.xlu0 %1279 }
 0x391   : > { %1407 = vrot.lane.b32.xlu1 %v1056_v34, %s5747_s20  ;;  %1401 = vrot.lane.b32.xlu0 %v1039_v62, %s5747_s20  ;;  %v5767_v34 = vld [vmem:[#allocation16_spill] sm:$0xff] }
 0x392   : > { %v947_v62 = vsel %vm505_vm7, %v4344_v52, %v5767_v34 }
 0x393   : > { %v4448_v1 = vpop.permute.xlu1 %1389  ;;  %v4450_v30 = vpop.permute.xlu0 %1271 }
 0x395   : > { %1393 = vrot.lane.b32.xlu0 %v1027_v23, %s5747_s20  ;;  %1399 = vrot.lane.b32.xlu1 %v1038_v55, %s5747_s20  ;;  %v946_v55 = vsel %vm505_vm7, %v4200_v32, %v4344_v52 }
 0x397   : > { %v4460_v51 = vpop.permute.xlu1 %1381  ;;  %v4462_v37 = vpop.permute.xlu0 %1263 }
 0x399   : > { %1385 = vrot.lane.b32.xlu0 %v1015_v22, %s5747_s20  ;;  %1391 = vrot.lane.b32.xlu1 %v1026_v2, %s5747_s20  ;;  %v1283_v22 = vsel %vm1281_vm8, %v4300_v20, %v5768_v10 }
 0x39b   : > { %v4472_v4 = vpop.permute.xlu1 %1373  ;;  %v4474_v24 = vpop.permute.xlu0 %1255 }
 0x39d   : > { %1377 = vrot.lane.b32.xlu0 %v1004_v11, %s5747_s20  ;;  %1383 = vrot.lane.b32.xlu1 %v1014_v3, %s5747_s20  ;;  %v5769_v3 = vld [vmem:[#allocation11_spill] sm:$0xff] }
 0x39f   : > { %v4484_v53 = vpop.permute.xlu1 %1365  ;;  %v4486_v29 = vpop.permute.xlu0 %1247 }
 0x3a1   : > { %1369 = vrot.lane.b32.xlu0 %v993_v6, %s5747_s20  ;;  %1375 = vrot.lane.b32.xlu1 %v1003_v0, %s5747_s20  ;;  %v1282_v6 = vsel %vm1281_vm8, %v5769_v3, %v4300_v20 }
 0x3a3   : > { %v4496_v26 = vpop.permute.xlu1 %1357  ;;  %v4498_v14 = vpop.permute.xlu0 %1239 }
 0x3a5   : > { %1361 = vrot.lane.b32.xlu0 %v982_v15, %s5747_s20  ;;  %1367 = vrot.lane.b32.xlu1 %v992_v8, %s5747_s20 }
 0x3a7   : > { %v4508_v42 = vpop.permute.xlu1 %1349  ;;  %v4510_v38 = vpop.permute.xlu0 %1231 }
 0x3a9   : > { %1353 = vrot.lane.b32.xlu0 %v970_v17, %s5747_s20  ;;  %1359 = vrot.lane.b32.xlu1 %v981_v7, %s5747_s20 }
 0x3ab   : > { %v4520_v21 = vpop.permute.xlu1 %1341  ;;  %v4522_v31 = vpop.permute.xlu0 %1223 }
 0x3ad   : > { %1345 = vrot.lane.b32.xlu0 %v958_v60, %s5747_s20  ;;  %1351 = vrot.lane.b32.xlu1 %v969_v28, %s5747_s20 }
 0x3af   : > { %v4532_v35 = vpop.permute.xlu1 %1333  ;;  %v4534_v59 = vpop.permute.xlu0 %1277 }
 0x3b0   : > { %5765 = vst [vmem:[#allocation18_spill] sm:$0xff] %v4532_v35  ;;  %v1308_v7 = vsel %vm1281_vm8, %v4534_v59, %v4438_v63 }
 0x3b1   : > { %1343 = vrot.lane.b32.xlu1 %v957_v61, %s5747_s20  ;;  %1337 = vrot.lane.b32.xlu0 %v947_v62, %s5747_s20 }
 0x3b3   : > { %v4544_v44 = vpop.permute.xlu1 %1269  ;;  %v4546_v23 = vpop.permute.xlu0 %1451 }
 0x3b4   : > { %1784 = vmatprep.subr.mxu1 %v4546_v23  ;;  %v1305_v57 = vsel %vm1281_vm8, %v4544_v44, %v4450_v30 }
 0x3b5   : > { %1335 = vrot.lane.b32.xlu1 %v946_v55, %s5747_s20  ;;  %1457 = vrot.lane.b32.xlu0 %v1283_v22, %s5747_s20 }
 0x3b7   : > { %v4557_v2 = vpop.permute.xlu1 %1261  ;;  %v4559_v11 = vpop.permute.xlu0 %1443 }
 0x3b8   : > { %v1302_v63 = vsel %vm1281_vm8, %v4557_v2, %v4462_v37 }
 0x3b9   : > { %1455 = vrot.lane.b32.xlu1 %v1282_v6, %s5747_s20 }
 0x3bb   : > { %v4565_v5 = vpop.permute.xlu1 %1253  ;;  %v4567_v32 = vpop.permute.xlu0 %1435 }
 0x3bc   : > { %v1299_v34 = vsel %vm1281_vm8, %v4565_v5, %v4474_v24 }
 0x3bf   : > { %v4569_v52 = vpop.permute.xlu1 %1245  ;;  %v4571_v0 = vpop.permute.xlu0 %1427 }
 0x3c0   : > { %v1296_v55 = vsel %vm1281_vm8, %v4569_v52, %v4486_v29 }
 0x3c3   : > { %v4573_v33 = vpop.permute.xlu1 %1237  ;;  %v4575_v15 = vpop.permute.xlu0 %1419 }
 0x3c4   : > { %v1293_v6 = vsel %vm1281_vm8, %v4573_v33, %v4498_v14 }
 0x3c7   : > { %v4577_v36 = vpop.permute.xlu1 %1229  ;;  %v4579_v8 = vpop.permute.xlu0 %1411 }
 0x3cb   : > { %v4581_v12 = vpop.permute.xlu1 %1221  ;;  %v1274_v20 = vpop.permute.xlu0 %1273 }
 0x3cc   : > { %1517 = vrot.lane.b32.xlu0 %v1274_v20, %s5747_s20 }
 0x3cf   : > { %v1276_v17 = vpop.permute.xlu1 %1275  ;;  %v1268_v18 = vpop.permute.xlu0 %1267 }
 0x3d0   : > { %1523 = vrot.lane.b32.xlu0 %v1308_v7, %s5747_s20  ;;  %v1304_v35 = vsel %vm1281_vm8, %v1268_v18, %v4544_v44 }
 0x3d3   : > { %v1266_v9 = vpop.permute.xlu1 %1265  ;;  %v4588_v60 = vpop.permute.xlu0 %1259 }
 0x3d4   : > { %1509 = vrot.lane.b32.xlu1 %v1266_v9, %s5747_s20  ;;  %1515 = vrot.lane.b32.xlu0 %v1305_v57, %s5747_s20  ;;  %v1290_v57 = vsel %vm1281_vm8, %v4577_v36, %v4510_v38  ;;  %v1306_v38 = vsel %vm1281_vm8, %v1274_v20, %v1276_v17 }
 0x3d7   : > { %v4595_v28 = vpop.permute.xlu1 %1257  ;;  %v4597_v13 = vpop.permute.xlu0 %1251 }
 0x3d8   : > { %1501 = vrot.lane.b32.xlu1 %v4595_v28, %s5747_s20  ;;  %1507 = vrot.lane.b32.xlu0 %v1302_v63, %s5747_s20 }
 0x3db   : > { %v4605_v61 = vpop.permute.xlu1 %1249  ;;  %v4607_v30 = vpop.permute.xlu0 %1243 }
 0x3dc   : > { %1493 = vrot.lane.b32.xlu1 %v4605_v61, %s5747_s20  ;;  %1499 = vrot.lane.b32.xlu0 %v1299_v34, %s5747_s20  ;;  %v1307_v34 = vsel %vm1281_vm8, %v1276_v17, %v4534_v59 }
 0x3df   : > { %v4615_v62 = vpop.permute.xlu1 %1241  ;;  %v4617_v37 = vpop.permute.xlu0 %1235 }
 0x3e0   : > { %1485 = vrot.lane.b32.xlu1 %v4615_v62, %s5747_s20  ;;  %1491 = vrot.lane.b32.xlu0 %v1296_v55, %s5747_s20 }
 0x3e3   : > { %v4625_v22 = vpop.permute.xlu1 %1233  ;;  %v4627_v24 = vpop.permute.xlu0 %1227 }
 0x3e4   : > { %1477 = vrot.lane.b32.xlu1 %v4625_v22, %s5747_s20  ;;  %1483 = vrot.lane.b32.xlu0 %v1293_v6, %s5747_s20 }
 0x3e7   : > { %v4635_v7 = vpop.permute.xlu1 %1225  ;;  %v4637_v29 = vpop.permute.xlu0 %1219 }
 0x3e8   : > { %1469 = vrot.lane.b32.xlu1 %v4635_v7, %s5747_s20  ;;  %1475 = vrot.lane.b32.xlu0 %v1290_v57, %s5747_s20 }
 0x3eb   : > { %v4645_v63 = vpop.permute.xlu1 %1217  ;;  %v1448_v14 = vpop.permute.xlu0 %1447 }
 0x3ec   : > { %1461 = vrot.lane.b32.xlu1 %v4645_v63, %s5747_s20  ;;  %1521 = vrot.lane.b32.xlu0 %v1307_v34, %s5747_s20  ;;  %v1571_v34 = vsel %vm1525_vm9, %v4426_v16, %v1448_v14 }
 0x3ef   : > { %v1450_v55 = vpop.permute.xlu1 %1449  ;;  %v1442_v6 = vpop.permute.xlu0 %1441 }
 0x3f0   : > { %1519 = vrot.lane.b32.xlu1 %v1306_v38, %s5747_s20  ;;  %1513 = vrot.lane.b32.xlu0 %v1304_v35, %s5747_s20  ;;  %v1572_v57 = vsel %vm1525_vm9, %v1448_v14, %v1450_v55  ;;  %v1573_v59 = vsel %vm1525_vm9, %v1450_v55, %v4546_v23  ;;  %v1570_v44 = vsel %vm1525_vm9, %v1442_v6, %v4559_v11 }
 0x3f1   : > { %1707 = vmatprep.subr.mxu0 %v1572_v57  ;;  %1785 = vmatpush1.msra.mxu1 %v1573_v59  ;;  %v1303_v35 = vsel %vm1281_vm8, %v1266_v9, %v1268_v18  ;;  %v1301_v23 = vsel %vm1281_vm8, %v4588_v60, %v4557_v2  ;;  %v1300_v9 = vsel %vm1281_vm8, %v4595_v28, %v4588_v60 }
 0x3f2   : > { %1708 = vmatpush1.msra.mxu0 %v1571_v34  ;;  %1786 = vmatprep.subr.mxu1 %v4559_v11  ;;  %v1298_v55 = vsel %vm1281_vm8, %v4597_v13, %v4565_v5  ;;  %v1297_v5 = vsel %vm1281_vm8, %v4605_v61, %v4597_v13  ;;  %v1295_v38 = vsel %vm1281_vm8, %v4607_v30, %v4569_v52 }
 0x3f3   : > { %v1440_v20 = vpop.permute.xlu1 %1439  ;;  %1787 = vmatpush1.msra.mxu1 %v1570_v44  ;;  %v1434_v17 = vpop.permute.xlu0 %1433  ;;  %v1294_v52 = vsel %vm1281_vm8, %v4615_v62, %v4607_v30  ;;  %v1292_v59 = vsel %vm1281_vm8, %v4617_v37, %v4573_v33  ;;  %v1291_v33 = vsel %vm1281_vm8, %v4625_v22, %v4617_v37  ;;  %v1289_v44 = vsel %vm1281_vm8, %v4627_v24, %v4577_v36  ;;  %v1310_v37 = vld [vmem:[%s5659_s4 + $0x8] sm:$0xff] }
 0x3f4   : > { %1511 = vrot.lane.b32.xlu1 %v1303_v35, %s5747_s20  ;;  %1505 = vrot.lane.b32.xlu0 %v1301_v23, %s5747_s20  ;;  %v1569_v16 = vsel %vm1525_vm9, %v1440_v20, %v1442_v6  ;;  %v1567_v14 = vsel %vm1525_vm9, %v1434_v17, %v4567_v32  ;;  %v1568_v11 = vsel %vm1525_vm9, %v4364_v39, %v1440_v20 }
 0x3f5   : > { %1788 = vmatprep.subr.mxu1 %v4567_v32  ;;  %1709 = vmatprep.subr.mxu0 %v1569_v16  ;;  %v1287_v16 = vsel %vm1281_vm8, %v4581_v12, %v4522_v31 }
 0x3f6   : > { %1789 = vmatpush1.msra.mxu1 %v1567_v14  ;;  %1710 = vmatpush1.msra.mxu0 %v1568_v11  ;;  %v1285_v14 = vsel %vm1281_vm8, %v4645_v63, %v4637_v29 }
 0x3f7   : > { %1790 = vmatprep.subr.mxu1 %v4571_v0  ;;  %v1432_v2 = vpop.permute.xlu1 %1431  ;;  %v1426_v18 = vpop.permute.xlu0 %1425  ;;  %3348 = vmatprep.mubr.msk.f32.mxu0 %vm5770_vm10, %v1310_v37  ;;  %vm5789_vm10 = vcmask 171008  }
 0x3f8   : > { %1503 = vrot.lane.b32.xlu1 %v1300_v9, %s5747_s20  ;;  %1497 = vrot.lane.b32.xlu0 %v1298_v55, %s5747_s20  ;;  %v1566_v39 = vsel %vm1525_vm9, %v1432_v2, %v1434_v17  ;;  %v1564_v32 = vsel %vm1525_vm9, %v1426_v18, %v4571_v0  ;;  %v1565_v6 = vsel %vm1525_vm9, %v4378_v58, %v1432_v2 }
 0x3f9   : > { %1711 = vmatprep.subr.mxu0 %v1566_v39  ;;  %1791 = vmatpush1.msra.mxu1 %v1564_v32  ;;  %v1288_v17 = vsel %vm1281_vm8, %v4635_v7, %v4627_v24 }
 0x3fa   : > { %1712 = vmatpush1.msra.mxu0 %v1565_v6  ;;  %1792 = vmatprep.subr.mxu1 %v4575_v15 }
 0x3fb   : > { %v1424_v60 = vpop.permute.xlu1 %1423  ;;  %v1418_v28 = vpop.permute.xlu0 %1417  ;;  %3350 = vmatprep.mubr.msk.f32.mxu1 %vm5771_vm11, %v1310_v37  ;;  %vm5790_vm11 = vmmov %vm5789_vm10 }
 0x3fc   : > { %1495 = vrot.lane.b32.xlu1 %v1297_v5, %s5747_s20  ;;  %1489 = vrot.lane.b32.xlu0 %v1295_v38, %s5747_s20  ;;  %v1563_v58 = vsel %vm1525_vm9, %v1424_v60, %v1426_v18  ;;  %v1561_v0 = vsel %vm1525_vm9, %v1418_v28, %v4575_v15  ;;  %v1562_v57 = vsel %vm1525_vm9, %v4398_v27, %v1424_v60 }
 0x3fd   : > { %1713 = vmatprep.subr.mxu0 %v1563_v58  ;;  %1793 = vmatpush1.msra.mxu1 %v1561_v0 }
 0x3fe   : > { %1714 = vmatpush1.msra.mxu0 %v1562_v57  ;;  %1794 = vmatprep.subr.mxu1 %v4579_v8 }
 0x3ff   : > { %v1416_v13 = vpop.permute.xlu1 %1415  ;;  %v1410_v61 = vpop.permute.xlu0 %1409 }
 0x400   : > { %1487 = vrot.lane.b32.xlu1 %v1294_v52, %s5747_s20  ;;  %1481 = vrot.lane.b32.xlu0 %v1292_v59, %s5747_s20  ;;  %v1560_v27 = vsel %vm1525_vm9, %v1416_v13, %v1418_v28  ;;  %v1558_v15 = vsel %vm1525_vm9, %v1410_v61, %v4579_v8  ;;  %v1559_v34 = vsel %vm1525_vm9, %v4412_v45, %v1416_v13 }
 0x401   : > { %1715 = vmatprep.subr.mxu0 %v1560_v27  ;;  %1795 = vmatpush1.msra.mxu1 %v1558_v15 }
 0x402   : > { %1716 = vmatpush1.msra.mxu0 %v1559_v34  ;;  %1796 = vmatprep.subr.mxu1 %v4322_v48  ;;  %v5774_v34 = vld [vmem:[#allocation18_spill] sm:$0xff] }
 0x403   : > { %v1408_v30 = vpop.permute.xlu1 %1407  ;;  %v1402_v62 = vpop.permute.xlu0 %1401 }
 0x404   : > { %1479 = vrot.lane.b32.xlu1 %v1291_v33, %s5747_s20  ;;  %1473 = vrot.lane.b32.xlu0 %v1289_v44, %s5747_s20  ;;  %v1557_v45 = vsel %vm1525_vm9, %v1408_v30, %v1410_v61  ;;  %v1555_v8 = vsel %vm1525_vm9, %v1402_v62, %v4322_v48  ;;  %v1556_v20 = vsel %vm1525_vm9, %v4424_v47, %v1408_v30 }
 0x405   : > { %1717 = vmatprep.subr.mxu0 %v1557_v45  ;;  %1797 = vmatpush1.msra.mxu1 %v1555_v8  ;;  %v1286_v48 = vsel %vm1281_vm8, %v4637_v29, %v4581_v12 }
 0x406   : > { %1718 = vmatpush1.msra.mxu0 %v1556_v20  ;;  %1798 = vmatprep.subr.mxu1 %v4334_v50 }
 0x407   : > { %v1400_v36 = vpop.permute.xlu1 %1399  ;;  %v1394_v22 = vpop.permute.xlu0 %1393 }
 0x408   : > { %1471 = vrot.lane.b32.xlu1 %v1288_v17, %s5747_s20  ;;  %1465 = vrot.lane.b32.xlu0 %v1286_v48, %s5747_s20  ;;  %v1554_v47 = vsel %vm1525_vm9, %v1400_v36, %v1402_v62  ;;  %v1552_v35 = vsel %vm1525_vm9, %v1394_v22, %v4334_v50  ;;  %v1553_v24 = vsel %vm1525_vm9, %v4436_v49, %v1400_v36  ;;  %v5776_v62 = vld [vmem:[#allocation8_spill] sm:$0xff] }
 0x409   : > { %1719 = vmatprep.subr.mxu0 %v1554_v47  ;;  %1799 = vmatpush1.msra.mxu1 %v1552_v35 }
 0x40a   : > { %1720 = vmatpush1.msra.mxu0 %v1553_v24  ;;  %1800 = vmatprep.subr.mxu1 %v4346_v25 }
 0x40b   : > { %v1392_v7 = vpop.permute.xlu1 %1391  ;;  %v1386_v23 = vpop.permute.xlu0 %1385 }
 0x40c   : > { %1467 = vrot.lane.b32.xlu0 %v1287_v16, %s5747_s20  ;;  %1463 = vrot.lane.b32.xlu1 %v1285_v14, %s5747_s20  ;;  %v1551_v50 = vsel %vm1525_vm9, %v1392_v7, %v1394_v22  ;;  %v1549_v49 = vsel %vm1525_vm9, %v1386_v23, %v4346_v25  ;;  %v1550_v11 = vsel %vm1525_vm9, %v4448_v1, %v1392_v7  ;;  %v5772_v1 = vld [vmem:[#allocation17_spill] sm:$0xff] }
 0x40d   : > { %1721 = vmatprep.subr.mxu0 %v1551_v50  ;;  %1801 = vmatpush1.msra.mxu1 %v1549_v49  ;;  %v1284_v2 = vsel %vm1281_vm8, %v5768_v10, %v5772_v1  ;;  %v1313_v10 = vld [vmem:[%s5660_s5] sm:$0xff]  ;;  %vm5787_vm8 = vmmov %vm5784_vm14 }
 0x40e   : > { %1722 = vmatpush1.msra.mxu0 %v1550_v11  ;;  %1802 = vmatprep.subr.mxu1 %v4356_v54 }
 0x40f   : > { %v1384_v31 = vpop.permute.xlu1 %1383  ;;  %v1378_v12 = vpop.permute.xlu0 %1377 }
 0x410   : > { %1453 = vrot.lane.b32.xlu1 %v5769_v3, %s5747_s20  ;;  %v1548_v29 = vsel %vm1525_vm9, %v1384_v31, %v1386_v23  ;;  %v1546_v63 = vsel %vm1525_vm9, %v1378_v12, %v4356_v54  ;;  %v1547_v25 = vsel %vm1525_vm9, %v4460_v51, %v1384_v31  ;;  %v1314_v3 = vld [vmem:[%s5660_s5 + $0x8] sm:$0xff] }
 0x411   : > { %1723 = vmatprep.subr.mxu0 %v1548_v29  ;;  %1803 = vmatpush1.msra.mxu1 %v1546_v63 }
 0x412   : > { %1724 = vmatpush1.msra.mxu0 %v1547_v25  ;;  %1804 = vmatprep.subr.mxu1 %v4368_v56 }
 0x413   : > { %v1376_v18 = vpop.permute.xlu1 %1375  ;;  %v1370_v9 = vpop.permute.xlu0 %1369  ;;  %1322 = vperm.xlu0 %3398, %v1314_v3  }
 0x414   : > { %1459 = vrot.lane.b32.xlu1 %v1284_v2, %s5747_s20  ;;  %v1545_v54 = vsel %vm1525_vm9, %v1376_v18, %v1378_v12  ;;  %v1543_v51 = vsel %vm1525_vm9, %v1370_v9, %v4368_v56  ;;  %v1544_v55 = vsel %vm1525_vm9, %v4472_v4, %v1376_v18  ;;  %s5786_s20 = smov 107  }
 0x415   : > { %1725 = vmatprep.subr.mxu0 %v1545_v54  ;;  %1805 = vmatpush1.msra.mxu1 %v1543_v51 }
 0x416   : > { %1726 = vmatpush1.msra.mxu0 %v1544_v55  ;;  %1806 = vmatprep.subr.mxu1 %v4380_v40 }
 0x417   : > { %v1368_v39 = vpop.permute.xlu1 %1367  ;;  %v1362_v32 = vpop.permute.xlu0 %1361 }
 0x418   : > { %1317 = vperm.xlu1 %3397, %v1313_v10   ;;  %v1542_v6 = vsel %vm1525_vm9, %v1368_v39, %v1370_v9  ;;  %v1540_v56 = vsel %vm1525_vm9, %v1362_v32, %v4380_v40  ;;  %v1541_v4 = vsel %vm1525_vm9, %v4484_v53, %v1368_v39 }
 0x419   : > { %1727 = vmatprep.subr.mxu0 %v1542_v6  ;;  %1807 = vmatpush1.msra.mxu1 %v1540_v56 }
 0x41a   : > { %1728 = vmatpush1.msra.mxu0 %v1541_v4  ;;  %1808 = vmatprep.subr.mxu1 %v4390_v41 }
 0x41b   : > { %v1360_v60 = vpop.permute.xlu1 %1359  ;;  %v1354_v28 = vpop.permute.xlu0 %1353 }
 0x41c   : > { %v1539_v5 = vsel %vm1525_vm9, %v1360_v60, %v1362_v32  ;;  %v1537_v38 = vsel %vm1525_vm9, %v1354_v28, %v4390_v41  ;;  %v1538_v58 = vsel %vm1525_vm9, %v4496_v26, %v1360_v60 }
 0x41d   : > { %1729 = vmatprep.subr.mxu0 %v1539_v5  ;;  %1809 = vmatpush1.msra.mxu1 %v1537_v38 }
 0x41e   : > { %1730 = vmatpush1.msra.mxu0 %v1538_v58  ;;  %1810 = vmatprep.subr.mxu1 %v4402_v43 }
 0x41f   : > { %v1352_v40 = vpop.permute.xlu1 %1351  ;;  %v1346_v53 = vpop.permute.xlu0 %1345 }
 0x420   : > { %v1536_v0 = vsel %vm1525_vm9, %v1352_v40, %v1354_v28  ;;  %v1534_v57 = vsel %vm1525_vm9, %v1346_v53, %v4402_v43  ;;  %v1535_v13 = vsel %vm1525_vm9, %v4508_v42, %v1352_v40  ;;  %v5773_v43 = vld [vmem:[#allocation10_spill] sm:$0xff] }
 0x421   : > { %1731 = vmatprep.subr.mxu0 %v1536_v0  ;;  %1811 = vmatpush1.msra.mxu1 %v1534_v57  ;;  %v1528_v42 = vsel %vm1525_vm9, %v4312_v46, %v5773_v43 }
 0x422   : > { %1732 = vmatpush1.msra.mxu0 %v1535_v13  ;;  %1812 = vmatprep.subr.mxu1 %v4414_v19 }
 0x423   : > { %v1344_v41 = vpop.permute.xlu1 %1343  ;;  %v1338_v26 = vpop.permute.xlu0 %1337 }
 0x424   : > { %v1533_v61 = vsel %vm1525_vm9, %v1344_v41, %v1346_v53  ;;  %v1531_v52 = vsel %vm1525_vm9, %v1338_v26, %v4414_v19  ;;  %v1532_v59 = vsel %vm1525_vm9, %v4520_v21, %v1344_v41  ;;  %v5775_v19 = vld [vmem:[#allocation12_spill] sm:$0xff] }
 0x425   : > { %1733 = vmatprep.subr.mxu0 %v1533_v61  ;;  %1813 = vmatpush1.msra.mxu1 %v1531_v52  ;;  %v1527_v21 = vsel %vm1525_vm9, %v5775_v19, %v4312_v46  ;;  %v1526_v33 = vsel %vm1525_vm9, %v5776_v62, %v5775_v19  ;;  %v1309_v19 = vld [vmem:[%s5659_s4] sm:$0xff]  ;;  %v1312_v62 = vld [vmem:[%s5659_s4 + $0x18] sm:$0xff] }
 0x426   : > { %1734 = vmatpush1.msra.mxu0 %v1532_v59  ;;  %1814 = vmatprep.subr.mxu1 %v5773_v43 }
 0x427   : > { %v1336_v27 = vpop.permute.xlu1 %1335  ;;  %1815 = vmatpush1.msra.mxu1 %v1528_v42  ;;  %v4827_v44 = vpop.permute.xlu0 %1457 }
 0x428   : > { %v1530_v15 = vsel %vm1525_vm9, %v1336_v27, %v1338_v26  ;;  %v1529_v30 = vsel %vm1525_vm9, %v5774_v34, %v1336_v27 }
 0x429   : > { %1735 = vmatprep.subr.mxu0 %v1530_v15 }
 0x42a   : > { %1736 = vmatpush1.msra.mxu0 %v1529_v30 }
 0x42b   : > { %1737 = vmatprep.subr.mxu0 %v1527_v21  ;;  %v4829_v8 = vpop.permute.xlu1 %1455 }
 0x42c   : > { %1738 = vmatpush1.msra.mxu0 %v1526_v33  ;;  %v1575_v34 = vsel %vm1525_vm9, %v4829_v8, %v4827_v44 }
 0x43e   : > { %v1518_v45 = vpop.permute.xlu0 %1517 }
 0x442   : > { %v1524_v20 = vpop.permute.xlu0 %1523 }
 0x443   : > { %1830 = vmatprep.subr.mxu1 %v1524_v20 }
 0x446   : > { %v1510_v37 = vpop.permute.xlu1 %1509  ;;  %v1516_v36 = vpop.permute.xlu0 %1515 }
 0x44a   : > { %v1502_v22 = vpop.permute.xlu1 %1501  ;;  %v1508_v17 = vpop.permute.xlu0 %1507 }
 0x44e   : > { %v1494_v48 = vpop.permute.xlu1 %1493  ;;  %v1500_v47 = vpop.permute.xlu0 %1499 }
 0x452   : > { %v1486_v46 = vpop.permute.xlu1 %1485  ;;  %v1492_v35 = vpop.permute.xlu0 %1491 }
 0x456   : > { %v1478_v24 = vpop.permute.xlu1 %1477  ;;  %v1484_v7 = vpop.permute.xlu0 %1483 }
 0x45a   : > { %v4831_v23 = vpop.permute.xlu1 %1469  ;;  %v1476_v16 = vpop.permute.xlu0 %1475 }
 0x45e   : > { %v4833_v14 = vpop.permute.xlu1 %1461  ;;  %v1522_v50 = vpop.permute.xlu0 %1521 }
 0x45f   : > { %v1600_v49 = vsel %vm1525_vm9, %v1522_v50, %v1524_v20 }
 0x460   : > { %1831 = vmatpush2.msra.mxu1 %v1600_v49 }
 0x461   : > { %1832 = vmatprep.subr.mxu1 %v1516_v36 }
 0x462   : > { %v1520_v11 = vpop.permute.xlu1 %1519  ;;  %v1514_v31 = vpop.permute.xlu0 %1513 }
 0x463   : > { %v1599_v12 = vsel %vm1525_vm9, %v1520_v11, %v1522_v50  ;;  %v1597_v29 = vsel %vm1525_vm9, %v1514_v31, %v1516_v36  ;;  %v1598_v63 = vsel %vm1525_vm9, %v1518_v45, %v1520_v11  ;;  %v1311_v45 = vld [vmem:[%s5659_s4 + $0x10] sm:$0xff] }
 0x464   : > { %1753 = vmatprep.subr.mxu0 %v1599_v12  ;;  %1833 = vmatpush2.msra.mxu1 %v1597_v29 }
 0x465   : > { %1754 = vmatpush2.msra.mxu0 %v1598_v63  ;;  %1834 = vmatprep.subr.mxu1 %v1508_v17 }
 0x466   : > { %v1512_v25 = vpop.permute.xlu1 %1511  ;;  %v1506_v1 = vpop.permute.xlu0 %1505 }
 0x467   : > { %v1596_v2 = vsel %vm1525_vm9, %v1512_v25, %v1514_v31  ;;  %v1594_v18 = vsel %vm1525_vm9, %v1506_v1, %v1508_v17  ;;  %v1595_v9 = vsel %vm1525_vm9, %v1510_v37, %v1512_v25  ;;  %v5781_v31 = vld [vmem:[#allocation4_spill] sm:$0xff] }
 0x468   : > { %1755 = vmatprep.subr.mxu0 %v1596_v2  ;;  %1835 = vmatpush2.msra.mxu1 %v1594_v18  ;;  %v5782_v18 = vld [vmem:[#allocation5_spill] sm:$0xff] }
 0x469   : > { %1756 = vmatpush2.msra.mxu0 %v1595_v9  ;;  %1836 = vmatprep.subr.mxu1 %v1500_v47 }
 0x46a   : > { %v1504_v3 = vpop.permute.xlu1 %1503  ;;  %v1498_v54 = vpop.permute.xlu0 %1497 }
 0x46b   : > { %v1593_v51 = vsel %vm1525_vm9, %v1504_v3, %v1506_v1  ;;  %v1591_v55 = vsel %vm1525_vm9, %v1498_v54, %v1500_v47  ;;  %v1592_v10 = vsel %vm1525_vm9, %v1502_v22, %v1504_v3 }
 0x46c   : > { %1757 = vmatprep.subr.mxu0 %v1593_v51  ;;  %1837 = vmatpush2.msra.mxu1 %v1591_v55 }
 0x46d   : > { %1758 = vmatpush2.msra.mxu0 %v1592_v10  ;;  %1838 = vmatprep.subr.mxu1 %v1492_v35 }
 0x46e   : > { %v1496_v39 = vpop.permute.xlu1 %1495  ;;  %v1490_v32 = vpop.permute.xlu0 %1489 }
 0x46f   : > { %v1590_v6 = vsel %vm1525_vm9, %v1496_v39, %v1498_v54  ;;  %v1588_v56 = vsel %vm1525_vm9, %v1490_v32, %v1492_v35  ;;  %v1589_v4 = vsel %vm1525_vm9, %v1494_v48, %v1496_v39  ;;  %v5783_v39 = vld [vmem:[#allocation6_spill] sm:$0xff] }
 0x470   : > { %1759 = vmatprep.subr.mxu0 %v1590_v6  ;;  %1839 = vmatpush2.msra.mxu1 %v1588_v56 }
 0x471   : > { %1760 = vmatpush2.msra.mxu0 %v1589_v4  ;;  %1840 = vmatprep.subr.mxu1 %v1484_v7 }
 0x472   : > { %v1488_v60 = vpop.permute.xlu1 %1487  ;;  %v1482_v28 = vpop.permute.xlu0 %1481 }
 0x473   : > { %v1587_v5 = vsel %vm1525_vm9, %v1488_v60, %v1490_v32  ;;  %v1585_v38 = vsel %vm1525_vm9, %v1482_v28, %v1484_v7  ;;  %v1586_v58 = vsel %vm1525_vm9, %v1486_v46, %v1488_v60  ;;  %v5780_v7 = vld [vmem:[#allocation7_spill] sm:$0xff] }
 0x474   : > { %1761 = vmatprep.subr.mxu0 %v1587_v5  ;;  %1841 = vmatpush2.msra.mxu1 %v1585_v38 }
 0x475   : > { %1762 = vmatpush2.msra.mxu0 %v1586_v58  ;;  %1842 = vmatprep.subr.mxu1 %v1476_v16 }
 0x476   : > { %v1480_v40 = vpop.permute.xlu1 %1479  ;;  %v1474_v53 = vpop.permute.xlu0 %1473 }
 0x477   : > { %v1584_v0 = vsel %vm1525_vm9, %v1480_v40, %v1482_v28  ;;  %v1582_v57 = vsel %vm1525_vm9, %v1474_v53, %v1476_v16  ;;  %v1583_v13 = vsel %vm1525_vm9, %v1478_v24, %v1480_v40 }
 0x478   : > { %1763 = vmatprep.subr.mxu0 %v1584_v0  ;;  %1843 = vmatpush2.msra.mxu1 %v1582_v57 }
 0x479   : > { %1764 = vmatpush2.msra.mxu0 %v1583_v13 }
 0x47a   : > { %v1472_v41 = vpop.permute.xlu1 %1471  ;;  %v1466_v26 = vpop.permute.xlu0 %1465 }
 0x47b   : > { %v1581_v61 = vsel %vm1525_vm9, %v1472_v41, %v1474_v53  ;;  %v1580_v52 = vsel %vm1525_vm9, %v4831_v23, %v1472_v41 }
 0x47c   : > { %1765 = vmatprep.subr.mxu0 %v1581_v61 }
 0x47d   : > { %1766 = vmatpush2.msra.mxu0 %v1580_v52 }
 0x47e   : > { %v1464_v59 = vpop.permute.xlu1 %1463  ;;  %v1468_v43 = vpop.permute.xlu0 %1467 }
 0x47f   : > { %1844 = vmatprep.subr.mxu1 %v1468_v43  ;;  %v1578_v42 = vsel %vm1525_vm9, %v1464_v59, %v1466_v26  ;;  %v1579_v27 = vsel %vm1525_vm9, %v1466_v26, %v1468_v43  ;;  %v1577_v15 = vsel %vm1525_vm9, %v4833_v14, %v1464_v59 }
 0x480   : > { %1767 = vmatprep.subr.mxu0 %v1578_v42  ;;  %1845 = vmatpush2.msra.mxu1 %v1579_v27 }
 0x481   : > { %1768 = vmatpush2.msra.mxu0 %v1577_v15 }
 0x482   : > { %v1454_v30 = vpop.permute.xlu1 %1453  ;;  %1769 = vmatprep.subr.mxu0 %v1575_v34 }
 0x483   : > { %v1574_v21 = vsel %vm1525_vm9, %v1454_v30, %v4829_v8  ;;  %v4879_v8 = vld [vmem:[#allocation2] sm:$0xff] }
 0x484   : > { %1770 = vmatpush2.msra.mxu0 %v1574_v21  ;;  %v3399_v37 = vpack.i.bf16 %v4879_v8, %v4879_v8 }
 0x485   : > { %1772 = vmatmul.mubr.f32.vlgmr.msra.gmra.mxu0 %v1309_v19 }
 0x486   : > { %v1460_v33 = vpop.permute.xlu1 %1459  ;;  %3349 = vmatprep.mubr.msk.f32.mxu0 %vm5777_vm12, %v1312_v62  ;;  %3400 = vrot.lane.b32.xlu0 %v3399_v37, %s5733_s15  ;;  %vm5791_vm12 = vmmov %vm5789_vm10 }
 0x487   : > { %1846 = vmatprep.subr.mxu1 %v1460_v33  ;;  %v1576_v20 = vsel %vm1525_vm9, %v4827_v44, %v1460_v33  ;;  %3405 = vrot.lane.b32.xlu1 %v3399_v37, %s5736_s28  ;;  %vm5788_vm9 = vmmov %vm5787_vm8 }
 0x488   : > { %1847 = vmatpush2.msra.mxu1 %v1576_v20 }
 0x489   : > { %1849 = vmatmul.mubr.f32.vlgmr.msra.gmra.mxu1 %v1309_v19  ;;  %1778 = vmatmul.mubr.f32.gmra.mxu0 %v1311_v45 }
 0x48a   : > { %3351 = vmatprep.mubr.msk.f32.mxu1 %vm5778_vm13, %v1312_v62  ;;  %3410 = vrot.lane.b32.xlu0 %v3399_v37, %s5730_s26  ;;  %vm5792_vm13 = vmmov %vm5789_vm10 }
 0x48d   : > { %1855 = vmatmul.mubr.f32.gmra.mxu1 %v1311_v45 }
 0x48e   : > { %3415 = vrot.lane.b32.xlu0 %v3399_v37, %s5779_s23  ;;  %v1323_v48 = vpop.permute.xlu0 %1322 }
 0x493   : > { %v1318_v44 = vpop.permute.xlu1 %1317 }
 0x4f8   : > { %v4959_v58 = vpop.permute.xlu0 %3400 }
 0x4f9   : > { %v4970_v0 = vpop.permute.xlu1 %3405 }
 0x4fc   : > { %v4964_v53 = vpop.permute.xlu0 %3410 }
 0x500   : > { %v4972_v57 = vpop.permute.xlu0 %3415 }
 0x545   : > { %v1773_v36 = vpop.f32.mrf.mxu0 }
 0x546   : > { %v1774_v22 = vadd.f32 %v1773_v36, %v1318_v44 }
 0x547   : > { %v1775_v17 = vpop.f32.mrf.mxu0 }
 0x548   : > { %v1861_v47 = vmax.f32 %v1774_v22, 0.0  ;;  %v1776_v46 = vadd.f32 %v1775_v17, %v1318_v44 }
 0x549   : > { %v1850_v35 = vpop.f32.mrf.mxu1  ;;  %v1779_v24 = vpop.f32.mrf.mxu0 }
 0x54a   : > { %v1869_v23 = vmul.f32 %v1861_v47, %v5780_v7  ;;  %v1862_v16 = vmax.f32 %v1776_v46, 0.0  ;;  %v1851_v14 = vadd.f32 %v1850_v35, %v1318_v44  ;;  %v1780_v50 = vadd.f32 %v1779_v24, %v1323_v48 }
 0x54b   : > { %v1852_v49 = vpop.f32.mrf.mxu1  ;;  %v1781_v11 = vpop.f32.mrf.mxu0 }
 0x54c   : > { %1877 = vst [vmem:[#allocation3 + $0x8] sm:$0xff] %v1869_v23  ;;  %v1870_v12 = vmul.f32 %v1862_v16, %v5781_v31  ;;  %v1863_v29 = vmax.f32 %v1851_v14, 0.0  ;;  %v1853_v63 = vadd.f32 %v1852_v49, %v1318_v44  ;;  %v1782_v25 = vadd.f32 %v1781_v11, %v1323_v48 }
 0x54d   : > { %v1856_v1 = vpop.f32.mrf.mxu1  ;;  %v1865_v2 = vmax.f32 %v1780_v50, 0.0  ;;  %v3413_v11 = vunpack.i.h.bf16 %v4964_v53 }
 0x54e   : > { %1878 = vst [vmem:[#allocation3 + $0x10] sm:$0xff] %v1870_v12  ;;  %v1871_v9 = vmul.f32 %v1863_v29, %v5782_v18  ;;  %v1864_v3 = vmax.f32 %v1853_v63, 0.0  ;;  %v1857_v54 = vadd.f32 %v1856_v1, %v1323_v48  ;;  %v1866_v51 = vmax.f32 %v1782_v25, 0.0 }
 0x54f   : > { %v1858_v55 = vpop.f32.mrf.mxu1  ;;  %v4891_v10 = vmul.f32 %v1865_v2, %v5780_v7 }
 0x550   : > { %1879 = vst [vmem:[#allocation3 + $0x18] sm:$0xff] %v1871_v9  ;;  %v1872_v32 = vmul.f32 %v1864_v3, %v5783_v39  ;;  %1971 = vrot.lane.b32.xlu1 %v1871_v9, %s5733_s15  ;;  %2063 = vrot.lane.b32.xlu0 %v1871_v9, %s5743_s24  ;;  %v1859_v6 = vadd.f32 %v1858_v55, %v1323_v48  ;;  %v1867_v56 = vmax.f32 %v1857_v54, 0.0  ;;  %v3403_v48 = vunpack.i.h.bf16 %v4959_v58 }
 0x551   : > { %v4897_v4 = vmul.f32 %v1866_v51, %v5781_v31 }
 0x552   : > { %1880 = vst.msk [vmem:[#allocation3 + $0x20] sm:$0xff] %vm5784_vm14, %v1872_v32  ;;  %v1868_v60 = vmax.f32 %v1859_v6, 0.0  ;;  %v1875_v28 = vmul.f32 %v1867_v56, %v5782_v18  ;;  %vm5793_vm14 = vmmov %vm5789_vm10 }
 0x554   : > { %2041 = vrot.lane.b32.xlu0 %v1871_v9, %s5731_s27  ;;  %1917 = vrot.lane.b32.xlu1 %v1871_v9, %s5730_s26  ;;  %v1876_v5 = vmul.f32 %v1868_v60, %v5783_v39 }
 0x556   : > { %1884 = vst.msk [vmem:[#allocation3 + $0x48] sm:$0xff] %vm5785_vm15, %v1876_v5  ;;  %vm5794_vm15 = vmmov %vm5789_vm10 }
 0x558   : > { %2019 = vrot.lane.b32.xlu0 %v1871_v9, %s5732_s25  ;;  %2085 = vrot.lane.b32.xlu1 %v1871_v9, %s3429_s19 }
 0x559   : > { %v1897_v38 = vld [vmem:[#allocation3 + $0x20] sm:$0xff] }
 0x55c   : > { %1997 = vrot.lane.b32.xlu0 %v1871_v9, %s5786_s20  ;;  %1967 = vrot.lane.b32.xlu1 %v1869_v23, %s5733_s15 }
 0x55d   : > { %v1902_v40 = vld [vmem:[#allocation3 + $0x48] sm:$0xff] }
 0x560   : > { %1913 = vrot.lane.b32.xlu1 %v1869_v23, %s5730_s26  ;;  %1939 = vrot.lane.b32.xlu0 %v1871_v9, %s5736_s28 }
 0x564   : > { %2081 = vrot.lane.b32.xlu1 %v1869_v23, %s3429_s19  ;;  %2117 = vrot.lane.b32.xlu0 %v1871_v9, %s5779_s23 }
 0x568   : > { %2113 = vrot.lane.b32.xlu1 %v1869_v23, %s5779_s23  ;;  %2059 = vrot.lane.b32.xlu0 %v1869_v23, %s5743_s24 }
 0x56c   : > { %2065 = vrot.lane.b32.xlu1 %v1897_v38, %s5743_s24  ;;  %2037 = vrot.lane.b32.xlu0 %v1869_v23, %s5731_s27 }
 0x570   : > { %2043 = vrot.lane.b32.xlu1 %v1897_v38, %s5731_s27  ;;  %2015 = vrot.lane.b32.xlu0 %v1869_v23, %s5732_s25 }
 0x574   : > { %2021 = vrot.lane.b32.xlu1 %v1897_v38, %s5732_s25  ;;  %1993 = vrot.lane.b32.xlu0 %v1869_v23, %s5786_s20 }
 0x578   : > { %1999 = vrot.lane.b32.xlu1 %v1897_v38, %s5786_s20  ;;  %1935 = vrot.lane.b32.xlu0 %v1869_v23, %s5736_s28  ;;  %v3408_v23 = vunpack.i.h.bf16 %v4970_v0 }
 0x57c   : > { %2087 = vrot.lane.b32.xlu1 %v1897_v38, %s3429_s19  ;;  %1973 = vrot.lane.b32.xlu0 %v1897_v38, %s5733_s15 }
 0x580   : > { %2061 = vrot.lane.b32.xlu1 %v1870_v12, %s5743_s24  ;;  %1969 = vrot.lane.b32.xlu0 %v1870_v12, %s5733_s15 }
 0x584   : > { %2039 = vrot.lane.b32.xlu1 %v1870_v12, %s5731_s27  ;;  %1915 = vrot.lane.b32.xlu0 %v1870_v12, %s5730_s26 }
 0x588   : > { %2017 = vrot.lane.b32.xlu1 %v1870_v12, %s5732_s25  ;;  %2083 = vrot.lane.b32.xlu0 %v1870_v12, %s3429_s19 }
 0x58c   : > { %1995 = vrot.lane.b32.xlu1 %v1870_v12, %s5786_s20  ;;  %2115 = vrot.lane.b32.xlu0 %v1870_v12, %s5779_s23 }
 0x590   : > { %1937 = vrot.lane.b32.xlu1 %v1870_v12, %s5736_s28  ;;  %2049 = vrot.lane.b32.xlu0 %v1875_v28, %s5731_s27 }
 0x594   : > { %2027 = vrot.lane.b32.xlu0 %v1875_v28, %s5732_s25  ;;  %2071 = vrot.lane.b32.xlu1 %v1875_v28, %s5743_s24 }
 0x598   : > { %2005 = vrot.lane.b32.xlu0 %v1875_v28, %s5786_s20  ;;  %1947 = vrot.lane.b32.xlu1 %v1875_v28, %s5736_s28 }
 0x59c   : > { %1981 = vrot.lane.b32.xlu0 %v1875_v28, %s5733_s15  ;;  %1925 = vrot.lane.b32.xlu1 %v1875_v28, %s5730_s26 }
 0x5a0   : > { %2093 = vrot.lane.b32.xlu0 %v1875_v28, %s3429_s19  ;;  %2125 = vrot.lane.b32.xlu1 %v1875_v28, %s5779_s23 }
 0x5a4   : > { %2045 = vrot.lane.b32.xlu0 %v4891_v10, %s5731_s27  ;;  %2067 = vrot.lane.b32.xlu1 %v4891_v10, %s5743_s24 }
 0x5a8   : > { %2023 = vrot.lane.b32.xlu0 %v4891_v10, %s5732_s25  ;;  %1943 = vrot.lane.b32.xlu1 %v4891_v10, %s5736_s28 }
 0x5ac   : > { %2001 = vrot.lane.b32.xlu0 %v4891_v10, %s5786_s20  ;;  %1921 = vrot.lane.b32.xlu1 %v4891_v10, %s5730_s26 }
 0x5b0   : > { %1977 = vrot.lane.b32.xlu0 %v4891_v10, %s5733_s15  ;;  %2121 = vrot.lane.b32.xlu1 %v4891_v10, %s5779_s23 }
 0x5b4   : > { %2089 = vrot.lane.b32.xlu0 %v4891_v10, %s3429_s19  ;;  %2073 = vrot.lane.b32.xlu1 %v1902_v40, %s5743_s24 }
 0x5b8   : > { %1983 = vrot.lane.b32.xlu0 %v1902_v40, %s5733_s15  ;;  %2051 = vrot.lane.b32.xlu1 %v1902_v40, %s5731_s27 }
 0x5bc   : > { %2095 = vrot.lane.b32.xlu0 %v1902_v40, %s3429_s19  ;;  %2029 = vrot.lane.b32.xlu1 %v1902_v40, %s5732_s25 }
 0x5c0   : > { %2069 = vrot.lane.b32.xlu0 %v4897_v4, %s5743_s24  ;;  %2007 = vrot.lane.b32.xlu1 %v1902_v40, %s5786_s20 }
 0x5c2   : > { %v4977_v13 = vpop.permute.xlu1 %1971  ;;  %v4979_v41 = vpop.permute.xlu0 %2063 }
 0x5c4   : > { %1945 = vrot.lane.b32.xlu0 %v4897_v4, %s5736_s28  ;;  %2047 = vrot.lane.b32.xlu1 %v4897_v4, %s5731_s27 }
 0x5c6   : > { %v4985_v26 = vpop.permute.xlu1 %1917  ;;  %v4987_v61 = vpop.permute.xlu0 %2041 }
 0x5c8   : > { %1923 = vrot.lane.b32.xlu0 %v4897_v4, %s5730_s26  ;;  %2025 = vrot.lane.b32.xlu1 %v4897_v4, %s5732_s25 }
 0x5ca   : > { %v4993_v52 = vpop.permute.xlu1 %2085  ;;  %v4995_v59 = vpop.permute.xlu0 %2019 }
 0x5cc   : > { %2123 = vrot.lane.b32.xlu0 %v4897_v4, %s5779_s23  ;;  %2003 = vrot.lane.b32.xlu1 %v4897_v4, %s5786_s20 }
 0x5ce   : > { %v5001_v43 = vpop.permute.xlu1 %1967  ;;  %v5003_v42 = vpop.permute.xlu0 %1997 }
 0x5cf   : > { %v1985_v35 = vsel %vm536_vm5, %v3403_v48, %v5001_v43 }
 0x5d0   : > { %1979 = vrot.lane.b32.xlu1 %v4897_v4, %s5733_s15 }
 0x5d2   : > { %v5007_v27 = vpop.permute.xlu1 %1913  ;;  %v5009_v15 = vpop.permute.xlu0 %1939 }
 0x5d3   : > { %v1927_v63 = vsel %vm505_vm7, %v3413_v11, %v5007_v27 }
 0x5d4   : > { %2091 = vrot.lane.b32.xlu1 %v4897_v4, %s3429_s19 }
 0x5d6   : > { %v5013_v34 = vpop.permute.xlu1 %2081  ;;  %v5015_v30 = vpop.permute.xlu0 %2117 }
 0x5d8   : > { %2149 = vrot.lane.b32.xlu1 %v5009_v15, %s5779_s23 }
 0x5da   : > { %v5019_v19 = vpop.permute.xlu1 %2113  ;;  %v2060_v21 = vpop.permute.xlu0 %2059 }
 0x5db   : > { %2223 = vrot.lane.b32.xlu0 %v2060_v21, %s5779_s23 }
 0x5dc   : > { %2133 = vrot.lane.b32.xlu1 %v4985_v26, %s5779_s23 }
 0x5de   : > { %v2066_v62 = vpop.permute.xlu1 %2065  ;;  %v2038_v33 = vpop.permute.xlu0 %2037 }
 0x5df   : > { %v2077_v45 = vsel %vm585_vm1, %v4979_v41, %v2066_v62  ;;  %2207 = vrot.lane.b32.xlu0 %v2038_v33, %s5779_s23 }
 0x5e0   : > { %2229 = vrot.lane.b32.xlu1 %v2077_v45, %s5779_s23 }
 0x5e2   : > { %v2044_v20 = vpop.permute.xlu1 %2043  ;;  %v2016_v37 = vpop.permute.xlu0 %2015 }
 0x5e3   : > { %v2055_v44 = vsel %vm573_vm2, %v4987_v61, %v2044_v20  ;;  %2191 = vrot.lane.b32.xlu0 %v2016_v37, %s5779_s23 }
 0x5e4   : > { %2213 = vrot.lane.b32.xlu1 %v2055_v44, %s5779_s23 }
 0x5e6   : > { %v2022_v36 = vpop.permute.xlu1 %2021  ;;  %v1994_v22 = vpop.permute.xlu0 %1993 }
 0x5e7   : > { %v2033_v17 = vsel %vm561_vm3, %v4995_v59, %v2022_v36  ;;  %2175 = vrot.lane.b32.xlu0 %v1994_v22, %s5779_s23 }
 0x5e8   : > { %2197 = vrot.lane.b32.xlu1 %v2033_v17, %s5779_s23 }
 0x5ea   : > { %v2000_v47 = vpop.permute.xlu1 %1999  ;;  %v1936_v46 = vpop.permute.xlu0 %1935 }
 0x5eb   : > { %v2011_v24 = vsel %vm549_vm4, %v5003_v42, %v2000_v47  ;;  %2159 = vrot.lane.b32.xlu0 %v1985_v35, %s5779_s23  ;;  %v1949_v50 = vsel %vm517_vm6, %v3408_v23, %v1936_v46 }
 0x5ec   : > { %2181 = vrot.lane.b32.xlu1 %v2011_v24, %s5779_s23 }
 0x5ee   : > { %v5044_v16 = vpop.permute.xlu1 %2087  ;;  %v1974_v14 = vpop.permute.xlu0 %1973 }
 0x5ef   : > { %v1988_v49 = vsel %vm536_vm5, %v4977_v13, %v1974_v14  ;;  %2143 = vrot.lane.b32.xlu0 %v1949_v50, %s5779_s23  ;;  %v3407_v14 = vunpack.i.l.bf16 %v4970_v0 }
 0x5f0   : > { %2165 = vrot.lane.b32.xlu1 %v1988_v49, %s5779_s23 }
 0x5f2   : > { %v2062_v12 = vpop.permute.xlu1 %2061  ;;  %v1970_v29 = vpop.permute.xlu0 %1969 }
 0x5f3   : > { %2127 = vrot.lane.b32.xlu0 %v1927_v63, %s5779_s23  ;;  %v2075_v25 = vsel %vm585_vm1, %v2060_v21, %v2062_v12  ;;  %v2076_v9 = vsel %vm585_vm1, %v2062_v12, %v4979_v41  ;;  %v1986_v38 = vsel %vm536_vm5, %v5001_v43, %v1970_v29  ;;  %v3412_v12 = vunpack.i.l.bf16 %v4964_v53 }
 0x5f4   : > { %2225 = vrot.lane.b32.xlu1 %v2075_v25, %s5779_s23 }
 0x5f6   : > { %v2040_v1 = vpop.permute.xlu1 %2039  ;;  %v1916_v2 = vpop.permute.xlu0 %1915 }
 0x5f7   : > { %2227 = vrot.lane.b32.xlu0 %v2076_v9, %s5779_s23  ;;  %v2053_v3 = vsel %vm573_vm2, %v2038_v33, %v2040_v1  ;;  %v2054_v55 = vsel %vm573_vm2, %v2040_v1, %v4987_v61  ;;  %v1987_v61 = vsel %vm536_vm5, %v1970_v29, %v4977_v13  ;;  %v1929_v33 = vsel %vm505_vm7, %v1916_v2, %v4985_v26 }
 0x5f8   : > { %2209 = vrot.lane.b32.xlu1 %v2053_v3, %s5779_s23  ;;  %v1928_v45 = vsel %vm505_vm7, %v5007_v27, %v1916_v2 }
 0x5fa   : > { %v2018_v54 = vpop.permute.xlu1 %2017  ;;  %v5062_v51 = vpop.permute.xlu0 %2083 }
 0x5fb   : > { %2211 = vrot.lane.b32.xlu0 %v2054_v55, %s5779_s23  ;;  %v2031_v10 = vsel %vm561_vm3, %v2016_v37, %v2018_v54  ;;  %v2032_v56 = vsel %vm561_vm3, %v2018_v54, %v4995_v59  ;;  %v2097_v37 = vsel %vm597_vm0, %v5013_v34, %v5062_v51 }
 0x5fc   : > { %2193 = vrot.lane.b32.xlu1 %v2031_v10, %s5779_s23 }
 0x5fe   : > { %v1996_v32 = vpop.permute.xlu1 %1995  ;;  %v5069_v6 = vpop.permute.xlu0 %2115 }
 0x5ff   : > { %2195 = vrot.lane.b32.xlu0 %v2032_v56, %s5779_s23  ;;  %v2009_v4 = vsel %vm549_vm4, %v1994_v22, %v1996_v32  ;;  %v2010_v5 = vsel %vm549_vm4, %v1996_v32, %v5003_v42 }
 0x600   : > { %2177 = vrot.lane.b32.xlu1 %v2009_v4, %s5779_s23 }
 0x602   : > { %v1938_v60 = vpop.permute.xlu1 %1937  ;;  %v5076_v28 = vpop.permute.xlu0 %2049 }
 0x603   : > { %2179 = vrot.lane.b32.xlu0 %v2010_v5, %s5779_s23  ;;  %v1950_v59 = vsel %vm517_vm6, %v1936_v46, %v1938_v60  ;;  %v1951_v43 = vsel %vm517_vm6, %v1938_v60, %v5009_v15  ;;  %v3402_v46 = vunpack.i.l.bf16 %v4959_v58 }
 0x604   : > { %2161 = vrot.lane.b32.xlu1 %v1986_v38, %s5779_s23 }
 0x606   : > { %v5084_v40 = vpop.permute.xlu1 %2071  ;;  %v5086_v41 = vpop.permute.xlu0 %2027 }
 0x607   : > { %2163 = vrot.lane.b32.xlu0 %v1987_v61, %s5779_s23 }
 0x608   : > { %2145 = vrot.lane.b32.xlu1 %v1950_v59, %s5779_s23 }
 0x60a   : > { %v5093_v42 = vpop.permute.xlu1 %1947  ;;  %v5095_v21 = vpop.permute.xlu0 %2005 }
 0x60b   : > { %2147 = vrot.lane.b32.xlu0 %v1951_v43, %s5779_s23 }
 0x60c   : > { %2157 = vrot.lane.b32.xlu1 %v5093_v42, %s5779_s23 }
 0x60e   : > { %v5102_v62 = vpop.permute.xlu1 %1925  ;;  %v5104_v13 = vpop.permute.xlu0 %1981 }
 0x60f   : > { %2131 = vrot.lane.b32.xlu0 %v1929_v33, %s5779_s23 }
 0x610   : > { %2129 = vrot.lane.b32.xlu1 %v1928_v45, %s5779_s23 }
 0x612   : > { %v5112_v15 = vpop.permute.xlu1 %2125  ;;  %v5114_v20 = vpop.permute.xlu0 %2093 }
 0x613   : > { %2241 = vrot.lane.b32.xlu0 %v2097_v37, %s5779_s23 }
 0x614   : > { %2141 = vrot.lane.b32.xlu1 %v5102_v62, %s5779_s23 }
 0x616   : > { %v2068_v26 = vpop.permute.xlu1 %2067  ;;  %v2046_v44 = vpop.permute.xlu0 %2045 }
 0x617   : > { %2231 = vrot.lane.b32.xlu0 %v2068_v26, %s5779_s23 }
 0x61a   : > { %v5123_v27 = vpop.permute.xlu1 %1943  ;;  %v2024_v36 = vpop.permute.xlu0 %2023 }
 0x61b   : > { %2215 = vrot.lane.b32.xlu0 %v2046_v44, %s5779_s23  ;;  %v1952_v58 = vsel %vm517_vm6, %v3407_v14, %v5123_v27 }
 0x61e   : > { %v5126_v22 = vpop.permute.xlu1 %1921  ;;  %v2002_v17 = vpop.permute.xlu0 %2001 }
 0x61f   : > { %2199 = vrot.lane.b32.xlu0 %v2024_v36, %s5779_s23  ;;  %v1930_v0 = vsel %vm505_vm7, %v3412_v12, %v5126_v22 }
 0x622   : > { %v5129_v48 = vpop.permute.xlu1 %2121  ;;  %v5131_v47 = vpop.permute.xlu0 %1977 }
 0x623   : > { %2183 = vrot.lane.b32.xlu0 %v2002_v17, %s5779_s23  ;;  %v1989_v23 = vsel %vm536_vm5, %v3402_v46, %v5131_v47 }
 0x626   : > { %v2074_v35 = vpop.permute.xlu1 %2073  ;;  %v5135_v24 = vpop.permute.xlu0 %2089 }
 0x627   : > { %2247 = vrot.lane.b32.xlu1 %v5135_v24, %s5779_s23  ;;  %2167 = vrot.lane.b32.xlu0 %v1989_v23, %s5779_s23  ;;  %v2080_v50 = vsel %vm585_vm1, %v5084_v40, %v2074_v35 }
 0x62a   : > { %v2052_v49 = vpop.permute.xlu1 %2051  ;;  %v1984_v11 = vpop.permute.xlu0 %1983 }
 0x62b   : > { %2237 = vrot.lane.b32.xlu1 %v2080_v50, %s5779_s23  ;;  %2151 = vrot.lane.b32.xlu0 %v1952_v58, %s5779_s23  ;;  %v2058_v29 = vsel %vm573_vm2, %v5076_v28, %v2052_v49  ;;  %v1992_v10 = vsel %vm536_vm5, %v5104_v13, %v1984_v11  ;;  %v2098_v11 = vsel %vm597_vm0, %v5062_v51, %v4993_v52  ;;  %v2105_v51 = vld [vmem:[%s5662_s7] sm:$0xff] }
 0x62e   : > { %v2030_v63 = vpop.permute.xlu1 %2029  ;;  %v2096_v25 = vpop.permute.xlu0 %2095 }
 0x62f   : > { %2221 = vrot.lane.b32.xlu1 %v2058_v29, %s5779_s23  ;;  %2135 = vrot.lane.b32.xlu0 %v1930_v0, %s5779_s23  ;;  %v2036_v1 = vsel %vm561_vm3, %v5086_v41, %v2030_v63 }
 0x632   : > { %v2008_v2 = vpop.permute.xlu1 %2007  ;;  %v2070_v9 = vpop.permute.xlu0 %2069 }
 0x633   : > { %2205 = vrot.lane.b32.xlu1 %v2036_v1, %s5779_s23  ;;  %v2078_v53 = vsel %vm585_vm1, %v2068_v26, %v2070_v9  ;;  %v2014_v3 = vsel %vm549_vm4, %v5095_v21, %v2008_v2  ;;  %v2079_v5 = vsel %vm585_vm1, %v2070_v9, %v5084_v40 }
 0x634   : > { %2233 = vrot.lane.b32.xlu0 %v2078_v53, %s5779_s23 }
 0x636   : > { %v2048_v54 = vpop.permute.xlu1 %2047  ;;  %v1946_v4 = vpop.permute.xlu0 %1945 }
 0x637   : > { %2189 = vrot.lane.b32.xlu1 %v2014_v3, %s5779_s23  ;;  %v2057_v55 = vsel %vm573_vm2, %v2048_v54, %v5076_v28  ;;  %v2056_v61 = vsel %vm573_vm2, %v2046_v44, %v2048_v54 }
 0x638   : > { %2219 = vrot.lane.b32.xlu0 %v2057_v55, %s5779_s23 }
 0x63a   : > { %v2026_v32 = vpop.permute.xlu1 %2025  ;;  %v1924_v59 = vpop.permute.xlu0 %1923 }
 0x63b   : > { %2173 = vrot.lane.b32.xlu1 %v1992_v10, %s5779_s23  ;;  %v2035_v56 = vsel %vm561_vm3, %v2026_v32, %v5086_v41  ;;  %v2034_v40 = vsel %vm561_vm3, %v2024_v36, %v2026_v32  ;;  %v2102_v36 = vsel %vm597_vm0, %v5114_v20, %v2096_v25 }
 0x63c   : > { %2203 = vrot.lane.b32.xlu0 %v2035_v56, %s5779_s23 }
 0x63e   : > { %v2004_v60 = vpop.permute.xlu1 %2003  ;;  %v5189_v33 = vpop.permute.xlu0 %2123 }
 0x63f   : > { %2235 = vrot.lane.b32.xlu1 %v2079_v5, %s5779_s23  ;;  %v2013_v28 = vsel %vm549_vm4, %v2004_v60, %v5095_v21  ;;  %v1954_v21 = vsel %vm517_vm6, %v1946_v4, %v5093_v42  ;;  %v2012_v37 = vsel %vm549_vm4, %v2002_v17, %v2004_v60 }
 0x640   : > { %2187 = vrot.lane.b32.xlu0 %v2013_v28, %s5779_s23 }
 0x642   : > { %v1980_v38 = vpop.permute.xlu1 %1979 }
 0x643   : > { %2217 = vrot.lane.b32.xlu1 %v2056_v61, %s5779_s23  ;;  %v1991_v41 = vsel %vm536_vm5, %v1980_v38, %v5104_v13  ;;  %v1932_v13 = vsel %vm505_vm7, %v1924_v59, %v5102_v62  ;;  %v1990_v42 = vsel %vm536_vm5, %v5131_v47, %v1980_v38  ;;  %v1953_v62 = vsel %vm517_vm6, %v5123_v27, %v1946_v4  ;;  %v2104_v47 = vld [vmem:[%s5661_s6 + $0x8] sm:$0xff] }
 0x644   : > { %2171 = vrot.lane.b32.xlu0 %v1991_v41, %s5779_s23  ;;  %3353 = vmatprep.mubr.msk.f32.mxu1 %vm5787_vm8, %v2104_v47  ;;  %v1931_v27 = vsel %vm505_vm7, %v5126_v22, %v1924_v59  ;;  %vm5795_vm8 = vmmov %vm5789_vm10 }
 0x645   : > { %3352 = vmatprep.mubr.msk.f32.mxu0 %vm5788_vm9, %v2104_v47  ;;  %vm5796_vm9 = vmmov %vm5795_vm8 }
 0x646   : > { %v2092_v43 = vpop.permute.xlu1 %2091 }
 0x647   : > { %2201 = vrot.lane.b32.xlu1 %v2034_v40, %s5779_s23  ;;  %v2101_v35 = vsel %vm597_vm0, %v2092_v43, %v5114_v20  ;;  %v2099_v20 = vsel %vm597_vm0, %v4993_v52, %v5044_v16  ;;  %v2100_v58 = vsel %vm597_vm0, %v5135_v24, %v2092_v43 }
 0x648   : > { %2155 = vrot.lane.b32.xlu0 %v1954_v21, %s5779_s23 }
 0x64a   : > { %v5191_v45 = vpop.permute.xlu1 %2149 }
 0x64b   : > { %2185 = vrot.lane.b32.xlu1 %v2012_v37, %s5779_s23 }
 0x64c   : > { %2139 = vrot.lane.b32.xlu0 %v1932_v13, %s5779_s23 }
 0x64d   : > { %v5198_v26 = vpop.permute.xlu0 %2223 }
 0x64e   : > { %v5200_v44 = vpop.permute.xlu1 %2133 }
 0x64f   : > { %2169 = vrot.lane.b32.xlu1 %v1990_v42, %s5779_s23 }
 0x650   : > { %2253 = vrot.lane.b32.xlu0 %v2102_v36, %s5779_s23 }
 0x651   : > { %v5208_v17 = vpop.permute.xlu0 %2207 }
 0x652   : > { %v5210_v46 = vpop.permute.xlu1 %2229 }
 0x653   : > { %2153 = vrot.lane.b32.xlu1 %v1953_v62, %s5779_s23 }
 0x654   : > { %2251 = vrot.lane.b32.xlu0 %v2101_v35, %s5779_s23 }
 0x655   : > { %v5221_v23 = vpop.permute.xlu0 %2191 }
 0x656   : > { %v5225_v14 = vpop.permute.xlu1 %2213 }
 0x657   : > { %2137 = vrot.lane.b32.xlu1 %v1931_v27, %s5779_s23 }
 0x658   : > { %2245 = vrot.lane.b32.xlu0 %v2099_v20, %s5779_s23 }
 0x659   : > { %v5234_v50 = vpop.permute.xlu0 %2175 }
 0x65a   : > { %v5236_v49 = vpop.permute.xlu1 %2197 }
 0x65b   : > { %2243 = vrot.lane.b32.xlu1 %v2098_v11, %s5779_s23 }
 0x65c   : > { %2562 = vrot.lane.b32.xlu0 %v4879_v8, %s5736_s28 }
 0x65d   : > { %v5244_v22 = vpop.permute.xlu0 %2159 }
 0x65e   : > { %v5246_v16 = vpop.permute.xlu1 %2181 }
 0x65f   : > { %2249 = vrot.lane.b32.xlu1 %v2100_v58, %s5779_s23 }
 0x660   : > { %2551 = vrot.lane.b32.xlu0 %v4879_v8, %s5730_s26 }
 0x661   : > { %v5253_v12 = vpop.permute.xlu0 %2143 }
 0x662   : > { %v5255_v52 = vpop.permute.xlu1 %2165 }
 0x663   : > { %2239 = vrot.lane.b32.xlu1 %v5013_v34, %s5779_s23 }
 0x665   : > { %v5262_v29 = vpop.permute.xlu0 %2127 }
 0x666   : > { %v2226_v63 = vpop.permute.xlu1 %2225 }
 0x667   : > { %2108 = vperm.xlu1 %3397, %v2105_v51  }
 0x669   : > { %v2228_v24 = vpop.permute.xlu0 %2227 }
 0x66a   : > { %v5264_v25 = vpop.permute.xlu1 %2209  ;;  %v2298_v31 = vsel %vm5792_vm13, %v2226_v63, %v2228_v24  ;;  %v2299_v39 = vsel %vm5793_vm14, %v2228_v24, %v5210_v46  ;;  %vm5800_vm13 = vmmov %vm5795_vm8 }
 0x66b   : > { %2578 = vrot.lane.b32.xlu1 %v4879_v8, %s5733_s15  ;;  %vm5801_vm14 = vmmov %vm5795_vm8 }
 0x66d   : > { %v2212_v0 = vpop.permute.xlu0 %2211 }
 0x66e   : > { %v5268_v1 = vpop.permute.xlu1 %2193 }
 0x671   : > { %v5270_v2 = vpop.permute.xlu0 %2195 }
 0x672   : > { %v5274_v9 = vpop.permute.xlu1 %2177 }
 0x675   : > { %v5272_v34 = vpop.permute.xlu0 %2179 }
 0x676   : > { %v5278_v3 = vpop.permute.xlu1 %2161 }
 0x679   : > { %v5276_v53 = vpop.permute.xlu0 %2163 }
 0x67a   : > { %v5284_v10 = vpop.permute.xlu1 %2145 }
 0x67d   : > { %v5280_v54 = vpop.permute.xlu0 %2147 }
 0x67e   : > { %v5288_v56 = vpop.permute.xlu1 %2157 }
 0x681   : > { %v5282_v55 = vpop.permute.xlu0 %2131 }
 0x682   : > { %v5290_v5 = vpop.permute.xlu1 %2129 }
 0x685   : > { %v5286_v32 = vpop.permute.xlu0 %2241 }
 0x686   : > { %v5292_v38 = vpop.permute.xlu1 %2141 }
 0x689   : > { %v2232_v4 = vpop.permute.xlu0 %2231 }
 0x68d   : > { %v2216_v60 = vpop.permute.xlu0 %2215 }
 0x691   : > { %v2200_v28 = vpop.permute.xlu0 %2199 }
 0x695   : > { %v5294_v61 = vpop.permute.xlu0 %2183 }
 0x699   : > { %v5296_v59 = vpop.permute.xlu1 %2247  ;;  %v5298_v41 = vpop.permute.xlu0 %2167 }
 0x69d   : > { %v2238_v43 = vpop.permute.xlu1 %2237  ;;  %v5300_v40 = vpop.permute.xlu0 %2151 }
 0x69e   : > { %2455 = vmatprep.subr.mxu1 %v2238_v43 }
 0x6a1   : > { %v2222_v21 = vpop.permute.xlu1 %2221  ;;  %v5302_v37 = vpop.permute.xlu0 %2135 }
 0x6a5   : > { %v2206_v13 = vpop.permute.xlu1 %2205 }
 0x6a6   : > { %v2234_v42 = vpop.permute.xlu0 %2233 }
 0x6a7   : > { %v2300_v51 = vsel %vm5791_vm12, %v2232_v4, %v2234_v42  ;;  %vm5799_vm12 = vmmov %vm5795_vm8 }
 0x6a9   : > { %v2190_v36 = vpop.permute.xlu1 %2189 }
 0x6aa   : > { %v2220_v62 = vpop.permute.xlu0 %2219 }
 0x6ad   : > { %v5304_v35 = vpop.permute.xlu1 %2173 }
 0x6ae   : > { %v2204_v47 = vpop.permute.xlu0 %2203 }
 0x6b1   : > { %v2236_v27 = vpop.permute.xlu1 %2235 }
 0x6b2   : > { %v2302_v20 = vsel %vm5789_vm10, %v2236_v27, %v2238_v43  ;;  %v2188_v11 = vpop.permute.xlu0 %2187  ;;  %v2301_v58 = vsel %vm5790_vm11, %v2234_v42, %v2236_v27  ;;  %v2297_v43 = vsel %vm5794_vm15, %v5198_v26, %v2226_v63  ;;  %v2296_v27 = vsel %vm5795_vm8, %v2220_v62, %v2222_v21  ;;  %vm5797_vm10 = vmmov %vm5795_vm8 }
 0x6b3   : > { %2384 = vmatprep.subr.mxu0 %v2301_v58  ;;  %2456 = vmatpush1.msra.mxu1 %v2302_v20  ;;  %vm5798_vm11 = vmmov %vm5795_vm8 }
 0x6b4   : > { %2385 = vmatpush1.msra.mxu0 %v2300_v51  ;;  %2457 = vmatprep.subr.mxu1 %v5210_v46  ;;  %v2291_v46 = vsel %vm5800_vm13, %v5208_v17, %v5264_v25  ;;  %vm5802_vm15 = vmmov %vm5795_vm8 }
 0x6b5   : > { %v2218_v7 = vpop.permute.xlu1 %2217  ;;  %2386 = vmatprep.subr.mxu0 %v2298_v31  ;;  %2458 = vmatpush1.msra.mxu1 %v2299_v39  ;;  %v2292_v31 = vsel %vm5798_vm11, %v5264_v25, %v2212_v0  ;;  %v2293_v39 = vsel %vm5799_vm12, %v2212_v0, %v5225_v14  ;;  %vm5805_vm11 = vmmov %vm5795_vm8 }
 0x6b6   : > { %v2294_v4 = vsel %vm5796_vm9, %v2216_v60, %v2218_v7  ;;  %2387 = vmatpush1.msra.mxu0 %v2297_v43  ;;  %2459 = vmatprep.subr.mxu1 %v2222_v21  ;;  %v2172_v42 = vpop.permute.xlu0 %2171  ;;  %v2295_v20 = vsel %vm5797_vm10, %v2218_v7, %v2220_v62  ;;  %v2290_v7 = vsel %vm5801_vm14, %v2204_v47, %v2206_v13  ;;  %vm5803_vm9 = vmmov %vm5795_vm8 }
 0x6b7   : > { %2388 = vmatprep.subr.mxu0 %v2295_v20  ;;  %2460 = vmatpush1.msra.mxu1 %v2296_v27  ;;  %vm5804_vm10 = vmmov %vm5795_vm8  ;;  %v2285_v0 = vsel %vm5805_vm11, %v5221_v23, %v5268_v1  ;;  %v2281_v23 = vsel %vm5795_vm8, %v5272_v34, %v5246_v16 }
 0x6b8   : > { %2389 = vmatpush1.msra.mxu0 %v2294_v4  ;;  %2461 = vmatprep.subr.mxu1 %v5225_v14  ;;  %v2286_v14 = vsel %vm5803_vm9, %v5268_v1, %v5270_v2  ;;  %v2287_v17 = vsel %vm5804_vm10, %v5270_v2, %v5236_v49  ;;  %vm5806_vm12 = vmmov %vm5795_vm8 }
 0x6b9   : > { %v2202_v26 = vpop.permute.xlu1 %2201  ;;  %2390 = vmatprep.subr.mxu0 %v2292_v31  ;;  %2462 = vmatpush1.msra.mxu1 %v2293_v39  ;;  %vm5807_vm13 = vmmov %vm5795_vm8 }
 0x6ba   : > { %v2288_v63 = vsel %vm5802_vm15, %v2200_v28, %v2202_v26  ;;  %2391 = vmatpush1.msra.mxu0 %v2291_v46  ;;  %2463 = vmatprep.subr.mxu1 %v2206_v13  ;;  %v2289_v24 = vsel %vm5795_vm8, %v2202_v26, %v2204_v47  ;;  %v2156_v60 = vpop.permute.xlu0 %2155  ;;  %v2284_v28 = vsel %vm5806_vm12, %v2188_v11, %v2190_v36  ;;  %vm5808_vm14 = vmmov %vm5795_vm8 }
 0x6bb   : > { %2392 = vmatprep.subr.mxu0 %v2289_v24  ;;  %2464 = vmatpush1.msra.mxu1 %v2290_v7  ;;  %vm5809_vm15 = vmmov %vm5795_vm8 }
 0x6bc   : > { %2393 = vmatpush1.msra.mxu0 %v2288_v63  ;;  %2465 = vmatprep.subr.mxu1 %v5236_v49  ;;  %v2280_v49 = vsel %vm5809_vm15, %v5274_v9, %v5272_v34  ;;  %vm5810_vm9 = vmmov %vm5795_vm8 }
 0x6bd   : > { %v2186_v25 = vpop.permute.xlu1 %2185  ;;  %2394 = vmatprep.subr.mxu0 %v2286_v14  ;;  %2466 = vmatpush1.msra.mxu1 %v2287_v17  ;;  %vm5811_vm10 = vmmov %vm5795_vm8 }
 0x6be   : > { %v2282_v21 = vsel %vm5807_vm13, %v5294_v61, %v2186_v25  ;;  %2395 = vmatpush1.msra.mxu0 %v2285_v0  ;;  %2467 = vmatprep.subr.mxu1 %v2190_v36  ;;  %v2283_v13 = vsel %vm5808_vm14, %v2186_v25, %v2188_v11  ;;  %v2140_v1 = vpop.permute.xlu0 %2139  ;;  %v2279_v61 = vsel %vm5810_vm9, %v5234_v50, %v5274_v9  ;;  %vm5812_vm11 = vmmov %vm5795_vm8 }
 0x6bf   : > { %2396 = vmatprep.subr.mxu0 %v2283_v13  ;;  %2468 = vmatpush1.msra.mxu1 %v2284_v28  ;;  %v2278_v36 = vsel %vm5811_vm10, %v2172_v42, %v5304_v35  ;;  %vm5813_vm12 = vmmov %vm5795_vm8  ;;  %v5838_v28 = vld [vmem:[#allocation7_spill] sm:$0xff]  ;;  %v5839_v13 = vld [vmem:[#allocation6_spill] sm:$0xff] }
 0x6c0   : > { %2397 = vmatpush1.msra.mxu0 %v2282_v21  ;;  %2469 = vmatprep.subr.mxu1 %v5246_v16  ;;  %vm5814_vm13 = vmmov %vm5795_vm8 }
 0x6c1   : > { %v2170_v2 = vpop.permute.xlu1 %2169  ;;  %2398 = vmatprep.subr.mxu0 %v2280_v49  ;;  %2470 = vmatpush1.msra.mxu1 %v2281_v23  ;;  %v2274_v50 = vsel %vm5814_vm13, %v5278_v3, %v5276_v53  ;;  %vm5815_vm14 = vmmov %vm5795_vm8  ;;  %v5841_v23 = vld [vmem:[#allocation4_spill] sm:$0xff] }
 0x6c2   : > { %v2276_v62 = vsel %vm5812_vm11, %v5298_v41, %v2170_v2  ;;  %2399 = vmatpush1.msra.mxu0 %v2279_v61  ;;  %2471 = vmatprep.subr.mxu1 %v5304_v35  ;;  %v2277_v47 = vsel %vm5813_vm12, %v2170_v2, %v2172_v42  ;;  %v2275_v16 = vsel %vm5815_vm14, %v5276_v53, %v5255_v52  ;;  %vm5816_vm15 = vmmov %vm5795_vm8  ;;  %v2254_v58 = vpop.permute.xlu0 %2253 }
 0x6c3   : > { %2400 = vmatprep.subr.mxu0 %v2277_v47  ;;  %2472 = vmatpush1.msra.mxu1 %v2278_v36  ;;  %v2273_v9 = vsel %vm5816_vm15, %v5244_v22, %v5278_v3  ;;  %v2272_v41 = vsel %vm5795_vm8, %v2156_v60, %v5288_v56  ;;  %vm5817_vm9 = vmmov %vm5795_vm8 }
 0x6c4   : > { %2401 = vmatpush1.msra.mxu0 %v2276_v62  ;;  %2473 = vmatprep.subr.mxu1 %v5255_v52  ;;  %vm5818_vm10 = vmmov %vm5795_vm8 }
 0x6c5   : > { %v2154_v34 = vpop.permute.xlu1 %2153  ;;  %2402 = vmatprep.subr.mxu0 %v2274_v50  ;;  %2474 = vmatpush1.msra.mxu1 %v2275_v16  ;;  %vm5819_vm11 = vmmov %vm5795_vm8 }
 0x6c6   : > { %v2270_v35 = vsel %vm5817_vm9, %v5300_v40, %v2154_v34  ;;  %2403 = vmatpush1.msra.mxu0 %v2273_v9  ;;  %2475 = vmatprep.subr.mxu1 %v5288_v56  ;;  %v2271_v11 = vsel %vm5818_vm10, %v2154_v34, %v2156_v60  ;;  %v2268_v22 = vsel %vm5819_vm11, %v5284_v10, %v5280_v54  ;;  %vm5820_vm12 = vmmov %vm5795_vm8 }
 0x6c7   : > { %2404 = vmatprep.subr.mxu0 %v2271_v11  ;;  %2476 = vmatpush1.msra.mxu1 %v2272_v41  ;;  %v2269_v52 = vsel %vm5820_vm12, %v5280_v54, %v5191_v45  ;;  %vm5821_vm13 = vmmov %vm5795_vm8  ;;  %v3417_v54 = vunpack.i.l.bf16 %v4972_v57 }
 0x6c8   : > { %2405 = vmatpush1.msra.mxu0 %v2270_v35  ;;  %2477 = vmatprep.subr.mxu1 %v5191_v45  ;;  %v2267_v3 = vsel %vm5821_vm13, %v5253_v12, %v5284_v10  ;;  %vm5822_vm14 = vmmov %vm5795_vm8  ;;  %v2252_v10 = vpop.permute.xlu0 %2251 }
 0x6c9   : > { %v2138_v53 = vpop.permute.xlu1 %2137  ;;  %2406 = vmatprep.subr.mxu0 %v2268_v22  ;;  %2478 = vmatpush1.msra.mxu1 %v2269_v52  ;;  %v2266_v56 = vsel %vm5822_vm14, %v2140_v1, %v5292_v38  ;;  %vm5823_vm15 = vmmov %vm5795_vm8 }
 0x6ca   : > { %v2264_v40 = vsel %vm5823_vm15, %v5302_v37, %v2138_v53  ;;  %2407 = vmatpush1.msra.mxu0 %v2267_v3  ;;  %2479 = vmatprep.subr.mxu1 %v5292_v38  ;;  %v2265_v51 = vsel %vm5795_vm8, %v2138_v53, %v2140_v1  ;;  %vm5824_vm9 = vmmov %vm5795_vm8 }
 0x6cb   : > { %2408 = vmatprep.subr.mxu0 %v2265_v51  ;;  %2480 = vmatpush1.msra.mxu1 %v2266_v56  ;;  %v2262_v45 = vsel %vm5824_vm9, %v5290_v5, %v5282_v55  ;;  %vm5825_vm10 = vmmov %vm5795_vm8 }
 0x6cc   : > { %2409 = vmatpush1.msra.mxu0 %v2264_v40  ;;  %2481 = vmatprep.subr.mxu1 %v5200_v44  ;;  %v2263_v12 = vsel %vm5825_vm10, %v5282_v55, %v5200_v44  ;;  %vm5826_vm11 = vmmov %vm5795_vm8  ;;  %v3418_v55 = vunpack.i.h.bf16 %v4972_v57  ;;  %v2246_v42 = vpop.permute.xlu0 %2245 }
 0x6cd   : > { %v2244_v37 = vpop.permute.xlu1 %2243  ;;  %2410 = vmatprep.subr.mxu0 %v2262_v45  ;;  %2482 = vmatpush1.msra.mxu1 %v2263_v12  ;;  %v2261_v38 = vsel %vm5826_vm11, %v5262_v29, %v5290_v5  ;;  %vm5827_vm12 = vmmov %vm5795_vm8  ;;  %v2257_v5 = vsel %vm5795_vm8, %v5069_v6, %v5015_v30 }
 0x6ce   : > { %2411 = vmatpush1.msra.mxu0 %v2261_v38  ;;  %2483 = vmatprep.subr.mxu1 %v5112_v15  ;;  %v2259_v43 = vsel %vm5827_vm12, %v5129_v48, %v5189_v33  ;;  %vm5828_vm13 = vmmov %vm5795_vm8 }
 0x6cf   : > { %v2260_v44 = vsel %vm5828_vm13, %v5189_v33, %v5112_v15  ;;  %2412 = vmatprep.subr.mxu0 %v2259_v43  ;;  %vm5829_vm14 = vmmov %vm5795_vm8 }
 0x6d0   : > { %2484 = vmatpush1.msra.mxu1 %v2260_v44  ;;  %v2258_v27 = vsel %vm5829_vm14, %v3417_v54, %v5129_v48  ;;  %vm5830_vm15 = vmmov %vm5795_vm8  ;;  %v2563_v61 = vpop.permute.xlu0 %2562 }
 0x6d1   : > { %2413 = vmatpush1.msra.mxu0 %v2258_v27  ;;  %2485 = vmatprep.subr.mxu1 %v5015_v30  ;;  %v2256_v29 = vsel %vm5830_vm15, %v5019_v19, %v5069_v6  ;;  %v2250_v4 = vpop.permute.xlu1 %2249  ;;  %vm5831_vm9 = vmmov %vm5795_vm8  ;;  %v2103_v30 = vld [vmem:[%s5661_s6] sm:$0xff] }
 0x6d2   : > { %2414 = vmatprep.subr.mxu0 %v2256_v29  ;;  %2486 = vmatpush1.msra.mxu1 %v2257_v5  ;;  %v2255_v57 = vsel %vm5831_vm9, %v3418_v55, %v5019_v19  ;;  %vm5832_vm10 = vmmov %vm5795_vm8 }
 0x6d3   : > { %v2308_v15 = vsel %vm5832_vm10, %v2252_v10, %v2254_v58  ;;  %vm5833_vm11 = vmmov %vm5795_vm8  ;;  %2415 = vmatpush1.msra.mxu0 %v2255_v57  ;;  %2515 = vmatprep.subr.mxu1 %v2254_v58 }
 0x6d4   : > { %v2306_v48 = vsel %vm5833_vm11, %v5296_v59, %v2250_v4  ;;  %vm5834_vm12 = vmmov %vm5795_vm8  ;;  %2516 = vmatpush2.msra.mxu1 %v2308_v15  ;;  %v2552_v62 = vpop.permute.xlu0 %2551 }
 0x6d5   : > { %v2307_v33 = vsel %vm5834_vm12, %v2250_v4, %v2252_v10  ;;  %vm5835_vm13 = vmmov %vm5795_vm8  ;;  %2517 = vmatprep.subr.mxu1 %v2246_v42  ;;  %v2240_v20 = vpop.permute.xlu1 %2239 }
 0x6d6   : > { %2444 = vmatprep.subr.mxu0 %v2307_v33  ;;  %v2305_v6 = vsel %vm5835_vm13, %v2244_v37, %v2246_v42  ;;  %vm5836_vm14 = vmmov %vm5795_vm8 }
 0x6d7   : > { %2445 = vmatpush2.msra.mxu0 %v2306_v48  ;;  %v2304_v19 = vsel %vm5836_vm14, %v5286_v32, %v2244_v37  ;;  %2518 = vmatpush2.msra.mxu1 %v2305_v6  ;;  %vm5837_vm15 = vmmov %vm5795_vm8  ;;  %vm5840_vm8 = vcmask 130048  }
 0x6d8   : > { %2446 = vmatprep.subr.mxu0 %v2304_v19  ;;  %v2303_v59 = vsel %vm5837_vm15, %v2240_v20, %v5286_v32  ;;  %2520 = vmatmul.mubr.f32.vlgmr.msra.gmra.mxu1 %v2103_v30 }
 0x6d9   : > { %2447 = vmatpush2.msra.mxu0 %v2303_v59  ;;  %2927 = vmatprep.mubr.f32.mxu1 %v4879_v8 }
 0x6da   : > { %2449 = vmatmul.mubr.f32.vlgmr.msra.gmra.mxu0 %v2103_v30 }
 0x6db   : > { %2856 = vmatprep.mubr.f32.mxu0 %v4879_v8 }
 0x6e2   : > { %v2109_v31 = vpop.permute.xlu1 %2108 }
 0x6e6   : > { %v2579_v36 = vpop.permute.xlu1 %2578 }
 0x798   : > { %v2521_v39 = vpop.f32.mrf.mxu1 }
 0x799   : > { %v2522_v26 = vadd.f32 %v2521_v39, %v2109_v31 }
 0x79a   : > { %v2450_v46 = vpop.f32.mrf.mxu0  ;;  %v2523_v7 = vpop.f32.mrf.mxu1 }
 0x79b   : > { %v2528_v63 = vmax.f32 %v2522_v26, 0.0  ;;  %v2451_v24 = vadd.f32 %v2450_v46, %v2109_v31  ;;  %v2524_v60 = vadd.f32 %v2523_v7, %v2109_v31 }
 0x79c   : > { %v2452_v14 = vpop.f32.mrf.mxu0 }
 0x79d   : > { %v5436_v17 = vmul.f32 %v2528_v63, %v5782_v18  ;;  %v2526_v32 = vmax.f32 %v2451_v24, 0.0  ;;  %v2529_v25 = vmax.f32 %v2524_v60, 0.0  ;;  %v2453_v0 = vadd.f32 %v2452_v14, %v2109_v31 }
 0x79f   : > { %v2530_v21 = vmul.f32 %v2526_v32, %v5838_v28  ;;  %v2533_v49 = vmul.f32 %v2529_v25, %v5839_v13  ;;  %v2527_v8 = vmax.f32 %v2453_v0, 0.0  ;;  %2640 = vrot.lane.b32.xlu0 %v5436_v17, %s3429_s19  ;;  %2568 = vrot.lane.b32.xlu1 %v5436_v17, %s5736_s28 }
 0x7a1   : > { %2537 = vst.msk [vmem:[#allocation2 + $0x20] sm:$0xff] %vm5840_vm8, %v2533_v49  ;;  %v2531_v1 = vmul.f32 %v2527_v8, %v5841_v23 }
 0x7a3   : > { %2629 = vrot.lane.b32.xlu0 %v5436_v17, %s5743_s24  ;;  %2557 = vrot.lane.b32.xlu1 %v5436_v17, %s5730_s26 }
 0x7a7   : > { %2618 = vrot.lane.b32.xlu0 %v5436_v17, %s5731_s27  ;;  %2564 = vrot.lane.b32.xlu1 %v2530_v21, %s5736_s28 }
 0x7a8   : > { %v2546_v2 = vld [vmem:[#allocation2 + $0x20] sm:$0xff] }
 0x7ab   : > { %2607 = vrot.lane.b32.xlu0 %v5436_v17, %s5732_s25  ;;  %2553 = vrot.lane.b32.xlu1 %v2530_v21, %s5730_s26 }
 0x7af   : > { %2596 = vrot.lane.b32.xlu0 %v5436_v17, %s5786_s20  ;;  %2656 = vrot.lane.b32.xlu1 %v2530_v21, %s5779_s23 }
 0x7b3   : > { %2584 = vrot.lane.b32.xlu0 %v5436_v17, %s5733_s15  ;;  %2642 = vrot.lane.b32.xlu1 %v2546_v2, %s3429_s19 }
 0x7b7   : > { %2636 = vrot.lane.b32.xlu0 %v2530_v21, %s3429_s19  ;;  %2631 = vrot.lane.b32.xlu1 %v2546_v2, %s5743_s24 }
 0x7bb   : > { %2625 = vrot.lane.b32.xlu0 %v2530_v21, %s5743_s24  ;;  %2620 = vrot.lane.b32.xlu1 %v2546_v2, %s5731_s27 }
 0x7bf   : > { %2614 = vrot.lane.b32.xlu0 %v2530_v21, %s5731_s27  ;;  %2609 = vrot.lane.b32.xlu1 %v2546_v2, %s5732_s25 }
 0x7c3   : > { %2603 = vrot.lane.b32.xlu0 %v2530_v21, %s5732_s25  ;;  %2598 = vrot.lane.b32.xlu1 %v2546_v2, %s5786_s20 }
 0x7c7   : > { %2592 = vrot.lane.b32.xlu0 %v2530_v21, %s5786_s20  ;;  %2638 = vrot.lane.b32.xlu1 %v2531_v1, %s3429_s19 }
 0x7cb   : > { %2580 = vrot.lane.b32.xlu0 %v2530_v21, %s5733_s15  ;;  %2627 = vrot.lane.b32.xlu1 %v2531_v1, %s5743_s24 }
 0x7cf   : > { %2586 = vrot.lane.b32.xlu0 %v2546_v2, %s5733_s15  ;;  %2616 = vrot.lane.b32.xlu1 %v2531_v1, %s5731_s27 }
 0x7d3   : > { %2566 = vrot.lane.b32.xlu0 %v2531_v1, %s5736_s28  ;;  %2605 = vrot.lane.b32.xlu1 %v2531_v1, %s5732_s25 }
 0x7d7   : > { %2555 = vrot.lane.b32.xlu0 %v2531_v1, %s5730_s26  ;;  %2594 = vrot.lane.b32.xlu1 %v2531_v1, %s5786_s20 }
 0x7db   : > { %2658 = vrot.lane.b32.xlu0 %v2531_v1, %s5779_s23  ;;  %2582 = vrot.lane.b32.xlu1 %v2531_v1, %s5733_s15 }
 0x811   : > { %v5482_v47 = vpop.permute.xlu1 %2568  ;;  %v2641_v50 = vpop.permute.xlu0 %2640 }
 0x812   : > { %2676 = vrot.lane.b32.xlu0 %v5482_v47, %s5779_s23 }
 0x815   : > { %v5486_v16 = vpop.permute.xlu1 %2557  ;;  %v2630_v34 = vpop.permute.xlu0 %2629 }
 0x816   : > { %2668 = vrot.lane.b32.xlu0 %v5486_v16, %s5779_s23 }
 0x819   : > { %v5490_v9 = vpop.permute.xlu1 %2564  ;;  %v2619_v41 = vpop.permute.xlu0 %2618 }
 0x81a   : > { %v2570_v48 = vsel %vm517_vm6, %v2563_v61, %v5490_v9  ;;  %v2952_v61 = vld [vmem:[%s5666_s11] sm:$0x3f] }
 0x81d   : > { %v5492_v35 = vpop.permute.xlu1 %2553  ;;  %v2608_v11 = vpop.permute.xlu0 %2607 }
 0x81e   : > { %v2559_v30 = vsel %vm505_vm7, %v2552_v62, %v5492_v35  ;;  %v2648_v62 = vld [vmem:[%s5664_s9] sm:$0xf] }
 0x821   : > { %v5494_v58 = vpop.permute.xlu1 %2656  ;;  %v2597_v22 = vpop.permute.xlu0 %2596 }
 0x825   : > { %v2643_v52 = vpop.permute.xlu1 %2642  ;;  %v2585_v53 = vpop.permute.xlu0 %2584 }
 0x826   : > { %v2646_v3 = vsel %vm597_vm0, %v2641_v50, %v2643_v52 }
 0x827   : > { %2724 = vrot.lane.b32.xlu0 %v2646_v3, %s5779_s23 }
 0x829   : > { %v2632_v56 = vpop.permute.xlu1 %2631  ;;  %v2637_v40 = vpop.permute.xlu0 %2636 }
 0x82a   : > { %v2635_v51 = vsel %vm585_vm1, %v2630_v34, %v2632_v56  ;;  %2718 = vrot.lane.b32.xlu1 %v2637_v40, %s5779_s23 }
 0x82b   : > { %2716 = vrot.lane.b32.xlu0 %v2635_v51, %s5779_s23 }
 0x82d   : > { %v2621_v45 = vpop.permute.xlu1 %2620  ;;  %v2626_v12 = vpop.permute.xlu0 %2625 }
 0x82e   : > { %v2624_v54 = vsel %vm573_vm2, %v2619_v41, %v2621_v45  ;;  %2710 = vrot.lane.b32.xlu1 %v2626_v12, %s5779_s23 }
 0x82f   : > { %2708 = vrot.lane.b32.xlu0 %v2624_v54, %s5779_s23 }
 0x831   : > { %v2610_v10 = vpop.permute.xlu1 %2609  ;;  %v2615_v37 = vpop.permute.xlu0 %2614 }
 0x832   : > { %v2613_v38 = vsel %vm561_vm3, %v2608_v11, %v2610_v10  ;;  %2702 = vrot.lane.b32.xlu1 %v2615_v37, %s5779_s23 }
 0x833   : > { %2700 = vrot.lane.b32.xlu0 %v2613_v38, %s5779_s23 }
 0x835   : > { %v2599_v43 = vpop.permute.xlu1 %2598  ;;  %v2604_v44 = vpop.permute.xlu0 %2603 }
 0x836   : > { %v2602_v55 = vsel %vm549_vm4, %v2597_v22, %v2599_v43  ;;  %2694 = vrot.lane.b32.xlu1 %v2604_v44, %s5779_s23 }
 0x837   : > { %2692 = vrot.lane.b32.xlu0 %v2602_v55, %s5779_s23 }
 0x839   : > { %v2639_v27 = vpop.permute.xlu1 %2638  ;;  %v2593_v29 = vpop.permute.xlu0 %2592 }
 0x83a   : > { %2686 = vrot.lane.b32.xlu1 %v2593_v29, %s5779_s23  ;;  %v2645_v6 = vsel %vm597_vm0, %v2639_v27, %v2641_v50  ;;  %v2644_v19 = vsel %vm597_vm0, %v2637_v40, %v2639_v27  ;;  %vm5842_vm0 = vmmov %vm5831_vm9 }
 0x83b   : > { %vm5850_vm9 = vmmov %vm5842_vm0 }
 0x83c   : > { %vm5851_vm10 = vmmov %vm5842_vm0 }
 0x83d   : > { %v2581_v5 = vpop.permute.xlu0 %2580  ;;  %v2628_v57 = vpop.permute.xlu1 %2627  ;;  %vm5852_vm11 = vmmov %vm5842_vm0 }
 0x83e   : > { %v2588_v4 = vsel %vm536_vm5, %v2579_v36, %v2581_v5  ;;  %v2634_v20 = vsel %vm585_vm1, %v2628_v57, %v2630_v34  ;;  %v2633_v31 = vsel %vm585_vm1, %v2626_v12, %v2628_v57  ;;  %v5562_v36 = vld [vmem:[#allocation2] sm:$0xff]  ;;  %vm5843_vm1 = vmmov %vm5842_vm0 }
 0x83f   : > { %2678 = vrot.lane.b32.xlu1 %v2588_v4, %s5779_s23  ;;  %vm5853_vm12 = vmmov %vm5842_vm0 }
 0x840   : > { %vm5854_vm13 = vmmov %vm5842_vm0 }
 0x841   : > { %v2587_v15 = vpop.permute.xlu0 %2586  ;;  %v2617_v42 = vpop.permute.xlu1 %2616  ;;  %vm5855_vm14 = vmmov %vm5842_vm0 }
 0x842   : > { %v2591_v33 = vsel %vm536_vm5, %v2585_v53, %v2587_v15  ;;  %v2623_v39 = vsel %vm573_vm2, %v2617_v42, %v2619_v41  ;;  %v2622_v46 = vsel %vm573_vm2, %v2615_v37, %v2617_v42  ;;  %vm5844_vm2 = vmmov %vm5842_vm0 }
 0x843   : > { %2670 = vrot.lane.b32.xlu1 %v2570_v48, %s5779_s23  ;;  %2684 = vrot.lane.b32.xlu0 %v2591_v33, %s5779_s23  ;;  %vm5856_vm15 = vmmov %vm5842_vm0 }
 0x844   : > { %vm5857_vm8 = vmmov %vm5842_vm0 }
 0x845   : > { %v2606_v59 = vpop.permute.xlu1 %2605  ;;  %v2567_v14 = vpop.permute.xlu0 %2566 }
 0x846   : > { %v2612_v7 = vsel %vm561_vm3, %v2606_v59, %v2608_v11  ;;  %v2611_v63 = vsel %vm561_vm3, %v2604_v44, %v2606_v59  ;;  %v2572_v0 = vsel %vm517_vm6, %v2567_v14, %v5482_v47  ;;  %v2571_v8 = vsel %vm517_vm6, %v5490_v9, %v2567_v14  ;;  %vm5845_vm3 = vmmov %vm5842_vm0 }
 0x847   : > { %2662 = vrot.lane.b32.xlu1 %v2559_v30, %s5779_s23  ;;  %2722 = vrot.lane.b32.xlu0 %v2645_v6, %s5779_s23  ;;  %vm5848_vm6 = vmmov %vm5842_vm0 }
 0x849   : > { %v2595_v26 = vpop.permute.xlu1 %2594  ;;  %v2556_v49 = vpop.permute.xlu0 %2555 }
 0x84a   : > { %v2601_v24 = vsel %vm549_vm4, %v2595_v26, %v2597_v22  ;;  %v2600_v32 = vsel %vm549_vm4, %v2593_v29, %v2595_v26  ;;  %v2561_v1 = vsel %vm505_vm7, %v2556_v49, %v5486_v16  ;;  %v2560_v2 = vsel %vm505_vm7, %v5492_v35, %v2556_v49  ;;  %vm5846_vm4 = vmmov %vm5842_vm0 }
 0x84b   : > { %2720 = vrot.lane.b32.xlu1 %v2644_v19, %s5779_s23  ;;  %2714 = vrot.lane.b32.xlu0 %v2634_v20, %s5779_s23  ;;  %vm5849_vm7 = vmmov %vm5842_vm0 }
 0x84d   : > { %v2583_v60 = vpop.permute.xlu1 %2582  ;;  %v5572_v47 = vpop.permute.xlu0 %2658 }
 0x84e   : > { %v2590_v25 = vsel %vm536_vm5, %v2583_v60, %v2585_v53  ;;  %v2589_v21 = vsel %vm536_vm5, %v2581_v5, %v2583_v60  ;;  %vm5847_vm5 = vmmov %vm5842_vm0 }
 0x84f   : > { %2712 = vrot.lane.b32.xlu1 %v2633_v31, %s5779_s23  ;;  %2706 = vrot.lane.b32.xlu0 %v2623_v39, %s5779_s23 }
 0x853   : > { %2704 = vrot.lane.b32.xlu1 %v2622_v46, %s5779_s23  ;;  %2698 = vrot.lane.b32.xlu0 %v2612_v7, %s5779_s23 }
 0x857   : > { %2696 = vrot.lane.b32.xlu1 %v2611_v63, %s5779_s23  ;;  %2690 = vrot.lane.b32.xlu0 %v2601_v24, %s5779_s23 }
 0x85b   : > { %2688 = vrot.lane.b32.xlu1 %v2600_v32, %s5779_s23  ;;  %2682 = vrot.lane.b32.xlu0 %v2590_v25, %s5779_s23 }
 0x85f   : > { %2680 = vrot.lane.b32.xlu1 %v2589_v21, %s5779_s23  ;;  %2674 = vrot.lane.b32.xlu0 %v2572_v0, %s5779_s23 }
 0x863   : > { %2672 = vrot.lane.b32.xlu1 %v2571_v8, %s5779_s23  ;;  %2666 = vrot.lane.b32.xlu0 %v2561_v1, %s5779_s23 }
 0x867   : > { %2660 = vrot.lane.b32.xlu0 %v5436_v17, %s5779_s23  ;;  %2664 = vrot.lane.b32.xlu1 %v2560_v2, %s5779_s23  ;;  %v3122_v17 = vld [vmem:[%s5668_s13] sm:$0x3f] }
 0x86b   : > { %2955 = vperm.xlu0 %3398, %v2952_v61   ;;  %2654 = vrot.lane.b32.xlu1 %v5562_v36, %s5779_s23 }
 0x86f   : > { %2651 = vperm.xlu1 %3397, %v2648_v62   ;;  %v2647_v62 = vld [vmem:[%s5663_s8] sm:$0xf] }
 0x873   : > { %3125 = vperm.xlu1 %3397, %v3122_v17  }
 0x884   : > { %v5574_v50 = vpop.permute.xlu0 %2676 }
 0x888   : > { %v5576_v16 = vpop.permute.xlu0 %2668 }
 0x899   : > { %v2725_v34 = vpop.permute.xlu0 %2724 }
 0x89a   : > { %2877 = vmatprep.subr.mxu1 %v2725_v34 }
 0x89c   : > { %v2719_v9 = vpop.permute.xlu1 %2718 }
 0x89d   : > { %v2717_v41 = vpop.permute.xlu0 %2716 }
 0x8a0   : > { %v2711_v35 = vpop.permute.xlu1 %2710 }
 0x8a1   : > { %v2709_v22 = vpop.permute.xlu0 %2708 }
 0x8a4   : > { %v2703_v11 = vpop.permute.xlu1 %2702 }
 0x8a5   : > { %v2701_v53 = vpop.permute.xlu0 %2700 }
 0x8a8   : > { %v2695_v52 = vpop.permute.xlu1 %2694 }
 0x8a9   : > { %v2693_v56 = vpop.permute.xlu0 %2692 }
 0x8ac   : > { %v2687_v3 = vpop.permute.xlu1 %2686 }
 0x8b1   : > { %v2679_v40 = vpop.permute.xlu1 %2678 }
 0x8b5   : > { %v5578_v51 = vpop.permute.xlu1 %2670  ;;  %v2685_v45 = vpop.permute.xlu0 %2684 }
 0x8b9   : > { %v5580_v12 = vpop.permute.xlu1 %2662  ;;  %v2723_v54 = vpop.permute.xlu0 %2722 }
 0x8ba   : > { %v2752_v10 = vsel %vm5842_vm0, %v2723_v54, %v2725_v34 }
 0x8bb   : > { %2878 = vmatpush1.msra.mxu1 %v2752_v10 }
 0x8bc   : > { %2879 = vmatprep.subr.mxu1 %v2717_v41 }
 0x8bd   : > { %v2721_v37 = vpop.permute.xlu1 %2720  ;;  %v2715_v38 = vpop.permute.xlu0 %2714 }
 0x8be   : > { %v2750_v43 = vsel %vm5843_vm1, %v2719_v9, %v2721_v37  ;;  %v2749_v44 = vsel %vm5844_vm2, %v2715_v38, %v2717_v41  ;;  %v2751_v55 = vsel %vm5845_vm3, %v2721_v37, %v2723_v54  ;;  %vm5858_vm1 = vmmov %vm5842_vm0 }
 0x8bf   : > { %2806 = vmatprep.subr.mxu0 %v2751_v55  ;;  %2880 = vmatpush1.msra.mxu1 %v2749_v44  ;;  %vm5859_vm2 = vmmov %vm5842_vm0  ;;  %v3119_v55 = vld [vmem:[%s3539_s18 + $0x18] sm:$0xff] }
 0x8c0   : > { %2807 = vmatpush1.msra.mxu0 %v2750_v43  ;;  %2881 = vmatprep.subr.mxu1 %v2709_v22  ;;  %vm5860_vm3 = vmmov %vm5842_vm0  ;;  %v2951_v43 = vld [vmem:[%s5665_s10] sm:$0x3f] }
 0x8c1   : > { %v2713_v27 = vpop.permute.xlu1 %2712  ;;  %v2707_v29 = vpop.permute.xlu0 %2706 }
 0x8c2   : > { %v2747_v5 = vsel %vm5846_vm4, %v2711_v35, %v2713_v27  ;;  %v2746_v4 = vsel %vm5847_vm5, %v2707_v29, %v2709_v22  ;;  %v2748_v57 = vsel %vm5848_vm6, %v2713_v27, %v2715_v38  ;;  %vm5861_vm4 = vmmov %vm5842_vm0 }
 0x8c3   : > { %2808 = vmatprep.subr.mxu0 %v2748_v57  ;;  %2882 = vmatpush1.msra.mxu1 %v2746_v4  ;;  %vm5862_vm5 = vmmov %vm5842_vm0 }
 0x8c4   : > { %2809 = vmatpush1.msra.mxu0 %v2747_v5  ;;  %2883 = vmatprep.subr.mxu1 %v2701_v53  ;;  %vm5863_vm6 = vmmov %vm5842_vm0  ;;  %v3117_v5 = vld [vmem:[%s3539_s18 + $0x8] sm:$0xff] }
 0x8c5   : > { %v2705_v15 = vpop.permute.xlu1 %2704  ;;  %v2699_v48 = vpop.permute.xlu0 %2698 }
 0x8c6   : > { %v2744_v33 = vsel %vm5849_vm7, %v2703_v11, %v2705_v15  ;;  %v2743_v42 = vsel %vm5850_vm9, %v2699_v48, %v2701_v53  ;;  %v2745_v30 = vsel %vm5851_vm10, %v2705_v15, %v2707_v29  ;;  %vm5864_vm7 = vmmov %vm5842_vm0  ;;  %vm5866_vm10 = vcmask 588800   ;;  %v3118_v29 = vld [vmem:[%s3539_s18 + $0x10] sm:$0xff] }
 0x8c7   : > { %2810 = vmatprep.subr.mxu0 %v2745_v30  ;;  %2884 = vmatpush1.msra.mxu1 %v2743_v42  ;;  %vm5865_vm9 = vmmov %vm5842_vm0 }
 0x8c8   : > { %2811 = vmatpush1.msra.mxu0 %v2744_v33  ;;  %2885 = vmatprep.subr.mxu1 %v2693_v56 }
 0x8c9   : > { %v2697_v6 = vpop.permute.xlu1 %2696  ;;  %v2691_v19 = vpop.permute.xlu0 %2690 }
 0x8ca   : > { %v2741_v20 = vsel %vm5852_vm11, %v2695_v52, %v2697_v6  ;;  %v2740_v59 = vsel %vm5853_vm12, %v2691_v19, %v2693_v56  ;;  %v2742_v31 = vsel %vm5854_vm13, %v2697_v6, %v2699_v48  ;;  %vm5867_vm11 = vmmov %vm5842_vm0 }
 0x8cb   : > { %2812 = vmatprep.subr.mxu0 %v2742_v31  ;;  %2886 = vmatpush1.msra.mxu1 %v2740_v59  ;;  %v2727_v34 = vsel %vm5867_vm11, %v5494_v58, %v5572_v47  ;;  %vm5868_vm12 = vmmov %vm5842_vm0 }
 0x8cc   : > { %2813 = vmatpush1.msra.mxu0 %v2741_v20  ;;  %2887 = vmatprep.subr.mxu1 %v2685_v45  ;;  %vm5869_vm13 = vmmov %vm5866_vm10 }
 0x8cd   : > { %v2689_v39 = vpop.permute.xlu1 %2688  ;;  %v2683_v26 = vpop.permute.xlu0 %2682 }
 0x8ce   : > { %v2738_v46 = vsel %vm5855_vm14, %v2687_v3, %v2689_v39  ;;  %v2737_v7 = vsel %vm5856_vm15, %v2683_v26, %v2685_v45  ;;  %v2739_v63 = vsel %vm5857_vm8, %v2689_v39, %v2691_v19  ;;  %vm2945_vm14 = vcmask 125952  }
 0x8cf   : > { %2814 = vmatprep.subr.mxu0 %v2739_v63  ;;  %2888 = vmatpush1.msra.mxu1 %v2737_v7  ;;  %vm2962_vm15 = vcmask 1043456   ;;  %vm2958_vm8 = vcmask 31744  }
 0x8d0   : > { %2815 = vmatpush1.msra.mxu0 %v2738_v46  ;;  %2889 = vmatprep.subr.mxu1 %v5574_v50 }
 0x8d1   : > { %v2681_v24 = vpop.permute.xlu1 %2680  ;;  %v2675_v60 = vpop.permute.xlu0 %2674 }
 0x8d2   : > { %v2735_v14 = vsel %vm5842_vm0, %v2679_v40, %v2681_v24  ;;  %v2734_v32 = vsel %vm5858_vm1, %v2675_v60, %v5574_v50  ;;  %v2736_v25 = vsel %vm5859_vm2, %v2681_v24, %v2683_v26  ;;  %vm3128_vm0 = vcmask 64512  }
 0x8d3   : > { %2816 = vmatprep.subr.mxu0 %v2736_v25  ;;  %2890 = vmatpush1.msra.mxu1 %v2734_v32  ;;  %vm3281_vm1 = vcmask 128000  }
 0x8d4   : > { %2817 = vmatpush1.msra.mxu0 %v2735_v14  ;;  %2891 = vmatprep.subr.mxu1 %v5576_v16 }
 0x8d5   : > { %v2673_v0 = vpop.permute.xlu1 %2672  ;;  %v2667_v21 = vpop.permute.xlu0 %2666 }
 0x8d6   : > { %v2732_v49 = vsel %vm5860_vm3, %v5578_v51, %v2673_v0  ;;  %v2731_v8 = vsel %vm5861_vm4, %v2667_v21, %v5576_v16  ;;  %v2733_v1 = vsel %vm5862_vm5, %v2673_v0, %v2675_v60 }
 0x8d7   : > { %2818 = vmatprep.subr.mxu0 %v2733_v1  ;;  %2892 = vmatpush1.msra.mxu1 %v2731_v8 }
 0x8d8   : > { %2819 = vmatpush1.msra.mxu0 %v2732_v49 }
 0x8d9   : > { %v2665_v2 = vpop.permute.xlu1 %2664  ;;  %v2661_v61 = vpop.permute.xlu0 %2660 }
 0x8da   : > { %v2729_v17 = vsel %vm5863_vm6, %v5580_v12, %v2665_v2  ;;  %v2728_v50 = vsel %vm5864_vm7, %v5572_v47, %v2661_v61  ;;  %2893 = vmatprep.subr.mxu1 %v2661_v61  ;;  %v2730_v16 = vsel %vm5865_vm9, %v2665_v2, %v2667_v21 }
 0x8db   : > { %2820 = vmatprep.subr.mxu0 %v2730_v16  ;;  %2894 = vmatpush1.msra.mxu1 %v2728_v50 }
 0x8dc   : > { %2821 = vmatpush1.msra.mxu0 %v2729_v17  ;;  %3355 = vmatmul.mubr.msk.f32.vlgmr.msra.gmra.mxu1 %vm5866_vm10, %v2647_v62 }
 0x8dd   : > { %v2655_v9 = vpop.permute.xlu1 %2654  ;;  %2822 = vmatprep.subr.mxu0 %v2727_v34  ;;  %3110 = vmatprep.mubr.f32.mxu1 %v5562_v36 }
 0x8de   : > { %v2726_v41 = vsel %vm5868_vm12, %v2655_v9, %v5494_v58 }
 0x8df   : > { %2823 = vmatpush1.msra.mxu0 %v2726_v41 }
 0x8e0   : > { %3354 = vmatmul.mubr.msk.f32.vlgmr.msra.gmra.mxu0 %vm5869_vm13, %v2647_v62 }
 0x8e1   : > { %3039 = vmatprep.mubr.f32.mxu0 %v5562_v36 }
 0x8e6   : > { %v2956_v15 = vpop.permute.xlu0 %2955 }
 0x8ea   : > { %v2652_v35 = vpop.permute.xlu1 %2651 }
 0x8ee   : > { %v3126_v48 = vpop.permute.xlu1 %3125 }
 0x99c   : > { %v2929_v11 = vpop.f32.mrf.mxu1 }
 0x99d   : > { %v2930_v22 = vadd.f32 %v2929_v11, %v2652_v35 }
 0x99e   : > { %v2931_v52 = vpop.f32.mrf.mxu1 }
 0x99f   : > { %v2936_v53 = vmax.f32 %v2930_v22, 0.0  ;;  %v2932_v3 = vadd.f32 %v2931_v52, %v2652_v35 }
 0x9a0   : > { %v2858_v56 = vpop.f32.mrf.mxu0 }
 0x9a1   : > { %v2940_v47 = vmul.f32 %v2936_v53, %v5782_v18  ;;  %v2937_v40 = vmax.f32 %v2932_v3, 0.0  ;;  %v2859_v51 = vadd.f32 %v2858_v56, %v2652_v35 }
 0x9a2   : > { %v2860_v45 = vpop.f32.mrf.mxu0 }
 0x9a3   : > { %2944 = vst [vmem:[#allocation3 + $0x18] sm:$0xf] %v2940_v47  ;;  %v2941_v58 = vmul.f32 %v2937_v40, %v5839_v13  ;;  %v2934_v12 = vmax.f32 %v2859_v51, 0.0  ;;  %v2861_v54 = vadd.f32 %v2860_v45, %v2652_v35  ;;  %v3120_v13 = vld [vmem:[%s3539_s18 + $0x20] sm:$0xff]  ;;  %s467_s18 = scalar_lea.vmem %s5669_s14, %s3366_s17 }
 0x9a5   : > { %2946 = vst.msk [vmem:[#allocation3 + $0x20] sm:$0xf] %vm2945_vm14, %v2941_v58  ;;  %v2938_v10 = vmul.f32 %v2934_v12, %v5838_v28  ;;  %v2935_v37 = vmax.f32 %v2861_v54, 0.0 }
 0x9a7   : > { %2942 = vst [vmem:[#allocation3 + $0x8] sm:$0xf] %v2938_v10  ;;  %v2939_v38 = vmul.f32 %v2935_v37, %v5841_v23  ;;  %v3121_v23 = vld [vmem:[%s5667_s12] sm:$0x3f] }
 0x9a9   : > { %2943 = vst [vmem:[#allocation3 + $0x10] sm:$0xf] %v2939_v38 }
 0x9aa   : > { %v2949_v44 = vld [vmem:[#allocation3 + $0x18] sm:$0xf] }
 0x9ac   : > { %v2950_v18 = vld [vmem:[#allocation3 + $0x20] sm:$0xf] }
 0x9ad   : > { %3359 = vmatprep.subr.msk.mxu1 %vm2962_vm15, %v2950_v18 }
 0x9ae   : > { %3360 = vmatpush1.msk.msra.mxu1 %vm2962_vm15, %v2949_v44  ;;  %v2947_v27 = vld [vmem:[#allocation3 + $0x8] sm:$0xf] }
 0x9af   : > { %3361 = vmatmul.mubr.msk.f32.vlgmr.msra.gmra.mxu1 %vm2958_vm8, %v2951_v43  ;;  %3233 = vmatprep.subr.mxu1 %v3120_v13 }
 0x9b0   : > { %v2948_v28 = vld [vmem:[#allocation3 + $0x10] sm:$0xf]  ;;  %3234 = vmatpush1.msra.mxu1 %v3119_v55  ;;  %3267 = vmatprep.mubr.f32.mxu1 %v5562_v36 }
 0x9b1   : > { %3356 = vmatprep.subr.msk.mxu0 %vm2962_vm15, %v2948_v28 }
 0x9b2   : > { %3357 = vmatpush1.msk.msra.mxu0 %vm2962_vm15, %v2947_v27 }
 0x9b3   : > { %3358 = vmatmul.mubr.msk.f32.vlgmr.msra.gmra.mxu0 %vm2958_vm8, %v2951_v43  ;;  %3363 = vmatmul.mubr.msk.f32.vlgmr.msra.gmra.mxu1 %vm3128_vm0, %v3121_v23 }
 0x9b4   : > { %3162 = vmatprep.subr.mxu0 %v3118_v29  ;;  %3196 = vmatprep.mubr.f32.mxu0 %v5562_v36 }
 0x9b5   : > { %3163 = vmatpush1.msra.mxu0 %v3117_v5 }
 0x9b7   : > { %3362 = vmatmul.mubr.msk.f32.vlgmr.msra.gmra.mxu0 %vm3128_vm0, %v3121_v23 }
 0xa6f   : > { %v3112_v4 = vpop.f32.mrf.mxu1 }
 0xa70   : > { %v3113_v30 = vadd.f32 %v3112_v4, %v2956_v15 }
 0xa71   : > { %v3114_v57 = vpop.f32.mrf.mxu1 }
 0xa72   : > { %v3115_v59 = vadd.f32 %v3114_v57, %v2956_v15 }
 0xa73   : > { %v3041_v33 = vpop.f32.mrf.mxu0  ;;  %v3269_v42 = vpop.f32.mrf.mxu1 }
 0xa74   : > { %v3270_v6 = vadd.f32 %v3269_v42, %v3126_v48  ;;  %v3042_v26 = vadd.f32 %v3041_v33, %v2956_v15 }
 0xa75   : > { %v3043_v19 = vpop.f32.mrf.mxu0  ;;  %v3271_v20 = vpop.f32.mrf.mxu1 }
 0xa76   : > { %v3276_v31 = vadd.f32 %v3270_v6, %v3113_v30  ;;  %v3272_v36 = vadd.f32 %v3271_v20, %v3126_v48  ;;  %v3044_v24 = vadd.f32 %v3043_v19, %v2956_v15 }
 0xa77   : > { %v3198_v39 = vpop.f32.mrf.mxu0 }
 0xa78   : > { %3280 = vst [vmem:[%s467_s18 + $0x10] sm:$0x3f] %v3276_v31  ;;  %v3277_v46 = vadd.f32 %v3272_v36, %v3115_v59  ;;  %v3199_v7 = vadd.f32 %v3198_v39, %v3126_v48 }
 0xa79   : > { %v3200_v63 = vpop.f32.mrf.mxu0 }
 0xa7a   : > { %3282 = vst.msk [vmem:[%s467_s18 + $0x18] sm:$0x3f] %vm3281_vm1, %v3277_v46  ;;  %v3274_v60 = vadd.f32 %v3199_v7, %v3042_v26  ;;  %v3201_v14 = vadd.f32 %v3200_v63, %v3126_v48 }
 0xa7c   : > { %3278 = vst [vmem:[%s467_s18] sm:$0x3f] %v3274_v60  ;;  %v3275_v32 = vadd.f32 %v3201_v14, %v3044_v24 }
 0xa7e   : > { %3279 = vst [vmem:[%s467_s18 + $0x8] sm:$0x3f] %v3275_v32 }
 0xa7f PF: > { %s24_s29 = sadd.s32 1, %s3427_s29  }
 0xa80   : > { %p21_p4 = scmp.ge.s32.totalorder %s24_s29, 4  }
 0xa82   :  { %23 = sbr.rel (!%p21_p4) target bundleno = 1 (0x1), region = 106 }

</bundles_post_ra>
